<compile_context>
chip_gen: v7x
topology: tpu7x:2x2x1
jax: 0.10.0
libtpu: 0.0.40
codegen_flags: <defaults>
</compile_context>

<pallas_src>
import jax
import jax.numpy as jnp
import numpy as np
from jax.experimental import pallas as pl
from jax.experimental.pallas import tpu as pltpu

NUM_CLASSES = 1000
CONV_OUT = 128        # 1x1 conv output channels
HIDDEN = 1024         # fc1 output features
SLOTS_PER_TILE = 4    # pooled-spatial slots per w1 K-tile (=> 4*128 = 512 rows)


# --------------------------- fused kernel -----------------------------------
def _aux_fused_kernel(x_ref, pmat_ref, wct_ref, bc_ref, w1_ref, b1_ref,
                      w2_hbm, b2_ref, out_ref,
                      flat_ref, acc_ref, w2_vmem, w2_sem):
    # x_ref:    (N, C, HW)           images, channels x flattened spatial
    # pmat_ref: (P, HW)              constant avg-pool matrix (P = 16)
    # wct_ref:  (C, 128)             1x1 conv weight (transposed)
    # bc_ref:   (1, 128)             conv bias
    # w1_ref:   (S, 128, HIDDEN)     bf16, current K-tile of permuted fc1 weight
    # b1_ref:   (1, HIDDEN)
    # w2_hbm:   (HIDDEN, OUTP)       bf16, fc2 weight in HBM (manual DMA)
    # b2_ref:   (1, OUTP)
    # out_ref:  (N, OUTP)            f32
    # flat_ref: (P, N, 128)  bf16    conv activations, slot-major
    # acc_ref:  (N, HIDDEN)  f32     fc1 accumulator
    # w2_vmem:  (HIDDEN, OUTP) bf16  fc2 weight prefetch buffer
    # w2_sem:   DMA semaphore
    k = pl.program_id(0)
    nk = pl.num_programs(0)
    N = x_ref.shape[0]
    S = w1_ref.shape[0]

    @pl.when(k == 0)
    def _init():
        # Kick off the fc2 weight DMA now; it overlaps with the whole w1
        # pipeline and is only waited in the finalize step.
        pltpu.make_async_copy(w2_hbm, w2_vmem, w2_sem.at[0]).start()

        # pool (constant matmul) + 1x1 conv + ReLU for the whole batch, kept
        # slot-major: flat[p, n, c] = relu(conv)[n, c, pooled-slot p].
        acts = []
        for n in range(N):                                 # N tiny: static unroll
            pooled_n = jax.lax.dot_general(                 # (P,HW) x (C,HW)^T -> (P,C)
                pmat_ref[...], x_ref[n],
                dimension_numbers=(((1,), (1,)), ((), ())),
                preferred_element_type=jnp.float32)
            conv_n = jnp.dot(pooled_n, wct_ref[...],
                             preferred_element_type=jnp.float32)        # (P, 128)
            acts.append(jnp.maximum(conv_n + bc_ref[...], 0.0))
        # cast once after ReLU; fc1 only ever consumes these as bf16 MXU LHS
        flat_ref[...] = jnp.stack(acts, axis=1).astype(jnp.bfloat16)    # (P, N, 128)
        acc_ref[...] = jnp.zeros_like(acc_ref)

    # fc1 partial product for this K-tile: one (N,128)x(128,HIDDEN) matmul per
    # slot over the whole batch (each weight sub-tile pushed exactly once),
    # register accumulation, single accumulator RMW per grid step.
    base = k * S
    acc = acc_ref[...]
    for s in range(S):
        a = flat_ref[base + s]                              # (N, 128) bf16
        acc = acc + jnp.dot(a, w1_ref[s], preferred_element_type=jnp.float32)
    acc_ref[...] = acc

    @pl.when(k == nk - 1)
    def _finalize():
        pltpu.make_async_copy(w2_hbm, w2_vmem, w2_sem.at[0]).wait()
        h = jnp.maximum(acc_ref[...] + b1_ref[...], 0.0).astype(jnp.bfloat16)
        out_ref[...] = jnp.dot(h, w2_vmem[...],
                               preferred_element_type=jnp.float32) + b2_ref[...]


# ------------------------------ wrapper --------------------------------------
@jax.jit
def inception_aux_forward(x_nchw, kp):
    """x_nchw: [N, C, H, W] float32 (PyTorch NCHW layout)."""
    N, C, H, W = x_nchw.shape
    HW = H * W
    pmat = kp["pmat"]
    P = pmat.shape[0]
    assert P % SLOTS_PER_TILE == 0
    KT = P // SLOTS_PER_TILE
    OUTP = kp["w2"].shape[1]

    x_flat = x_nchw.reshape(N, C, HW)

    out_padded = pl.pallas_call(
        _aux_fused_kernel,
        out_shape=jax.ShapeDtypeStruct((N, OUTP), jnp.float32),
        grid_spec=pltpu.PrefetchScalarGridSpec(
            num_scalar_prefetch=0,
            grid=(KT,),
            in_specs=[
                pl.BlockSpec((N, C, HW), lambda k: (0, 0, 0)),              # x (resident)
                pl.BlockSpec((P, HW), lambda k: (0, 0)),                    # pool matrix
                pl.BlockSpec((C, CONV_OUT), lambda k: (0, 0)),              # conv weight^T
                pl.BlockSpec((1, CONV_OUT), lambda k: (0, 0)),              # conv bias
                pl.BlockSpec((SLOTS_PER_TILE, CONV_OUT, HIDDEN),
                             lambda k: (k, 0, 0)),                          # w1 tile (pipelined)
                pl.BlockSpec((1, HIDDEN), lambda k: (0, 0)),                # b1
                pl.BlockSpec(memory_space=pl.ANY),                          # w2 stays in HBM
                pl.BlockSpec((1, OUTP), lambda k: (0, 0)),                  # b2
            ],
            out_specs=pl.BlockSpec((N, OUTP), lambda k: (0, 0)),
            scratch_shapes=[
                pltpu.VMEM((P, N, CONV_OUT), jnp.bfloat16),   # conv activations (slot-major)
                pltpu.VMEM((N, HIDDEN), jnp.float32),         # fc1 accumulator
                pltpu.VMEM((HIDDEN, OUTP), jnp.bfloat16),     # w2 prefetch buffer
                pltpu.SemaphoreType.DMA((1,)),                # w2 DMA semaphore
            ],
        ),
        compiler_params=pltpu.CompilerParams(
            dimension_semantics=("arbitrary",),               # K reduction axis
        ),
    )(x_flat, pmat, kp["wct"], kp["bc"], kp["w1"], kp["b1"], kp["w2"], kp["b2"])

    return out_padded[:, :NUM_CLASSES]


# --------------------------- parameter helpers --------------------------------
def _make_pool_matrix(H, W, kernel=5, stride=3):
    """pmat[p, h*W+w] = 1/25 if (h, w) is inside pooled window p (row-major)."""
    oh = (H - kernel) // stride + 1
    ow = (W - kernel) // stride + 1
    P = np.zeros((oh * ow, H * W), dtype=np.float32)
    for i in range(oh):
        for j in range(ow):
            for dh in range(kernel):
                for dw in range(kernel):
                    P[i * ow + j, (i * stride + dh) * W + (j * stride + dw)] = \
                        1.0 / (kernel * kernel)
    return P, oh, ow


def init_params(key, in_channel):
    """Deterministic synthetic parameters in PyTorch-equivalent (f32) layout."""
    ks = jax.random.split(key, 6)
    s = 0.05
    return {
        "wc": s * jax.random.normal(ks[0], (CONV_OUT, in_channel), jnp.float32),
        "bc": s * jax.random.normal(ks[1], (CONV_OUT,), jnp.float32),
        "w1": s * jax.random.normal(ks[2], (CONV_OUT * 16, HIDDEN), jnp.float32),
        "b1": s * jax.random.normal(ks[3], (HIDDEN,), jnp.float32),
        "w2": s * jax.random.normal(ks[4], (HIDDEN, NUM_CLASSES), jnp.float32),
        "b2": s * jax.random.normal(ks[5], (NUM_CLASSES,), jnp.float32),
    }


def pack_kernel_params(params, H, W):
    """One-time layout plumbing: pool matrix, slot-major w1 permutation,
    bf16 fc weights, 1000->1024 output padding."""
    pmat, oh, ow = _make_pool_matrix(H, W)
    P = oh * ow
    assert CONV_OUT * P == params["w1"].shape[0], \
        "aux head expects pooled_spatial * 128 == 2048 fc1 in-features"
    # Fold the channel-major -> slot-major feature permutation into w1's rows:
    #   flat_kernel[n, p*128 + c] == flat_torch[n, c*P + p]
    w1_3d = params["w1"].reshape(CONV_OUT, P, HIDDEN)            # [c, p, :]
    w1p = jnp.transpose(w1_3d, (1, 0, 2)).astype(jnp.bfloat16)   # (P, 128, HIDDEN)
    # Pad fc2 output 1000 -> 1024 so stores are unmasked; zeros are exact.
    outp = ((NUM_CLASSES + 127) // 128) * 128
    w2p = jnp.zeros((HIDDEN, outp), jnp.bfloat16).at[:, :NUM_CLASSES].set(
        params["w2"].astype(jnp.bfloat16))
    b2p = jnp.zeros((1, outp), jnp.float32).at[:, :NUM_CLASSES].set(
        params["b2"].reshape(1, -1))
    return {
        "pmat": jnp.asarray(pmat),                       # (P, HW) f32
        "wct": params["wc"].T,                           # (C, 128) f32
        "bc": params["bc"].reshape(1, CONV_OUT),         # (1, 128) f32
        "w1": w1p,                                       # (P, 128, HIDDEN) bf16
        "b1": params["b1"].reshape(1, HIDDEN),           # (1, HIDDEN) f32
        "w2": w2p,                                       # (HIDDEN, 1024) bf16
        "b2": b2p,                                       # (1, 1024) f32
    }


# ------------------------------ reference -------------------------------------
def _reference_forward(x_nchw, params):
    """Pure-JAX f32 reference reproducing the PyTorch forward."""
    N, C, H, W = x_nchw.shape
    pooled = jax.lax.reduce_window(
        x_nchw, 0.0, jax.lax.add,
        window_dimensions=(1, 1, 5, 5), window_strides=(1, 1, 3, 3),
        padding="VALID") / 25.0
    conv = jnp.einsum("kc,nchw->nkhw", params["wc"], pooled) \
        + params["bc"].reshape(1, CONV_OUT, 1, 1)
    conv = jnp.maximum(conv, 0.0)
    flat = conv.reshape(N, -1)
    h = jnp.maximum(flat @ params["w1"] + params["b1"], 0.0)
    return h @ params["w2"] + params["b2"]


if __name__ == "__main__":
    # GoogLeNet aux head needs 128 * pooled_spatial == 2048 (4x4 pooled map),
    # so use 16x16 spatial; small C=4, N=2 for the test.
    N, C, H, W = 2, 4, 16, 16
    key = jax.random.PRNGKey(0)
    kx, kparam = jax.random.split(key)
    x = jax.random.normal(kx, (N, C, H, W), jnp.float32)

    params = init_params(kparam, C)             # PyTorch-layout f32 (reference)
    kparams = pack_kernel_params(params, H, W)  # kernel layout (bf16 fc weights)

    out = inception_aux_forward(x, kparams)
    out = jax.block_until_ready(out)
    assert out.shape == (N, NUM_CLASSES) and out.dtype == jnp.float32

    ref = _reference_forward(x, params)
    np.testing.assert_allclose(np.asarray(out), np.asarray(ref),
                               rtol=2e-2, atol=1e-2)
    print("KERNEL_OK")
</pallas_src>

<mosaic_0001>
module attributes {stable_mosaic.version = 11 : i64} {
  func.func @_aux_fused_kernel(%arg0: i32, %arg1: memref<2x4x256xf32, #tpu.memory_space<vmem>>, %arg2: memref<16x256xf32, #tpu.memory_space<vmem>>, %arg3: memref<4x128xf32, #tpu.memory_space<vmem>>, %arg4: memref<1x128xf32, #tpu.memory_space<vmem>>, %arg5: memref<4x128x1024xbf16, #tpu.memory_space<vmem>>, %arg6: memref<1x1024xf32, #tpu.memory_space<vmem>>, %arg7: memref<1024x1024xbf16, #tpu.memory_space<any>>, %arg8: memref<1x1024xf32, #tpu.memory_space<vmem>>, %arg9: memref<2x1024xf32, #tpu.memory_space<vmem>>, %arg10: memref<16x2x128xbf16, #tpu.memory_space<vmem>>, %arg11: memref<2x1024xf32, #tpu.memory_space<vmem>>, %arg12: memref<1024x1024xbf16, #tpu.memory_space<vmem>>, %arg13: memref<1x!tpu.dma_semaphore, #tpu.memory_space<semaphore_mem>>) attributes {dimension_semantics = [#tpu.dimension_semantics<arbitrary>], iteration_bounds = array<i64: 4>, scalar_prefetch = 0 : i64, scratch_operands = 4 : i64, tpu.core_type = #tpu.core_type<tc>, window_params = [{pipeline_mode = #tpu.pipeline_mode<synchronous>, transform_indices = @transform_0, window_bounds = array<i64: 2, 4, 256>}, {pipeline_mode = #tpu.pipeline_mode<synchronous>, transform_indices = @transform_1, window_bounds = array<i64: 16, 256>}, {pipeline_mode = #tpu.pipeline_mode<synchronous>, transform_indices = @transform_2, window_bounds = array<i64: 4, 128>}, {pipeline_mode = #tpu.pipeline_mode<synchronous>, transform_indices = @transform_3, window_bounds = array<i64: 1, 128>}, {transform_indices = @transform_4, window_bounds = array<i64: 4, 128, 1024>}, {pipeline_mode = #tpu.pipeline_mode<synchronous>, transform_indices = @transform_5, window_bounds = array<i64: 1, 1024>}, {}, {pipeline_mode = #tpu.pipeline_mode<synchronous>, transform_indices = @transform_7, window_bounds = array<i64: 1, 1024>}, {pipeline_mode = #tpu.pipeline_mode<synchronous>, transform_indices = @transform_8, window_bounds = array<i64: 2, 1024>}]} {
    %c0_i32 = arith.constant 0 : i32
    %0 = arith.cmpi eq, %arg0, %c0_i32 : i32
    %1 = arith.extui %0 : i1 to i32
    %c0_i32_0 = arith.constant 0 : i32
    %2 = arith.cmpi ne, %1, %c0_i32_0 : i32
    scf.if %2 {
      %c0_i32_27 = arith.constant 0 : i32
      %41 = tpu.memref_slice %arg13[%c0_i32_27] : memref<1x!tpu.dma_semaphore, #tpu.memory_space<semaphore_mem>> -> memref<1x!tpu.dma_semaphore, #tpu.memory_space<semaphore_mem>>
      %42 = tpu.memref_squeeze %41 : memref<1x!tpu.dma_semaphore, #tpu.memory_space<semaphore_mem>> -> memref<!tpu.dma_semaphore, #tpu.memory_space<semaphore_mem>>
      tpu.enqueue_dma source(%arg7 : memref<1024x1024xbf16, #tpu.memory_space<any>>) target(%arg12 : memref<1024x1024xbf16, #tpu.memory_space<vmem>>) target_semaphore(%42 : memref<!tpu.dma_semaphore, #tpu.memory_space<semaphore_mem>>)
      %c0_28 = arith.constant 0 : index
      %c0_29 = arith.constant 0 : index
      %43 = vector.load %arg2[%c0_28, %c0_29] : memref<16x256xf32, #tpu.memory_space<vmem>>, vector<16x256xf32>
      %c0_30 = arith.constant 0 : index
      %c0_31 = arith.constant 0 : index
      %c0_32 = arith.constant 0 : index
      %44 = vector.load %arg1[%c0_30, %c0_31, %c0_32] : memref<2x4x256xf32, #tpu.memory_space<vmem>>, vector<1x4x256xf32>
      %45 = vector.shape_cast %44 : vector<1x4x256xf32> to vector<4x256xf32>
      %cst_33 = arith.constant dense<0.000000e+00> : vector<16x4xf32>
      %46 = tpu.matmul %43, %45, %cst_33 {dimension_numbers = #tpu.dot_dimension_numbers<[1], [1], [0], [0], [0, 0, 1, 0], [], []>} : vector<16x256xf32>, vector<4x256xf32>, vector<16x4xf32> -> vector<16x4xf32>
      %c0_34 = arith.constant 0 : index
      %c0_35 = arith.constant 0 : index
      %47 = vector.load %arg3[%c0_34, %c0_35] : memref<4x128xf32, #tpu.memory_space<vmem>>, vector<4x128xf32>
      %cst_36 = arith.constant dense<0.000000e+00> : vector<16x128xf32>
      %48 = tpu.matmul %46, %47, %cst_36 {dimension_numbers = #tpu.dot_dimension_numbers<[1], [0], [0], [1], [0, 0, 1, 1], [], []>} : vector<16x4xf32>, vector<4x128xf32>, vector<16x128xf32> -> vector<16x128xf32>
      %c0_37 = arith.constant 0 : index
      %c0_38 = arith.constant 0 : index
      %49 = vector.load %arg4[%c0_37, %c0_38] : memref<1x128xf32, #tpu.memory_space<vmem>>, vector<1x128xf32>
      %50 = vector.broadcast %49 : vector<1x128xf32> to vector<16x128xf32>
      %51 = arith.addf %48, %50 : vector<16x128xf32>
      %cst_39 = arith.constant 0.000000e+00 : f32
      %52 = vector.broadcast %cst_39 : f32 to vector<16x128xf32>
      %53 = arith.maximumf %51, %52 : vector<16x128xf32>
      %c0_40 = arith.constant 0 : index
      %c0_41 = arith.constant 0 : index
      %54 = vector.load %arg2[%c0_40, %c0_41] : memref<16x256xf32, #tpu.memory_space<vmem>>, vector<16x256xf32>
      %c1_42 = arith.constant 1 : index
      %c0_43 = arith.constant 0 : index
      %c0_44 = arith.constant 0 : index
      %55 = vector.load %arg1[%c1_42, %c0_43, %c0_44] : memref<2x4x256xf32, #tpu.memory_space<vmem>>, vector<1x4x256xf32>
      %56 = vector.shape_cast %55 : vector<1x4x256xf32> to vector<4x256xf32>
      %cst_45 = arith.constant dense<0.000000e+00> : vector<16x4xf32>
      %57 = tpu.matmul %54, %56, %cst_45 {dimension_numbers = #tpu.dot_dimension_numbers<[1], [1], [0], [0], [0, 0, 1, 0], [], []>} : vector<16x256xf32>, vector<4x256xf32>, vector<16x4xf32> -> vector<16x4xf32>
      %c0_46 = arith.constant 0 : index
      %c0_47 = arith.constant 0 : index
      %58 = vector.load %arg3[%c0_46, %c0_47] : memref<4x128xf32, #tpu.memory_space<vmem>>, vector<4x128xf32>
      %cst_48 = arith.constant dense<0.000000e+00> : vector<16x128xf32>
      %59 = tpu.matmul %57, %58, %cst_48 {dimension_numbers = #tpu.dot_dimension_numbers<[1], [0], [0], [1], [0, 0, 1, 1], [], []>} : vector<16x4xf32>, vector<4x128xf32>, vector<16x128xf32> -> vector<16x128xf32>
      %c0_49 = arith.constant 0 : index
      %c0_50 = arith.constant 0 : index
      %60 = vector.load %arg4[%c0_49, %c0_50] : memref<1x128xf32, #tpu.memory_space<vmem>>, vector<1x128xf32>
      %61 = vector.broadcast %60 : vector<1x128xf32> to vector<16x128xf32>
      %62 = arith.addf %59, %61 : vector<16x128xf32>
      %cst_51 = arith.constant 0.000000e+00 : f32
      %63 = vector.broadcast %cst_51 : f32 to vector<16x128xf32>
      %64 = arith.maximumf %62, %63 : vector<16x128xf32>
      %65 = vector.shape_cast %53 : vector<16x128xf32> to vector<16x1x128xf32>
      %66 = vector.shape_cast %64 : vector<16x128xf32> to vector<16x1x128xf32>
      %67 = tpu.concatenate %65, %66 in 1 : vector<16x1x128xf32>, vector<16x1x128xf32> -> vector<16x2x128xf32>
      %68 = arith.truncf %67 : vector<16x2x128xf32> to vector<16x2x128xbf16>
      %c0_52 = arith.constant 0 : index
      %c0_53 = arith.constant 0 : index
      %c0_54 = arith.constant 0 : index
      %69 = vector.load %arg10[%c0_52, %c0_53, %c0_54] : memref<16x2x128xbf16, #tpu.memory_space<vmem>>, vector<16x2x128xbf16>
      tpu.vector_store %arg10[%c0_52, %c0_53, %c0_54], %68 {strides = array<i32>} : memref<16x2x128xbf16, #tpu.memory_space<vmem>>, vector<16x2x128xbf16>,
      %cst_55 = arith.constant 0.000000e+00 : f32
      %70 = vector.broadcast %cst_55 : f32 to vector<2x1024xf32>
      %c0_56 = arith.constant 0 : index
      %c0_57 = arith.constant 0 : index
      %71 = vector.load %arg11[%c0_56, %c0_57] : memref<2x1024xf32, #tpu.memory_space<vmem>>, vector<2x1024xf32>
      tpu.vector_store %arg11[%c0_56, %c0_57], %70 {strides = array<i32>} : memref<2x1024xf32, #tpu.memory_space<vmem>>, vector<2x1024xf32>,
    } else {
    }
    %c4_i32 = arith.constant 4 : i32
    %3 = arith.muli %arg0, %c4_i32 : i32
    %c0 = arith.constant 0 : index
    %c0_1 = arith.constant 0 : index
    %4 = vector.load %arg11[%c0, %c0_1] : memref<2x1024xf32, #tpu.memory_space<vmem>>, vector<2x1024xf32>
    %c0_i32_2 = arith.constant 0 : i32
    %5 = arith.addi %3, %c0_i32_2 : i32
    %6 = arith.index_cast %5 : i32 to index
    %c0_3 = arith.constant 0 : index
    %c0_4 = arith.constant 0 : index
    %7 = vector.load %arg10[%6, %c0_3, %c0_4] : memref<16x2x128xbf16, #tpu.memory_space<vmem>>, vector<1x2x128xbf16>
    %8 = vector.shape_cast %7 : vector<1x2x128xbf16> to vector<2x128xbf16>
    %c0_5 = arith.constant 0 : index
    %c0_6 = arith.constant 0 : index
    %c0_7 = arith.constant 0 : index
    %9 = vector.load %arg5[%c0_5, %c0_6, %c0_7] : memref<4x128x1024xbf16, #tpu.memory_space<vmem>>, vector<1x128x1024xbf16>
    %10 = vector.shape_cast %9 : vector<1x128x1024xbf16> to vector<128x1024xbf16>
    %cst = arith.constant dense<0.000000e+00> : vector<2x1024xf32>
    %11 = tpu.matmul %8, %10, %cst {dimension_numbers = #tpu.dot_dimension_numbers<[1], [0], [0], [1], [0, 0, 1, 1], [], []>} : vector<2x128xbf16>, vector<128x1024xbf16>, vector<2x1024xf32> -> vector<2x1024xf32>
    %12 = arith.addf %4, %11 : vector<2x1024xf32>
    %c1_i32 = arith.constant 1 : i32
    %13 = arith.addi %3, %c1_i32 : i32
    %14 = arith.index_cast %13 : i32 to index
    %c0_8 = arith.constant 0 : index
    %c0_9 = arith.constant 0 : index
    %15 = vector.load %arg10[%14, %c0_8, %c0_9] : memref<16x2x128xbf16, #tpu.memory_space<vmem>>, vector<1x2x128xbf16>
    %16 = vector.shape_cast %15 : vector<1x2x128xbf16> to vector<2x128xbf16>
    %c1 = arith.constant 1 : index
    %c0_10 = arith.constant 0 : index
    %c0_11 = arith.constant 0 : index
    %17 = vector.load %arg5[%c1, %c0_10, %c0_11] : memref<4x128x1024xbf16, #tpu.memory_space<vmem>>, vector<1x128x1024xbf16>
    %18 = vector.shape_cast %17 : vector<1x128x1024xbf16> to vector<128x1024xbf16>
    %cst_12 = arith.constant dense<0.000000e+00> : vector<2x1024xf32>
    %19 = tpu.matmul %16, %18, %cst_12 {dimension_numbers = #tpu.dot_dimension_numbers<[1], [0], [0], [1], [0, 0, 1, 1], [], []>} : vector<2x128xbf16>, vector<128x1024xbf16>, vector<2x1024xf32> -> vector<2x1024xf32>
    %20 = arith.addf %12, %19 : vector<2x1024xf32>
    %c2_i32 = arith.constant 2 : i32
    %21 = arith.addi %3, %c2_i32 : i32
    %22 = arith.index_cast %21 : i32 to index
    %c0_13 = arith.constant 0 : index
    %c0_14 = arith.constant 0 : index
    %23 = vector.load %arg10[%22, %c0_13, %c0_14] : memref<16x2x128xbf16, #tpu.memory_space<vmem>>, vector<1x2x128xbf16>
    %24 = vector.shape_cast %23 : vector<1x2x128xbf16> to vector<2x128xbf16>
    %c2 = arith.constant 2 : index
    %c0_15 = arith.constant 0 : index
    %c0_16 = arith.constant 0 : index
    %25 = vector.load %arg5[%c2, %c0_15, %c0_16] : memref<4x128x1024xbf16, #tpu.memory_space<vmem>>, vector<1x128x1024xbf16>
    %26 = vector.shape_cast %25 : vector<1x128x1024xbf16> to vector<128x1024xbf16>
    %cst_17 = arith.constant dense<0.000000e+00> : vector<2x1024xf32>
    %27 = tpu.matmul %24, %26, %cst_17 {dimension_numbers = #tpu.dot_dimension_numbers<[1], [0], [0], [1], [0, 0, 1, 1], [], []>} : vector<2x128xbf16>, vector<128x1024xbf16>, vector<2x1024xf32> -> vector<2x1024xf32>
    %28 = arith.addf %20, %27 : vector<2x1024xf32>
    %c3_i32 = arith.constant 3 : i32
    %29 = arith.addi %3, %c3_i32 : i32
    %30 = arith.index_cast %29 : i32 to index
    %c0_18 = arith.constant 0 : index
    %c0_19 = arith.constant 0 : index
    %31 = vector.load %arg10[%30, %c0_18, %c0_19] : memref<16x2x128xbf16, #tpu.memory_space<vmem>>, vector<1x2x128xbf16>
    %32 = vector.shape_cast %31 : vector<1x2x128xbf16> to vector<2x128xbf16>
    %c3 = arith.constant 3 : index
    %c0_20 = arith.constant 0 : index
    %c0_21 = arith.constant 0 : index
    %33 = vector.load %arg5[%c3, %c0_20, %c0_21] : memref<4x128x1024xbf16, #tpu.memory_space<vmem>>, vector<1x128x1024xbf16>
    %34 = vector.shape_cast %33 : vector<1x128x1024xbf16> to vector<128x1024xbf16>
    %cst_22 = arith.constant dense<0.000000e+00> : vector<2x1024xf32>
    %35 = tpu.matmul %32, %34, %cst_22 {dimension_numbers = #tpu.dot_dimension_numbers<[1], [0], [0], [1], [0, 0, 1, 1], [], []>} : vector<2x128xbf16>, vector<128x1024xbf16>, vector<2x1024xf32> -> vector<2x1024xf32>
    %36 = arith.addf %28, %35 : vector<2x1024xf32>
    %c0_23 = arith.constant 0 : index
    %c0_24 = arith.constant 0 : index
    %37 = vector.load %arg11[%c0_23, %c0_24] : memref<2x1024xf32, #tpu.memory_space<vmem>>, vector<2x1024xf32>
    tpu.vector_store %arg11[%c0_23, %c0_24], %36 {strides = array<i32>} : memref<2x1024xf32, #tpu.memory_space<vmem>>, vector<2x1024xf32>,
    %c3_i32_25 = arith.constant 3 : i32
    %38 = arith.cmpi eq, %arg0, %c3_i32_25 : i32
    %39 = arith.extui %38 : i1 to i32
    %c0_i32_26 = arith.constant 0 : i32
    %40 = arith.cmpi ne, %39, %c0_i32_26 : i32
    scf.if %40 {
      %c0_i32_27 = arith.constant 0 : i32
      %41 = tpu.memref_slice %arg13[%c0_i32_27] : memref<1x!tpu.dma_semaphore, #tpu.memory_space<semaphore_mem>> -> memref<1x!tpu.dma_semaphore, #tpu.memory_space<semaphore_mem>>
      %42 = tpu.memref_squeeze %41 : memref<1x!tpu.dma_semaphore, #tpu.memory_space<semaphore_mem>> -> memref<!tpu.dma_semaphore, #tpu.memory_space<semaphore_mem>>
      tpu.wait_dma2 semaphore(%42 : memref<!tpu.dma_semaphore, #tpu.memory_space<semaphore_mem>>) src(%arg7 : memref<1024x1024xbf16, #tpu.memory_space<any>>) dst(%arg12 : memref<1024x1024xbf16, #tpu.memory_space<vmem>>)
      %c0_28 = arith.constant 0 : index
      %c0_29 = arith.constant 0 : index
      %43 = vector.load %arg11[%c0_28, %c0_29] : memref<2x1024xf32, #tpu.memory_space<vmem>>, vector<2x1024xf32>
      %c0_30 = arith.constant 0 : index
      %c0_31 = arith.constant 0 : index
      %44 = vector.load %arg6[%c0_30, %c0_31] : memref<1x1024xf32, #tpu.memory_space<vmem>>, vector<1x1024xf32>
      %45 = vector.broadcast %44 : vector<1x1024xf32> to vector<2x1024xf32>
      %46 = arith.addf %43, %45 : vector<2x1024xf32>
      %cst_32 = arith.constant 0.000000e+00 : f32
      %47 = vector.broadcast %cst_32 : f32 to vector<2x1024xf32>
      %48 = arith.maximumf %46, %47 : vector<2x1024xf32>
      %49 = arith.truncf %48 : vector<2x1024xf32> to vector<2x1024xbf16>
      %c0_33 = arith.constant 0 : index
      %c0_34 = arith.constant 0 : index
      %50 = vector.load %arg12[%c0_33, %c0_34] : memref<1024x1024xbf16, #tpu.memory_space<vmem>>, vector<1024x1024xbf16>
      %cst_35 = arith.constant dense<0.000000e+00> : vector<2x1024xf32>
      %51 = tpu.matmul %49, %50, %cst_35 {dimension_numbers = #tpu.dot_dimension_numbers<[1], [0], [0], [1], [0, 0, 1, 1], [], []>} : vector<2x1024xbf16>, vector<1024x1024xbf16>, vector<2x1024xf32> -> vector<2x1024xf32>
      %c0_36 = arith.constant 0 : index
      %c0_37 = arith.constant 0 : index
      %52 = vector.load %arg8[%c0_36, %c0_37] : memref<1x1024xf32, #tpu.memory_space<vmem>>, vector<1x1024xf32>
      %53 = vector.broadcast %52 : vector<1x1024xf32> to vector<2x1024xf32>
      %54 = arith.addf %51, %53 : vector<2x1024xf32>
      %c0_38 = arith.constant 0 : index
      %c0_39 = arith.constant 0 : index
      %55 = vector.load %arg9[%c0_38, %c0_39] : memref<2x1024xf32, #tpu.memory_space<vmem>>, vector<2x1024xf32>
      tpu.vector_store %arg9[%c0_38, %c0_39], %54 {strides = array<i32>} : memref<2x1024xf32, #tpu.memory_space<vmem>>, vector<2x1024xf32>,
    } else {
    }
    return
  }
  func.func @transform_0(%arg0: i32) -> (i32, i32, i32) {
    %c0_i32 = arith.constant 0 : i32
    %c0_i32_0 = arith.constant 0 : i32
    %c0_i32_1 = arith.constant 0 : i32
    %c0_i32_2 = arith.constant 0 : i32
    return %c0_i32, %c0_i32_0, %c0_i32_1 : i32, i32, i32
  }
  func.func @transform_1(%arg0: i32) -> (i32, i32) {
    %c0_i32 = arith.constant 0 : i32
    %c0_i32_0 = arith.constant 0 : i32
    %c0_i32_1 = arith.constant 0 : i32
    return %c0_i32, %c0_i32_0 : i32, i32
  }
  func.func @transform_2(%arg0: i32) -> (i32, i32) {
    %c0_i32 = arith.constant 0 : i32
    %c0_i32_0 = arith.constant 0 : i32
    %c0_i32_1 = arith.constant 0 : i32
    return %c0_i32, %c0_i32_0 : i32, i32
  }
  func.func @transform_3(%arg0: i32) -> (i32, i32) {
    %c0_i32 = arith.constant 0 : i32
    %c0_i32_0 = arith.constant 0 : i32
    %c0_i32_1 = arith.constant 0 : i32
    return %c0_i32, %c0_i32_0 : i32, i32
  }
  func.func @transform_4(%arg0: i32) -> (i32, i32, i32) {
    %c0_i32 = arith.constant 0 : i32
    %c0_i32_0 = arith.constant 0 : i32
    %c0_i32_1 = arith.constant 0 : i32
    return %arg0, %c0_i32, %c0_i32_0 : i32, i32, i32
  }
  func.func @transform_5(%arg0: i32) -> (i32, i32) {
    %c0_i32 = arith.constant 0 : i32
    %c0_i32_0 = arith.constant 0 : i32
    %c0_i32_1 = arith.constant 0 : i32
    return %c0_i32, %c0_i32_0 : i32, i32
  }
  func.func @transform_7(%arg0: i32) -> (i32, i32) {
    %c0_i32 = arith.constant 0 : i32
    %c0_i32_0 = arith.constant 0 : i32
    %c0_i32_1 = arith.constant 0 : i32
    return %c0_i32, %c0_i32_0 : i32, i32
  }
  func.func @transform_8(%arg0: i32) -> (i32, i32) {
    %c0_i32 = arith.constant 0 : i32
    %c0_i32_0 = arith.constant 0 : i32
    %c0_i32_1 = arith.constant 0 : i32
    return %c0_i32, %c0_i32_0 : i32, i32
  }
}

</mosaic_0001>

<bundles_post_ra>
// kernel: inception_aux_forward.1
= control target key start
LH: loop header
LB: loop body
LE: loop exit
PB: predicated region body
PF: predicated region fallthrough
CT: control target
= control target key end

     0   :  { %s6823_s0 = inlined_call_operand.vmem [shape: f32[2,4,256], index: 0, kind: input, shape index: {}]   ;;  %s6824_s1 = inlined_call_operand.hbm [shape: f32[16,256], index: 1, kind: input, shape index: {}]   ;;  %s6825_s2 = inlined_call_operand.hbm [shape: f32[4,128], index: 2, kind: input, shape index: {}]   ;;  %s6826_s3 = inlined_call_operand.hbm [shape: f32[1,128], index: 3, kind: input, shape index: {}]   ;;  %s6827_s4 = inlined_call_operand.hbm [shape: bf16[16,128,1024], index: 4, kind: input, shape index: {}]   ;;  %s6828_s5 = inlined_call_operand.hbm [shape: f32[1,1024], index: 5, kind: input, shape index: {}]   ;;  %s6829_s6 = inlined_call_operand.hbm [shape: bf16[1024,1024], index: 6, kind: input, shape index: {}]   ;;  %s6830_s7 = inlined_call_operand.hbm [shape: f32[1,1024], index: 7, kind: input, shape index: {}]   ;;  %s6831_s8 = inlined_call_operand.hbm [shape: f32[2,1024], index: 8, kind: output, shape index: {}]  }
   0x1   :  { %6835 = sst [smem:[#allocation27_spill]] %s6825_s2 }
   0x2   :  { %6836 = sst [smem:[#allocation28_spill]] %s6828_s5 }
   0x3   :  { %13 = vsyncpa [#allocation7], 0 }
   0x4   :  { %14 = vsyncpa [#allocation10], 0 }
   0x5   :  { %15 = vsyncpa [#allocation13], 0 }
   0x6   :  { %17 = vsyncpa [#allocation13 + $0x1], 0 }
   0x7   :  { %18 = vsyncpa [#allocation16], 0 }
   0x8   :  { %19 = vsyncpa [#allocation8], 0  ;;  %s5999_s27 = smov 0   ;;  %s6001_s28 = smov 0  }
   0x9   :  { %s6003_s29 = smov 0   ;;  %s6005_s30 = smov 0  }
   0xa LB: > { %s6018_s9 = sadd.s32 4294967295, %s5927_s30   ;;  %p129_p0 = scmp.ne.s32.totalorder %s5919_s28, %s5915_s27  ;;  %s5927_s30 = sphi %s6005_s30, %s6858_s30   ;;  %s5923_s29 = sphi %s6003_s29, %s6857_s29   ;;  %s5919_s28 = sphi %s6001_s28, %s6856_s28   ;;  %s5915_s27 = sphi %s5999_s27, %s6855_s27  }
   0xb   : > { %p6832_p1 = scmp.eq.s32.totalorder %s6018_s9, 0  ;;  %p4994_p2 = scmp.ge.s32.totalorder %s5927_s30, 1 }
   0xc   : > { %p203_p3 = scmp.lt.s32.totalorder %s5927_s30, 5  ;;  %s5929_s12 = smov [#allocation9]  }
   0xd   : > { %p6027_p5 = por %p6832_p1, %p129_p0  ;;  %s232_s13 = sshll.u32 %s5929_s12, 4  ;;  %s233_s13 = int_to_ptr.vmem [resolvable:$true] %s232_s13 }
   0xe   : > { %p6031_p6 = pnand %p4994_p2, %p203_p3  ;;  %s5930_s14 = smov [#allocation14]  }
   0xf   : > { %s6837_s10 = scalar_select %p6027_p5, 1, 0 }
  0x10   : > { %s6838_s11 = scalar_select %p6031_p6, 1, 0 }
  0x11   : > { %p5584_p7 = pneg %p6031_p6  ;;  %s254_s15 = sshll.u32 %s5930_s14, 4  ;;  %s6043_s15 = int_to_ptr.vmem [resolvable:$true] %s254_s15 }
  0x12   : > { %s5931_s17 = smov [#allocation6]   ;;  %s6840_s2 = sld [smem:[#allocation27_spill]] }
  0x13   : > { %p6039_p8 = pnand %p5584_p7, %p6832_p1  ;;  %s218_s18 = sshll.u32 %s5931_s17, 4  ;;  %s6045_s18 = int_to_ptr.vmem [resolvable:$true] %s218_s18 }
  0x15   : > { %p6055_p10 = pneg %p6039_p8 }
  0x18   : > { %s5675_s21 = scalar_lea.hbm %s6840_s2, 64 }
  0x19   : > { %p5676_p9 = scmp.ne.s32.totalorder %s6840_s2, %s5675_s21  ;;  %p5682_p13 = scmp.lt.u32.totalorder %s5675_s21, %s6840_s2 }
  0x1b   : > { %p5678_p11 = pnand %p6055_p10, %p5676_p9 }
  0x1d   : > { %p5679_p12 = pneg %p5678_p11 }
  0x1f   : > { %p5684_p0 = pnand %p5682_p13, %p5679_p12 }
  0x21   : > { %5687 = shalt.err (!%p5684_p0)
}
  0x22   : > { %s5688_s27 = scalar_lea.vmem %s233_s13, 64  ;;  %p5696_p4 = scmp.lt.s32.totalorder %s233_s13, %s233_s13 }
  0x23   : > { %p5689_p2 = scmp.ne.s32.totalorder %s233_s13, %s5688_s27  ;;  %p5697_p1 = scmp.lt.s32.totalorder %s5688_s27, %s5688_s27 }
  0x25   : > { %p5691_p3 = pnand %p5689_p2, %p6055_p10  ;;  %p5698_p5 = por %p5697_p1, %p5696_p4 }
  0x27   : > { %p5692_p7 = pneg %p5691_p3 }
  0x29   : > { %p5699_p6 = pnand %p5698_p5, %p5692_p7 }
  0x2b   : > { %5702 = shalt.err (!%p5699_p6)
}
  0x2c   : > { %5590 = dma.hbm_to_vmem [thread:$0]  (!%p6039_p8), %s6840_s2, 64, %s233_s13, [#allocation10]  }
  0x2d   : > { %s6842_s5 = sld [smem:[#allocation28_spill]] }
  0x33   : > { %s5703_s20 = scalar_lea.hbm %s6842_s5, 128 }
  0x34   : > { %p5704_p9 = scmp.ne.s32.totalorder %s6842_s5, %s5703_s20  ;;  %p5710_p4 = scmp.lt.u32.totalorder %s5703_s20, %s6842_s5 }
  0x36   : > { %p5706_p11 = pnand %p5704_p9, %p6055_p10 }
  0x38   : > { %p5707_p1 = pneg %p5706_p11 }
  0x3a   : > { %p5712_p5 = pnand %p5710_p4, %p5707_p1 }
  0x3c   : > { %5715 = shalt.err (!%p5712_p5)
}
  0x3d   : > { %s5716_s13 = scalar_lea.vmem %s6043_s15, 128  ;;  %p5724_p0 = scmp.lt.s32.totalorder %s6043_s15, %s6043_s15 }
  0x3e   : > { %p5717_p6 = scmp.ne.s32.totalorder %s6043_s15, %s5716_s13  ;;  %p5725_p2 = scmp.lt.s32.totalorder %s5716_s13, %s5716_s13 }
  0x40   : > { %p5719_p12 = pnand %p5717_p6, %p6055_p10  ;;  %p5726_p3 = por %p5725_p2, %p5724_p0 }
  0x42   : > { %p5720_p13 = pneg %p5719_p12 }
  0x44   : > { %p5727_p7 = pnand %p5726_p3, %p5720_p13 }
  0x46   : > { %5730 = shalt.err (!%p5727_p7)
}
  0x47   : > { %5596 = dma.hbm_to_vmem [thread:$0]  (!%p6039_p8), %s6842_s5, 128, %s6043_s15, [#allocation13]  }
  0x48   : > { %s5731_s17 = scalar_lea.hbm %s6824_s1, 512 }
  0x49   : > { %p5732_p9 = scmp.ne.s32.totalorder %s6824_s1, %s5731_s17  ;;  %p5738_p4 = scmp.lt.u32.totalorder %s5731_s17, %s6824_s1 }
  0x4b   : > { %p5734_p11 = pnand %p5732_p9, %p6055_p10 }
  0x4d   : > { %p5735_p1 = pneg %p5734_p11 }
  0x4f   : > { %p5740_p5 = pnand %p5738_p4, %p5735_p1 }
  0x51   : > { %5743 = shalt.err (!%p5740_p5)
}
  0x52   : > { %s5744_s15 = scalar_lea.vmem %s6045_s18, 512  ;;  %p5752_p0 = scmp.lt.s32.totalorder %s6045_s18, %s6045_s18 }
  0x53   : > { %p5745_p6 = scmp.ne.s32.totalorder %s6045_s18, %s5744_s15  ;;  %p5753_p2 = scmp.lt.s32.totalorder %s5744_s15, %s5744_s15 }
  0x55   : > { %p5747_p12 = pnand %p5745_p6, %p6055_p10  ;;  %p5754_p3 = por %p5753_p2, %p5752_p0 }
  0x57   : > { %p5748_p13 = pneg %p5747_p12 }
  0x59   : > { %p5755_p7 = pnand %p5754_p3, %p5748_p13 }
  0x5b   : > { %5758 = shalt.err (!%p5755_p7)
}
  0x5c   : > { %s5932_s23 = smov 256   ;;  %s5933_s25 = smov 16  }
  0x5d   : > { %5587 = dma.hbm_to_vmem [thread:$0]  (!%p6039_p8), %s6824_s1, 512, %s6045_s18, [#allocation7], %s5932_s23, %s5932_s23, %s5933_s25  }
  0x5e   : > { %s5934_s27 = smov [#allocation11]   ;;  %s5935_s14 = smov [#allocation15]  }
  0x5f   : > { %s243_s12 = sshll.u32 %s5934_s27, 4  ;;  %s265_s17 = sshll.u32 %s5935_s14, 4  ;;  %s244_s12 = int_to_ptr.vmem [resolvable:$true] %s243_s12  ;;  %s266_s17 = int_to_ptr.vmem [resolvable:$true] %s265_s17 }
  0x60   : > { %s5759_s21 = scalar_lea.hbm %s6826_s3, 16 }
  0x61   : > { %p5760_p9 = scmp.ne.s32.totalorder %s6826_s3, %s5759_s21  ;;  %p5766_p4 = scmp.lt.u32.totalorder %s5759_s21, %s6826_s3 }
  0x63   : > { %p5762_p11 = pnand %p5760_p9, %p6055_p10 }
  0x65   : > { %p5763_p1 = pneg %p5762_p11 }
  0x67   : > { %p5768_p5 = pnand %p5766_p4, %p5763_p1 }
  0x69   : > { %5771 = shalt.err (!%p5768_p5)
}
  0x6a   : > { %s5772_s18 = scalar_lea.vmem %s244_s12, 16  ;;  %s5779_s23 = scalar_lea.vmem %s244_s12, 32 }
  0x6b   : > { %p5773_p6 = scmp.ne.s32.totalorder %s244_s12, %s5772_s18  ;;  %p5780_p0 = scmp.lt.s32.totalorder %s244_s12, %s244_s12 }
  0x6c   : > { %p5781_p2 = scmp.lt.s32.totalorder %s5779_s23, %s5772_s18 }
  0x6d   : > { %p5775_p12 = pnand %p5773_p6, %p6055_p10 }
  0x6e   : > { %p5782_p3 = por %p5781_p2, %p5780_p0 }
  0x6f   : > { %p5776_p13 = pneg %p5775_p12 }
  0x71   : > { %p5783_p7 = pnand %p5782_p3, %p5776_p13 }
  0x73   : > { %5786 = shalt.err (!%p5783_p7)
}
  0x74   : > { %5593 = dma.hbm_to_vmem [thread:$0]  (!%p6039_p8), %s6826_s3, 16, %s244_s12, [#allocation10]  }
  0x75   : > { %s5787_s26 = scalar_lea.hbm %s6830_s7, 128 }
  0x76   : > { %p5788_p9 = scmp.ne.s32.totalorder %s6830_s7, %s5787_s26  ;;  %p5794_p4 = scmp.lt.u32.totalorder %s5787_s26, %s6830_s7 }
  0x78   : > { %p5790_p11 = pnand %p5788_p9, %p6055_p10 }
  0x7a   : > { %p5791_p1 = pneg %p5790_p11 }
  0x7c   : > { %p5796_p5 = pnand %p5794_p4, %p5791_p1 }
  0x7e   : > { %5799 = shalt.err (!%p5796_p5)
}
  0x7f   : > { %s5800_s21 = scalar_lea.vmem %s266_s17, 128  ;;  %p5808_p0 = scmp.lt.s32.totalorder %s266_s17, %s266_s17 }
  0x80   : > { %p5801_p6 = scmp.ne.s32.totalorder %s266_s17, %s5800_s21  ;;  %p5809_p2 = scmp.lt.s32.totalorder %s5800_s21, %s5800_s21 }
  0x82   : > { %p5803_p12 = pnand %p5801_p6, %p6055_p10  ;;  %p5810_p3 = por %p5809_p2, %p5808_p0 }
  0x84   : > { %p5804_p13 = pneg %p5803_p12 }
  0x86   : > { %p5811_p7 = pnand %p5810_p3, %p5804_p13 }
  0x88   : > { %5814 = shalt.err (!%p5811_p7)
}
  0x89   : > { %5599 = dma.hbm_to_vmem [thread:$0]  (!%p6039_p8), %s6830_s7, 128, %s266_s17, [#allocation16]  }
  0x8a   : > { %s6154_s24 = sadd.s32 1, %s5927_s30   ;;  %s116_s16 = sadd.s32 1, %s5923_s29 }
  0x8b   : > { %s113_s15 = ssub.s32 %s5927_s30, %s6154_s24  ;;  %p123_p9 = scmp.ne.s32.totalorder %s5923_s29, %s5919_s28 }
  0x8c   : > { %p114_p10 = scmp.eq.s32.totalorder %s113_s15, 0  ;;  %p124_p11 = scmp.eq.s32.totalorder %s5927_s30, 0 }
  0x8d   : > { %p5609_p1 = scmp.lt.s32.totalorder %s5927_s30, 4  ;;  %s276_s23 = sand.u32 1, %s5927_s30  }
  0x8e   : > { %s6164_s18 = scalar_select %p114_p10, %s5923_s29, %s116_s16  }
  0x8f   : > { %p125_p4 = por %p124_p11, %p123_p9  ;;  %s278_s25 = sand.u32 1, %s5923_s29  }
  0x90   : > { %s5001_s13 = sshll.u32 %s278_s25, 11  ;;  %s5485_s2 = sshll.u32 %s5927_s30, 15 }
  0x91   : > { %s6172_s17 = scalar_lea.hbm %s6827_s4, %s5485_s2  ;;  %s280_s27 = scalar_lea.vmem [#allocation12], %s5001_s13 }
  0x92   : > { %s288_s14 = sshll.u32 %s280_s27, 4  ;;  %p6174_p8 = pnand %p5609_p1, %p125_p4  ;;  %s6178_s14 = int_to_ptr.vmem [resolvable:$true] %s288_s14 }
  0x93   : > { %s6180_s30 = scalar_lea.sflag [#allocation13], %s276_s23  ;;  %s5815_s20 = scalar_lea.hbm %s6172_s17, 32768 }
  0x94   : > { %p5816_p5 = scmp.ne.s32.totalorder %s6172_s17, %s5815_s20  ;;  %p5817_p6 = pneg %p6174_p8 }
  0x95   : > { %s5820_s22 = scalar_lea.hbm %s6827_s4, 131072  ;;  %p5821_p0 = scmp.lt.u32.totalorder %s6172_s17, %s6827_s4 }
  0x96   : > { %p5818_p12 = pnand %p5817_p6, %p5816_p5  ;;  %p5822_p2 = scmp.lt.u32.totalorder %s5820_s22, %s5815_s20 }
  0x97   : > { %p5824_p7 = scmp.lt.u32.totalorder %s5815_s20, %s6172_s17 }
  0x98   : > { %p5819_p13 = pneg %p5818_p12  ;;  %p5823_p3 = por %p5822_p2, %p5821_p0 }
  0x9a   : > { %p5825_p10 = por %p5824_p7, %p5823_p3 }
  0x9c   : > { %p5826_p9 = pnand %p5825_p10, %p5819_p13 }
  0x9e   : > { %5829 = shalt.err (!%p5826_p9)
}
  0x9f   : > { %s5830_s23 = scalar_lea.vmem %s6178_s14, 32768  ;;  %s5936_s25 = smov [#allocation12]  }
  0xa0   : > { %p5831_p11 = scmp.ne.s32.totalorder %s6178_s14, %s5830_s23  ;;  %s5835_s13 = sshll.u32 %s5936_s25, 4  ;;  %s5836_s13 = int_to_ptr.vmem [resolvable:$false] %s5835_s13 }
  0xa1   : > { %s5837_s2 = scalar_lea.vmem %s5836_s13, 65536  ;;  %p5838_p5 = scmp.lt.s32.totalorder %s6178_s14, %s5836_s13 }
  0xa2   : > { %p5833_p1 = pnand %p5831_p11, %p5817_p6  ;;  %p5839_p12 = scmp.lt.s32.totalorder %s5837_s2, %s5830_s23 }
  0xa4   : > { %p5834_p4 = pneg %p5833_p1  ;;  %p5840_p0 = por %p5839_p12, %p5838_p5 }
  0xa6   : > { %p5841_p2 = pnand %p5840_p0, %p5834_p4 }
  0xa8   : > { %5844 = shalt.err (!%p5841_p2)
}
  0xa9   : > { %s5937_s5 = smov 512   ;;  %s5938_s26 = smov 32  }
  0xaa   : > { %5603 = dma.hbm_to_vmem [thread:$0]  (!%p6174_p8), %s6172_s17, 32768, %s6178_s14, %s6180_s30, %s5937_s5, %s5937_s5, %s5938_s26  }
  0xab   : > { %p6844_p6 = scmp.ne.s32.totalorder %s6838_s11, 0 }
  0xac   : > { %p6845_p13 = scmp.eq.s32.totalorder (!%p6844_p6), %s6018_s9, 0 }
  0xad   : > { %300 = sbr.rel (%p6844_p6) target bundleno = 2145 (0x861), region = 48 }
  0xb4   : > { %5888 = dma.done.wait (%p6845_p13), [#allocation7], 512   ;;  %p6846_p3 = pmov %p6845_p13 }
  0xb6   : > { %5890 = vsyncadd (%p6846_p3), [#allocation7], 4294966784  ;;  %p6847_p7 = pmov %p6846_p3 }
  0xb7   : > { %p6848_p10 = pmov %p6846_p3 }
  0xb8   : > { %5892 = dma.done.wait (%p6847_p7), [#allocation10], 80  }
  0xb9   : > { %5894 = vsyncadd (%p6848_p10), [#allocation10], 4294967216  ;;  %s314_s27 = sand.u32 1, %s6018_s9   ;;  %s316_s17 = sand.u32 1, %s5919_s28  }
  0xba   : > { %s5009_s14 = sshll.u32 %s316_s17, 11  ;;  %s315_s11 = scalar_lea.sflag [#allocation13], %s314_s27 }
  0xbb   : > { %s6220_s19 = scalar_lea.vmem [#allocation12], %s5009_s14  ;;  %p6849_p8 = scmp.ne.s32.totalorder %s6837_s10, 0 }
  0xbd   : > { %5896 = dma.done.wait (%p6849_p8), %s315_s11, 32768  }
  0xbe   : > { %5898 = vsyncadd (%p6849_p8), %s315_s11, 4294934528  ;;  %p6850_p9 = pmov %p6846_p3 }
  0xbf   : > { %p6851_p11 = pmov %p6846_p3 }
  0xc0   : > { %5900 = dma.done.wait (%p6850_p9), [#allocation13], 128  }
  0xc1   : > { %5902 = vsyncadd (%p6851_p11), [#allocation13], 4294967168  ;;  %p6852_p1 = pmov %p6846_p3 }
  0xc3   : > { %5904 = dma.done.wait (%p6852_p1), [#allocation16], 128   ;;  %p6853_p4 = pmov %p6852_p1 }
  0xc4   : > { %p6854_p5 = scmp.ne.s32.totalorder %s6018_s9, 0 }
  0xc5   : > { %5906 = vsyncadd (%p6853_p4), [#allocation16], 4294967168 }
  0xc6   : > { %357 = sbr.rel (%p6854_p5) target bundleno = 902 (0x386), region = 76 }
  0xcd   : > { %s362_s30 = sld [smem:[#allocation0]]   ;;  %s5939_s20 = smov [#allocation4]   ;;  %v5949_v0 = vmov 0.0   ;;  %vm491_vm0 = vcmask 1043456   ;;  %vm484_vm1 = vcmask 31744   ;;  %v741_v23 = vlaneseq }
  0xce   : > { %s370_s21 = sshll.u32 %s5939_s20, 4  ;;  %s5940_s10 = smov 1024   ;;  %v5950_v21 = vmov 1966171168   ;;  %vm1031_vm2 = vcmask 1040384   ;;  %s371_s21 = int_to_ptr.vmem [resolvable:$true] %s370_s21 }
  0xcf   : > { %374 = sst [smem:[#allocation19]] %s5940_s10  ;;  %s5941_s12 = smov 8   ;;  %v739_v22 = vunpack.c.l.s4 %v5950_v21  ;;  %v742_v27 = vshrl.u32 %v741_v23, 7 }
  0xd0   : > { %376 = sst [smem:[#allocation19 + $0x1]] %s5940_s10  ;;  %s5942_s22 = smov 64  }
  0xd1   : > { %378 = sst [smem:[#allocation19 + $0x2]] %s5941_s12  ;;  %s5943_s16 = smov 128   ;;  %v740_v26 = vunpack.c.0.s8 %v739_v22 }
  0xd2   : > { %380 = sst [smem:[#allocation19 + $0x3]] %s5942_s22  ;;  %s5944_s25 = smov 2  }
  0xd3   : > { %s5013_s15 = sshll.u32 %s362_s30, 26  ;;  %382 = sst [smem:[#allocation19 + $0x4]] %s5943_s16  ;;  %v743_v30 = vsub.s32 %v740_v26, %v742_v27 }
  0xd4   : > { %s5014_s23 = sadd.s32 134217728, %s5013_s15  ;;  %384 = sst [smem:[#allocation19 + $0x5]] %s5944_s25 }
  0xd5   : > { %s5945_s13 = smov 512   ;;  %388 = sst [smem:[#allocation19 + $0x7]] %s5942_s22 }
  0xd6   : > { %386 = sst [smem:[#allocation19 + $0x6]] %s5945_s13  ;;  %s5946_s2 = smov 4  }
  0xd7   : > { %390 = sst [smem:[#allocation19 + $0x8]] %s5946_s2  ;;  %s5947_s5 = smov [#allocation5]  }
  0xd8   : > { %s5948_s26 = smov [#allocation18]  }
  0xd9   : > { %392 = dma.general %s6829_s6, 65536, %s371_s21, %s5947_s5, %s5948_s26, [#allocation19], %s5014_s23, 0  }
  0xda   : > { %1080 = vst [vmem:[#allocation3] sm:$0xff] %v5949_v0  ;;  %1081 = vst [vmem:[#allocation3 + $0x8] sm:$0xff] %v5949_v0  ;;  %v397_v1 = vld [vmem:[%s6823_s0] sm:$0xff]  ;;  %v394_v2 = vld [vmem:[#allocation6 + $0x8] sm:$0xff]  ;;  %v6267_v0 = vsub.s32 0, %v742_v27 }
  0xdb   : > { %v399_v3 = vcombine.high %v397_v1, %v397_v1  ;;  %465 = vmatprep.mubr.f32.mxu0 %v394_v2  ;;  %v476_v4 = vld [vmem:[#allocation9] sm:$0xf]  ;;  %v396_v6 = vld [vmem:[#allocation6 + $0x18] sm:$0xff]  ;;  %v395_v7 = vld [vmem:[#allocation6 + $0x10] sm:$0xff] }
  0xdc   : > { %5492 = vmatprep.subr.msk.mxu1 %vm491_vm0, %v476_v4  ;;  %v393_v5 = vld [vmem:[#allocation6] sm:$0xff]  ;;  %v5019_v8 = vld [vmem:[%s6823_s0 + $0x8] sm:$0xff] }
  0xdd   : > { %401 = vmatprep.subr.mxu0 %v399_v3  ;;  %5493 = vmatpush3.msk.msra.mxu1 %vm491_vm0, %v476_v4  ;;  %v575_v9 = vcombine.high %v5019_v8, %v5019_v8  ;;  %v5015_v20 = vld [vmem:[#allocation11] ss:$0 sm:$0xff] }
  0xde   : > { %402 = vmatpush1.xpose.msra.mxu0 %v397_v1 }
  0xdf   : > { %5497 = vmatprep.subr.msk.mxu0 %vm491_vm0, %v476_v4  ;;  %577 = vmatprep.subr.mxu1 %v575_v9 }
  0xe1   : > { %466 = vmatmul.mubr.f32.vlgmr.msra.gmra.mrb[0].mxu0 %v393_v5 }
  0xe2   : > { %470 = vmatprep.mubr.f32.mxu0 %v396_v6  ;;  %5498 = vmatpush3.msk.msra.mxu0 %vm491_vm0, %v476_v4 }
  0xe5   : > { %471 = vmatmul.mubr.f32.gmra.mrb[2].mxu0 %v395_v7 }
 0x1b4   : > { %v467_v10 = vpop.f32.mrb[0].mxu0 }
 0x1b5   : > { %v469_v11 = vpop.f32.mrb[1].mxu0  ;;  %5494 = vmatprep.mubr.msk.f32.mxu1 %vm484_vm1, %v467_v10 }
 0x1b8   : > { %v472_v12 = vpop.f32.mrb[2].mxu0 }
 0x1b9   : > { %v474_v13 = vpop.f32.mrb[3].mxu0  ;;  %5495 = vmatmul.mubr.msk.f32.vlgmr.msra.gmra.mrb[0].mxu1 %vm484_vm1, %v472_v12 }
 0x1ba   : > { %578 = vmatpush1.xpose.msra.mxu1 %v5019_v8  ;;  %641 = vmatprep.mubr.f32.mxu1 %v394_v2 }
 0x1bd   : > { %642 = vmatmul.mubr.f32.vlgmr.msra.gmra.mrb[2].mxu1 %v393_v5 }
 0x1be   : > { %646 = vmatprep.mubr.f32.mxu1 %v396_v6 }
 0x1c1   : > { %647 = vmatmul.mubr.f32.gmra.mrb[4].mxu1 %v395_v7 }
 0x28c   : > { %v5496_v14 = vpop.f32.mrb[0].mxu1 }
 0x28d   : > { %v561_v15 = vpop.f32.mrb[1].mxu1  ;;  %v567_v24 = vadd.f32 %v5496_v14, %v5015_v20 }
 0x28e   : > { %v562_v25 = vadd.f32 %v5015_v20, %v561_v15 }
 0x28f   : > { %v571_v28 = vmax.f32 %v567_v24, 0.0 }
 0x290   : > { %v643_v16 = vpop.f32.mrb[2].mxu1  ;;  %v570_v29 = vmax.f32 %v562_v25, 0.0 }
 0x291   : > { %v645_v17 = vpop.f32.mrb[3].mxu1  ;;  %5499 = vmatprep.mubr.msk.f32.mxu0 %vm484_vm1, %v643_v16  ;;  %v786_v31 = vcombine.high %v571_v28, %v571_v28  ;;  %v793_v33 = vrot.slane %v571_v28, %v743_v30 }
 0x292   : > { %v737_v32 = vcombine.high %v570_v29, %v570_v29  ;;  %v744_v34 = vrot.slane %v570_v29, %v743_v30 }
 0x293   : > { %v800_v35 = vrot.slane %v786_v31, %v743_v30  ;;  %v801_v37 = vcombine.high %v793_v33, %v793_v33  ;;  %v809_v40 = vrot.slane %v793_v33, %v743_v30 }
 0x294   : > { %v648_v18 = vpop.f32.mrb[4].mxu1  ;;  %v751_v36 = vrot.slane %v737_v32, %v743_v30  ;;  %v752_v38 = vcombine.high %v744_v34, %v744_v34  ;;  %v6253_v44 = vrot.slane %v744_v34, %v743_v30 }
 0x295   : > { %v650_v19 = vpop.f32.mrb[5].mxu1  ;;  %5500 = vmatmul.mubr.msk.f32.vlgmr.msra.gmra.mrb[4].mxu0 %vm484_vm1, %v648_v18  ;;  %v802_v39 = vcombine.high %v800_v35, %v800_v35  ;;  %v816_v42 = vrot.slane %v800_v35, %v743_v30  ;;  %v823_v43 = vrot.slane %v801_v37, %v743_v30  ;;  %v831_v52 = vcombine.high %v809_v40, %v809_v40 }
 0x296   : > { %v753_v41 = vcombine.high %v751_v36, %v751_v36  ;;  %v6255_v46 = vrot.slane %v751_v36, %v743_v30  ;;  %v6257_v47 = vrot.slane %v752_v38, %v743_v30  ;;  %v782_v57 = vcombine.high %v6253_v44, %v6253_v44 }
 0x297   : > { %v830_v50 = vrot.slane %v802_v39, %v743_v30  ;;  %v832_v55 = vcombine.high %v816_v42, %v816_v42  ;;  %v833_v56 = vcombine.high %v823_v43, %v823_v43 }
 0x298   : > { %v6259_v53 = vrot.slane %v753_v41, %v743_v30  ;;  %v783_v59 = vcombine.high %v6255_v46, %v6255_v46  ;;  %v784_v60 = vcombine.high %v6257_v47, %v6257_v47 }
 0x299   : > { %v834_v63 = vcombine.high %v830_v50, %v830_v50 }
 0x29a   : > { %v785_v3 = vcombine.high %v6259_v53, %v6259_v53 }
 0x368   : > { %v5501_v45 = vpop.f32.mrb[4].mxu0 }
 0x369   : > { %v730_v48 = vadd.f32 %v5501_v45, %v5015_v20  ;;  %v724_v49 = vpop.f32.mrb[5].mxu0 }
 0x36a   : > { %v725_v51 = vadd.f32 %v5015_v20, %v724_v49 }
 0x36b   : > { %v734_v54 = vmax.f32 %v730_v48, 0.0 }
 0x36c   : > { %v733_v58 = vmax.f32 %v725_v51, 0.0 }
 0x36d   : > { %v902_v61 = vcombine.high %v734_v54, %v734_v54  ;;  %v909_v62 = vrot.slane %v734_v54, %v743_v30 }
 0x36e   : > { %v853_v1 = vcombine.high %v733_v58, %v733_v58  ;;  %v860_v2 = vrot.slane %v733_v58, %v743_v30 }
 0x36f   : > { %v916_v4 = vrot.slane %v902_v61, %v743_v30  ;;  %v917_v5 = vcombine.high %v909_v62, %v909_v62  ;;  %v925_v6 = vrot.slane %v909_v62, %v743_v30 }
 0x370   : > { %v867_v7 = vrot.slane %v853_v1, %v743_v30  ;;  %v868_v8 = vcombine.high %v860_v2, %v860_v2  ;;  %v876_v9 = vrot.slane %v860_v2, %v743_v30 }
 0x371   : > { %v918_v10 = vcombine.high %v916_v4, %v916_v4  ;;  %v932_v11 = vrot.slane %v916_v4, %v743_v30  ;;  %v939_v12 = vrot.slane %v917_v5, %v743_v30  ;;  %v947_v13 = vcombine.high %v925_v6, %v925_v6 }
 0x372   : > { %v986_v14 = vrot.slane %v925_v6, %v6267_v0  ;;  %v869_v15 = vcombine.high %v867_v7, %v867_v7  ;;  %v883_v16 = vrot.slane %v867_v7, %v743_v30  ;;  %v890_v17 = vrot.slane %v868_v8, %v743_v30 }
 0x373   : > { %v946_v18 = vrot.slane %v918_v10, %v743_v30  ;;  %v948_v19 = vcombine.high %v932_v11, %v932_v11  ;;  %v949_v20 = vcombine.high %v939_v12, %v939_v12  ;;  %v990_v21 = vrot.slane %v939_v12, %v6267_v0 }
 0x374   : > { %v994_v22 = vrot.slane %v947_v13, %v6267_v0  ;;  %v1002_v23 = vrot.slane %v932_v11, %v6267_v0  ;;  %v1040_v24 = vsel %vm1031_vm2, %v809_v40, %v986_v14  ;;  %v897_v25 = vrot.slane %v869_v15, %v743_v30 }
 0x375   : > { %v950_v26 = vcombine.high %v946_v18, %v946_v18  ;;  %v998_v27 = vrot.slane %v949_v20, %v6267_v0  ;;  %v1006_v28 = vrot.slane %v946_v18, %v6267_v0  ;;  %v1010_v29 = vrot.slane %v948_v19, %v6267_v0 }
 0x376   : > { %v1041_v31 = vsel %vm1031_vm2, %v823_v43, %v990_v21  ;;  %v1042_v32 = vsel %vm1031_vm2, %v831_v52, %v994_v22  ;;  %v1044_v33 = vsel %vm1031_vm2, %v816_v42, %v1002_v23  ;;  %v1056_v34 = vpack.c.bf16 %v1040_v24, %v1040_v24 }
 0x377   : > { %v1014_v35 = vrot.slane %v950_v26, %v6267_v0  ;;  %v1043_v36 = vsel %vm1031_vm2, %v833_v56, %v998_v27  ;;  %v1045_v30 = vsel %vm1031_vm2, %v830_v50, %v1006_v28  ;;  %v1046_v37 = vsel %vm1031_vm2, %v832_v55, %v1010_v29 }
 0x378   : > { %v1057_v38 = vpack.c.bf16 %v1041_v31, %v1041_v31  ;;  %v1058_v39 = vpack.c.bf16 %v1042_v32, %v1042_v32  ;;  %v1059_v40 = vpack.c.bf16 %v1043_v36, %v1043_v36  ;;  %v1060_v41 = vpack.c.bf16 %v1044_v33, %v1044_v33  ;;  %1072 = vst [vmem:[#allocation2 + $0x8] sm:$0x1] %v1056_v34 }
 0x379   : > { %v1047_v43 = vsel %vm1031_vm2, %v834_v63, %v1014_v35  ;;  %v1061_v45 = vpack.c.bf16 %v1045_v30, %v1045_v30  ;;  %v1062_v48 = vpack.c.bf16 %v1046_v37, %v1046_v37  ;;  %v898_v49 = vcombine.high %v876_v9, %v876_v9 }
 0x37a   : > { %v1063_v42 = vpack.c.bf16 %v1047_v43, %v1047_v43  ;;  %1073 = vst [vmem:[#allocation2 + $0x9] sm:$0x1] %v1057_v38  ;;  %1074 = vst [vmem:[#allocation2 + $0xa] sm:$0x1] %v1058_v39  ;;  %v899_v51 = vcombine.high %v883_v16, %v883_v16  ;;  %v900_v52 = vcombine.high %v890_v17, %v890_v17 }
 0x37b   : > { %1075 = vst [vmem:[#allocation2 + $0xb] sm:$0x1] %v1059_v40  ;;  %1076 = vst [vmem:[#allocation2 + $0xc] sm:$0x1] %v1060_v41  ;;  %v901_v50 = vcombine.high %v897_v25, %v897_v25  ;;  %v954_v54 = vrot.slane %v876_v9, %v6267_v0  ;;  %v958_v55 = vrot.slane %v890_v17, %v6267_v0 }
 0x37c   : > { %1077 = vst [vmem:[#allocation2 + $0xd] sm:$0x1] %v1061_v45  ;;  %1078 = vst [vmem:[#allocation2 + $0xe] sm:$0x1] %v1062_v48  ;;  %v962_v56 = vrot.slane %v898_v49, %v6267_v0  ;;  %v970_v58 = vrot.slane %v883_v16, %v6267_v0  ;;  %v966_v61 = vrot.slane %v900_v52, %v6267_v0 }
 0x37d   : > { %1079 = vst [vmem:[#allocation2 + $0xf] sm:$0x1] %v1063_v42  ;;  %v974_v62 = vrot.slane %v897_v25, %v6267_v0  ;;  %v978_v63 = vrot.slane %v899_v51, %v6267_v0  ;;  %v982_v1 = vrot.slane %v901_v50, %v6267_v0  ;;  %v1032_v2 = vsel %vm1031_vm2, %v6253_v44, %v954_v54 }
 0x37e   : > { %v1033_v4 = vsel %vm1031_vm2, %v6257_v47, %v958_v55  ;;  %v1034_v5 = vsel %vm1031_vm2, %v782_v57, %v962_v56  ;;  %v1036_v6 = vsel %vm1031_vm2, %v6255_v46, %v970_v58  ;;  %v1035_v7 = vsel %vm1031_vm2, %v784_v60, %v966_v61 }
 0x37f   : > { %v1037_v0 = vsel %vm1031_vm2, %v6259_v53, %v974_v62  ;;  %v1038_v8 = vsel %vm1031_vm2, %v783_v59, %v978_v63  ;;  %v1039_v44 = vsel %vm1031_vm2, %v785_v3, %v982_v1  ;;  %v1048_v57 = vpack.c.bf16 %v1032_v2, %v1032_v2 }
 0x380   : > { %v1049_v9 = vpack.c.bf16 %v1033_v4, %v1033_v4  ;;  %v1050_v10 = vpack.c.bf16 %v1034_v5, %v1034_v5  ;;  %v1051_v11 = vpack.c.bf16 %v1035_v7, %v1035_v7  ;;  %v1052_v47 = vpack.c.bf16 %v1036_v6, %v1036_v6 }
 0x381   : > { %v1053_v12 = vpack.c.bf16 %v1037_v0, %v1037_v0  ;;  %v1054_v60 = vpack.c.bf16 %v1038_v8, %v1038_v8  ;;  %v1055_v13 = vpack.c.bf16 %v1039_v44, %v1039_v44  ;;  %1064 = vst [vmem:[#allocation2] sm:$0x1] %v1048_v57 }
 0x382   : > { %1065 = vst [vmem:[#allocation2 + $0x1] sm:$0x1] %v1049_v9  ;;  %1066 = vst [vmem:[#allocation2 + $0x2] sm:$0x1] %v1050_v10 }
 0x383   : > { %1067 = vst [vmem:[#allocation2 + $0x3] sm:$0x1] %v1051_v11  ;;  %1068 = vst [vmem:[#allocation2 + $0x4] sm:$0x1] %v1052_v47 }
 0x384   : > { %1069 = vst [vmem:[#allocation2 + $0x5] sm:$0x1] %v1053_v12  ;;  %1070 = vst [vmem:[#allocation2 + $0x6] sm:$0x1] %v1054_v60 }
 0x385   : > { %1071 = vst [vmem:[#allocation2 + $0x7] sm:$0x1] %v1055_v13 }
 0x386 PF: > { %v1087_v46 = vld [vmem:[%s6220_s19] sm:$0xff]  ;;  %v1088_v59 = vld [vmem:[%s6220_s19 + $0x8] sm:$0xff]  ;;  %v5951_v18 = vmov 0   ;;  %s5023_s21 = sshll.u32 %s6018_s9, 2  ;;  %v1089_v13 = vld [vmem:[%s6220_s19 + $0x10] sm:$0xff]  ;;  %p5478_p12 = scmp.ne.s32.totalorder %s6018_s9, 3 }
 0x387   : > { %v1091_v53 = vld [vmem:[%s6220_s19 + $0x20] sm:$0xff]  ;;  %v1092_v14 = vld [vmem:[%s6220_s19 + $0x28] sm:$0xff]  ;;  %1503 = vmatprep.mubr.bf16.mxu0 %v5951_v18  ;;  %1544 = vmatprep.mubr.bf16.mxu1 %v5951_v18  ;;  %s6362_s10 = scalar_lea.vmem [#allocation2], %s5023_s21 }
 0x388   : > { %v5025_v3 = vcombine.high %v1087_v46, %v1091_v53  ;;  %v5024_v15 = vcombine.low %v1087_v46, %v1091_v53  ;;  %v1095_v16 = vld [vmem:[%s6220_s19 + $0x40] sm:$0xff]  ;;  %v5027_v19 = vcombine.high %v1088_v59, %v1092_v14  ;;  %v5026_v20 = vcombine.low %v1088_v59, %v1092_v14  ;;  %v1096_v22 = vld [vmem:[%s6220_s19 + $0x48] sm:$0xff]  ;;  %v1093_v46 = vld [vmem:[%s6220_s19 + $0x30] sm:$0xff] }
 0x389   : > { %v1099_v17 = vld [vmem:[%s6220_s19 + $0x60] sm:$0xff]  ;;  %v1100_v23 = vld [vmem:[%s6220_s19 + $0x68] sm:$0xff]  ;;  %v1090_v53 = vld [vmem:[%s6220_s19 + $0x18] sm:$0xff] }
 0x38a   : > { %v5033_v21 = vcombine.high %v1095_v16, %v1099_v17  ;;  %v1103_v24 = vld [vmem:[%s6220_s19 + $0x80] sm:$0xff]  ;;  %1471 = vmatprep.subr.bf16.mxu0 %v5025_v3  ;;  %v5035_v25 = vcombine.high %v1096_v22, %v1100_v23  ;;  %v1104_v27 = vld [vmem:[%s6220_s19 + $0x88] sm:$0xff]  ;;  %1512 = vmatprep.subr.bf16.mxu1 %v5027_v19  ;;  %v5032_v29 = vcombine.low %v1095_v16, %v1099_v17  ;;  %v1094_v59 = vld [vmem:[%s6220_s19 + $0x38] sm:$0xff] }
 0x38b   : > { %v1107_v26 = vld [vmem:[%s6220_s19 + $0xa0] sm:$0xff]  ;;  %v1108_v28 = vld [vmem:[%s6220_s19 + $0xa8] sm:$0xff]  ;;  %1472 = vmatpush1.bf16.msra.mxu0 %v5024_v15  ;;  %1513 = vmatpush1.bf16.msra.mxu1 %v5026_v20  ;;  %v5034_v31 = vcombine.low %v1096_v22, %v1100_v23  ;;  %v5029_v15 = vcombine.high %v1089_v13, %v1093_v46  ;;  %v5031_v16 = vcombine.high %v1090_v53, %v1094_v59  ;;  %v1097_v17 = vld [vmem:[%s6220_s19 + $0x50] sm:$0xff] }
 0x38c   : > { %1473 = vmatprep.subr.bf16.mxu0 %v5033_v21  ;;  %v5041_v32 = vcombine.high %v1103_v24, %v1107_v26  ;;  %1514 = vmatprep.subr.bf16.mxu1 %v5035_v25  ;;  %v5043_v33 = vcombine.high %v1104_v27, %v1108_v28  ;;  %v1111_v34 = vld [vmem:[%s6220_s19 + $0xc0] sm:$0xff]  ;;  %v1112_v36 = vld [vmem:[%s6220_s19 + $0xc8] sm:$0xff]  ;;  %v5040_v37 = vcombine.low %v1103_v24, %v1107_v26  ;;  %v1101_v19 = vld [vmem:[%s6220_s19 + $0x70] sm:$0xff] }
 0x38d   : > { %v1115_v35 = vld [vmem:[%s6220_s19 + $0xe0] sm:$0xff]  ;;  %v1116_v30 = vld [vmem:[%s6220_s19 + $0xe8] sm:$0xff]  ;;  %v5042_v38 = vcombine.low %v1104_v27, %v1108_v28  ;;  %v1098_v20 = vld [vmem:[%s6220_s19 + $0x58] sm:$0xff]  ;;  %v5028_v23 = vcombine.low %v1089_v13, %v1093_v46  ;;  %v5030_v24 = vcombine.low %v1090_v53, %v1094_v59  ;;  %v5037_v25 = vcombine.high %v1097_v17, %v1101_v19 }
 0x38e   : > { %v5049_v39 = vcombine.high %v1111_v34, %v1115_v35  ;;  %v5051_v40 = vcombine.high %v1112_v36, %v1116_v30  ;;  %v1119_v41 = vld [vmem:[%s6220_s19 + $0x100] sm:$0xff]  ;;  %v1120_v45 = vld [vmem:[%s6220_s19 + $0x108] sm:$0xff]  ;;  %v5048_v49 = vcombine.low %v1111_v34, %v1115_v35  ;;  %v5050_v42 = vcombine.low %v1112_v36, %v1116_v30  ;;  %v1102_v21 = vld [vmem:[%s6220_s19 + $0x78] sm:$0xff] }
 0x38f   : > { %1474 = vmatpush1.bf16.msra.mxu0 %v5032_v29  ;;  %1515 = vmatpush1.bf16.msra.mxu1 %v5034_v31  ;;  %v1123_v43 = vld [vmem:[%s6220_s19 + $0x120] sm:$0xff]  ;;  %v1124_v48 = vld [vmem:[%s6220_s19 + $0x128] sm:$0xff]  ;;  %v6365_v22 = vld [vmem:[%s6362_s10] sm:$0x1]  ;;  %v5039_v26 = vcombine.high %v1098_v20, %v1102_v21 }
 0x390   : > { %1475 = vmatprep.subr.bf16.mxu0 %v5041_v32  ;;  %1516 = vmatprep.subr.bf16.mxu1 %v5043_v33  ;;  %v5057_v51 = vcombine.high %v1119_v41, %v1123_v43  ;;  %v5059_v52 = vcombine.high %v1120_v45, %v1124_v48  ;;  %v1127_v50 = vld [vmem:[%s6220_s19 + $0x140] sm:$0xff]  ;;  %v1128_v55 = vld [vmem:[%s6220_s19 + $0x148] sm:$0xff]  ;;  %v5056_v58 = vcombine.low %v1119_v41, %v1123_v43  ;;  %v1105_v27 = vld [vmem:[%s6220_s19 + $0x90] sm:$0xff] }
 0x391   : > { %v1131_v54 = vld [vmem:[%s6220_s19 + $0x160] sm:$0xff]  ;;  %v1132_v56 = vld [vmem:[%s6220_s19 + $0x168] sm:$0xff]  ;;  %v5058_v61 = vcombine.low %v1120_v45, %v1124_v48  ;;  %v1109_v28 = vld [vmem:[%s6220_s19 + $0xb0] sm:$0xff]  ;;  %v5036_v32 = vcombine.low %v1097_v17, %v1101_v19  ;;  %v5038_v33 = vcombine.low %v1098_v20, %v1102_v21 }
 0x392   : > { %v5065_v62 = vcombine.high %v1127_v50, %v1131_v54  ;;  %v5067_v63 = vcombine.high %v1128_v55, %v1132_v56  ;;  %v1135_v1 = vld [vmem:[%s6220_s19 + $0x180] sm:$0xff]  ;;  %v1136_v4 = vld [vmem:[%s6220_s19 + $0x188] sm:$0xff]  ;;  %v5064_v6 = vcombine.low %v1127_v50, %v1131_v54  ;;  %v5066_v7 = vcombine.low %v1128_v55, %v1132_v56  ;;  %v1106_v29 = vld [vmem:[%s6220_s19 + $0x98] sm:$0xff] }
 0x393   : > { %1476 = vmatpush1.bf16.msra.mxu0 %v5040_v37  ;;  %1517 = vmatpush1.bf16.msra.mxu1 %v5042_v38  ;;  %v1139_v2 = vld [vmem:[%s6220_s19 + $0x1a0] sm:$0xff]  ;;  %v1140_v5 = vld [vmem:[%s6220_s19 + $0x1a8] sm:$0xff]  ;;  %v1110_v31 = vld [vmem:[%s6220_s19 + $0xb8] sm:$0xff]  ;;  %v5045_v34 = vcombine.high %v1105_v27, %v1109_v28 }
 0x394   : > { %1477 = vmatprep.subr.bf16.mxu0 %v5049_v39  ;;  %1518 = vmatprep.subr.bf16.mxu1 %v5051_v40  ;;  %v5073_v0 = vcombine.high %v1135_v1, %v1139_v2  ;;  %v5075_v8 = vcombine.high %v1136_v4, %v1140_v5  ;;  %v1143_v44 = vld [vmem:[%s6220_s19 + $0x1c0] sm:$0xff]  ;;  %v1144_v9 = vld [vmem:[%s6220_s19 + $0x1c8] sm:$0xff]  ;;  %v5072_v11 = vcombine.low %v1135_v1, %v1139_v2  ;;  %v1113_v36 = vld [vmem:[%s6220_s19 + $0xd0] sm:$0xff] }
 0x395   : > { %v1147_v57 = vld [vmem:[%s6220_s19 + $0x1e0] sm:$0xff]  ;;  %v1148_v10 = vld [vmem:[%s6220_s19 + $0x1e8] sm:$0xff]  ;;  %v5074_v47 = vcombine.low %v1136_v4, %v1140_v5  ;;  %v5047_v35 = vcombine.high %v1106_v29, %v1110_v31  ;;  %v1117_v30 = vld [vmem:[%s6220_s19 + $0xf0] sm:$0xff]  ;;  %v5044_v39 = vcombine.low %v1105_v27, %v1109_v28  ;;  %v5046_v40 = vcombine.low %v1106_v29, %v1110_v31 }
 0x396   : > { %v5081_v12 = vcombine.high %v1143_v44, %v1147_v57  ;;  %v5083_v60 = vcombine.high %v1144_v9, %v1148_v10  ;;  %v5080_v3 = vcombine.low %v1143_v44, %v1147_v57  ;;  %v5082_v14 = vcombine.low %v1144_v9, %v1148_v10  ;;  %v1114_v37 = vld [vmem:[%s6220_s19 + $0xd8] sm:$0xff]  ;;  %v1121_v45 = vld [vmem:[%s6220_s19 + $0x110] sm:$0xff]  ;;  %v5090_v53 = vld [vmem:[%s6220_s19 + $0x200] sm:$0xff] }
 0x397   : > { %1478 = vmatpush1.bf16.msra.mxu0 %v5048_v49  ;;  %1519 = vmatpush1.bf16.msra.mxu1 %v5050_v42  ;;  %v1118_v38 = vld [vmem:[%s6220_s19 + $0xf8] sm:$0xff]  ;;  %v5053_v41 = vcombine.high %v1113_v36, %v1117_v30  ;;  %v1125_v48 = vld [vmem:[%s6220_s19 + $0x130] sm:$0xff]  ;;  %v5094_v59 = vld [vmem:[%s6220_s19 + $0x220] sm:$0xff] }
 0x398   : > { %1479 = vmatprep.subr.bf16.mxu0 %v5057_v51  ;;  %1520 = vmatprep.subr.bf16.mxu1 %v5059_v52  ;;  %v5055_v43 = vcombine.high %v1114_v37, %v1118_v38  ;;  %v1122_v49 = vld [vmem:[%s6220_s19 + $0x118] sm:$0xff]  ;;  %v5052_v51 = vcombine.low %v1113_v36, %v1117_v30  ;;  %v5054_v52 = vcombine.low %v1114_v37, %v1118_v38  ;;  %v1129_v55 = vld [vmem:[%s6220_s19 + $0x150] sm:$0xff]  ;;  %v5098_v20 = vld [vmem:[%s6220_s19 + $0x240] sm:$0xff] }
 0x399   : > { %v1126_v42 = vld [vmem:[%s6220_s19 + $0x138] sm:$0xff]  ;;  %v5061_v50 = vcombine.high %v1121_v45, %v1125_v48  ;;  %v1133_v56 = vld [vmem:[%s6220_s19 + $0x170] sm:$0xff]  ;;  %v5155_v17 = vcombine.high %v5090_v53, %v5094_v59  ;;  %v5102_v21 = vld [vmem:[%s6220_s19 + $0x260] sm:$0xff] }
 0x39a   : > { %v5063_v54 = vcombine.high %v1122_v49, %v1126_v42  ;;  %v5069_v1 = vcombine.high %v1129_v55, %v1133_v56  ;;  %v1137_v4 = vld [vmem:[%s6220_s19 + $0x190] sm:$0xff]  ;;  %v5163_v27 = vcombine.high %v5098_v20, %v5102_v21  ;;  %v5106_v29 = vld [vmem:[%s6220_s19 + $0x280] sm:$0xff] }
 0x39b   : > { %1480 = vmatpush1.bf16.msra.mxu0 %v5056_v58  ;;  %1521 = vmatpush1.bf16.msra.mxu1 %v5058_v61  ;;  %v1130_v58 = vld [vmem:[%s6220_s19 + $0x158] sm:$0xff]  ;;  %v1141_v5 = vld [vmem:[%s6220_s19 + $0x1b0] sm:$0xff]  ;;  %v5110_v31 = vld [vmem:[%s6220_s19 + $0x2a0] sm:$0xff] }
 0x39c   : > { %1481 = vmatprep.subr.bf16.mxu0 %v5065_v62  ;;  %1522 = vmatprep.subr.bf16.mxu1 %v5067_v63  ;;  %v1134_v61 = vld [vmem:[%s6220_s19 + $0x178] sm:$0xff]  ;;  %v5060_v62 = vcombine.low %v1121_v45, %v1125_v48  ;;  %v5062_v63 = vcombine.low %v1122_v49, %v1126_v42  ;;  %v5077_v44 = vcombine.high %v1137_v4, %v1141_v5  ;;  %v1145_v9 = vld [vmem:[%s6220_s19 + $0x1d0] sm:$0xff]  ;;  %v5114_v37 = vld [vmem:[%s6220_s19 + $0x2c0] sm:$0xff] }
 0x39d   : > { %v5071_v2 = vcombine.high %v1130_v58, %v1134_v61  ;;  %v1149_v10 = vld [vmem:[%s6220_s19 + $0x1f0] sm:$0xff]  ;;  %v5171_v36 = vcombine.high %v5106_v29, %v5110_v31  ;;  %v5118_v38 = vld [vmem:[%s6220_s19 + $0x2e0] sm:$0xff]  ;;  %v5123_v42 = vld [vmem:[%s6220_s19 + $0x308] sm:$0xff] }
 0x39e   : > { %v5085_v13 = vcombine.high %v1145_v9, %v1149_v10  ;;  %v5122_v48 = vld [vmem:[%s6220_s19 + $0x300] sm:$0xff] }
 0x39f   : > { %1482 = vmatpush1.bf16.msra.mxu0 %v5064_v6  ;;  %1523 = vmatpush1.bf16.msra.mxu1 %v5066_v7  ;;  %v1138_v6 = vld [vmem:[%s6220_s19 + $0x198] sm:$0xff]  ;;  %v5126_v49 = vld [vmem:[%s6220_s19 + $0x320] sm:$0xff] }
 0x3a0   : > { %1483 = vmatprep.subr.bf16.mxu0 %v5073_v0  ;;  %1524 = vmatprep.subr.bf16.mxu1 %v5075_v8  ;;  %v1142_v7 = vld [vmem:[%s6220_s19 + $0x1b8] sm:$0xff]  ;;  %v5068_v0 = vcombine.low %v1129_v55, %v1133_v56  ;;  %v5070_v8 = vcombine.low %v1130_v58, %v1134_v61  ;;  %v5130_v56 = vld [vmem:[%s6220_s19 + $0x340] sm:$0xff]  ;;  %v5131_v61 = vld [vmem:[%s6220_s19 + $0x348] sm:$0xff] }
 0x3a1   : > { %v5079_v57 = vcombine.high %v1138_v6, %v1142_v7  ;;  %v5134_v58 = vld [vmem:[%s6220_s19 + $0x360] sm:$0xff] }
 0x3a3   : > { %1484 = vmatpush1.bf16.msra.mxu0 %v5072_v11  ;;  %1525 = vmatpush1.bf16.msra.mxu1 %v5074_v47  ;;  %v1146_v11 = vld [vmem:[%s6220_s19 + $0x1d8] sm:$0xff] }
 0x3a4   : > { %1485 = vmatprep.subr.bf16.mxu0 %v5081_v12  ;;  %1526 = vmatprep.subr.bf16.mxu1 %v5083_v60  ;;  %v1150_v47 = vld [vmem:[%s6220_s19 + $0x1f8] sm:$0xff]  ;;  %v5076_v12 = vcombine.low %v1137_v4, %v1141_v5  ;;  %v5078_v60 = vcombine.low %v1138_v6, %v1142_v7  ;;  %v5138_v5 = vld [vmem:[%s6220_s19 + $0x380] sm:$0xff]  ;;  %v5139_v7 = vld [vmem:[%s6220_s19 + $0x388] sm:$0xff] }
 0x3a5   : > { %v5087_v46 = vcombine.high %v1146_v11, %v1150_v47  ;;  %v5142_v6 = vld [vmem:[%s6220_s19 + $0x3a0] sm:$0xff] }
 0x3a7   : > { %1486 = vmatpush1.bf16.msra.mxu0 %v5080_v3  ;;  %1527 = vmatpush1.bf16.msra.mxu1 %v5082_v14  ;;  %v5091_v3 = vld [vmem:[%s6220_s19 + $0x208] sm:$0xff] }
 0x3a8   : > { %1553 = vmatprep.subr.bf16.mxu0 %v5029_v15  ;;  %1594 = vmatprep.subr.bf16.mxu1 %v5031_v16  ;;  %v5095_v14 = vld [vmem:[%s6220_s19 + $0x228] sm:$0xff]  ;;  %v5084_v15 = vcombine.low %v1145_v9, %v1149_v10  ;;  %v5086_v16 = vcombine.low %v1146_v11, %v1150_v47  ;;  %v5146_v10 = vld [vmem:[%s6220_s19 + $0x3c0] sm:$0xff] }
 0x3a9   : > { %v5157_v19 = vcombine.high %v5091_v3, %v5095_v14  ;;  %v5150_v11 = vld [vmem:[%s6220_s19 + $0x3e0] sm:$0xff]  ;;  %v5147_v47 = vld [vmem:[%s6220_s19 + $0x3c8] sm:$0xff] }
 0x3aa   : > { %1504 = vmatmul.mubr.bf16.vlgmr.msra.gmra.mrb[0].mxu0 %v6365_v22  ;;  %1545 = vmatmul.mubr.bf16.vlgmr.msra.gmra.mrb[0].mxu1 %v6365_v22 }
 0x3ab   : > { %1554 = vmatpush1.bf16.msra.mxu0 %v5028_v23  ;;  %1595 = vmatpush1.bf16.msra.mxu1 %v5030_v24  ;;  %v5099_v23 = vld [vmem:[%s6220_s19 + $0x248] sm:$0xff] }
 0x3ac   : > { %1555 = vmatprep.subr.bf16.mxu0 %v5037_v25  ;;  %1596 = vmatprep.subr.bf16.mxu1 %v5039_v26  ;;  %v5103_v24 = vld [vmem:[%s6220_s19 + $0x268] sm:$0xff]  ;;  %v5154_v25 = vcombine.low %v5090_v53, %v5094_v59  ;;  %v5156_v26 = vcombine.low %v5091_v3, %v5095_v14  ;;  %v5092_v59 = vld [vmem:[%s6220_s19 + $0x210] sm:$0xff]  ;;  %v5093_v14 = vld [vmem:[%s6220_s19 + $0x218] sm:$0xff] }
 0x3ad   : > { %1585 = vmatprep.mubr.bf16.mxu0 %v5951_v18  ;;  %1626 = vmatprep.mubr.bf16.mxu1 %v5951_v18  ;;  %v5165_v28 = vcombine.high %v5099_v23, %v5103_v24  ;;  %v5096_v3 = vld [vmem:[%s6220_s19 + $0x230] sm:$0xff] }
 0x3af   : > { %1556 = vmatpush1.bf16.msra.mxu0 %v5036_v32  ;;  %1597 = vmatpush1.bf16.msra.mxu1 %v5038_v33  ;;  %v5107_v32 = vld [vmem:[%s6220_s19 + $0x288] sm:$0xff] }
 0x3b0   : > { %1557 = vmatprep.subr.bf16.mxu0 %v5045_v34  ;;  %1598 = vmatprep.subr.bf16.mxu1 %v5047_v35  ;;  %v5111_v33 = vld [vmem:[%s6220_s19 + $0x2a8] sm:$0xff]  ;;  %v5162_v34 = vcombine.low %v5098_v20, %v5102_v21  ;;  %v5164_v35 = vcombine.low %v5099_v23, %v5103_v24  ;;  %v5100_v21 = vld [vmem:[%s6220_s19 + $0x250] sm:$0xff]  ;;  %v5101_v24 = vld [vmem:[%s6220_s19 + $0x258] sm:$0xff] }
 0x3b1   : > { %v5173_v30 = vcombine.high %v5107_v32, %v5111_v33  ;;  %v5104_v23 = vld [vmem:[%s6220_s19 + $0x270] sm:$0xff] }
 0x3b3   : > { %1558 = vmatpush1.bf16.msra.mxu0 %v5044_v39  ;;  %1599 = vmatpush1.bf16.msra.mxu1 %v5046_v40  ;;  %v5115_v39 = vld [vmem:[%s6220_s19 + $0x2c8] sm:$0xff] }
 0x3b4   : > { %1559 = vmatprep.subr.bf16.mxu0 %v5053_v41  ;;  %1600 = vmatprep.subr.bf16.mxu1 %v5055_v43  ;;  %v5119_v40 = vld [vmem:[%s6220_s19 + $0x2e8] sm:$0xff]  ;;  %v5172_v41 = vcombine.low %v5107_v32, %v5111_v33  ;;  %v5179_v43 = vcombine.high %v5114_v37, %v5118_v38  ;;  %v5108_v32 = vld [vmem:[%s6220_s19 + $0x290] sm:$0xff] }
 0x3b5   : > { %v5181_v45 = vcombine.high %v5115_v39, %v5119_v40  ;;  %v5112_v33 = vld [vmem:[%s6220_s19 + $0x2b0] sm:$0xff] }
 0x3b7   : > { %1560 = vmatpush1.bf16.msra.mxu0 %v5052_v51  ;;  %1601 = vmatpush1.bf16.msra.mxu1 %v5054_v52  ;;  %v5127_v51 = vld [vmem:[%s6220_s19 + $0x328] sm:$0xff]  ;;  %v5178_v52 = vcombine.low %v5114_v37, %v5118_v38  ;;  %v5175_v37 = vcombine.high %v5108_v32, %v5112_v33 }
 0x3b8   : > { %1561 = vmatprep.subr.bf16.mxu0 %v5061_v50  ;;  %1602 = vmatprep.subr.bf16.mxu1 %v5063_v54  ;;  %v5180_v50 = vcombine.low %v5115_v39, %v5119_v40  ;;  %v5187_v54 = vcombine.high %v5122_v48, %v5126_v49  ;;  %v5189_v55 = vcombine.high %v5123_v42, %v5127_v51  ;;  %v5116_v39 = vld [vmem:[%s6220_s19 + $0x2d0] sm:$0xff] }
 0x3b9   : > { %v5120_v40 = vld [vmem:[%s6220_s19 + $0x2f0] sm:$0xff] }
 0x3bb   : > { %1562 = vmatpush1.bf16.msra.mxu0 %v5060_v62  ;;  %1603 = vmatpush1.bf16.msra.mxu1 %v5062_v63  ;;  %v5135_v62 = vld [vmem:[%s6220_s19 + $0x368] sm:$0xff]  ;;  %v5186_v63 = vcombine.low %v5122_v48, %v5126_v49  ;;  %v5183_v48 = vcombine.high %v5116_v39, %v5120_v40 }
 0x3bc   : > { %1563 = vmatprep.subr.bf16.mxu0 %v5069_v1  ;;  %1604 = vmatprep.subr.bf16.mxu1 %v5071_v2  ;;  %v5188_v1 = vcombine.low %v5123_v42, %v5127_v51  ;;  %v5195_v2 = vcombine.high %v5130_v56, %v5134_v58  ;;  %v5197_v4 = vcombine.high %v5131_v61, %v5135_v62  ;;  %v5124_v42 = vld [vmem:[%s6220_s19 + $0x310] sm:$0xff] }
 0x3bd   : > { %v5128_v51 = vld [vmem:[%s6220_s19 + $0x330] sm:$0xff] }
 0x3bf   : > { %1564 = vmatpush1.bf16.msra.mxu0 %v5068_v0  ;;  %1605 = vmatpush1.bf16.msra.mxu1 %v5070_v8  ;;  %v5143_v0 = vld [vmem:[%s6220_s19 + $0x3a8] sm:$0xff]  ;;  %v5194_v8 = vcombine.low %v5130_v56, %v5134_v58  ;;  %v5191_v56 = vcombine.high %v5124_v42, %v5128_v51 }
 0x3c0   : > { %1565 = vmatprep.subr.bf16.mxu0 %v5077_v44  ;;  %1606 = vmatprep.subr.bf16.mxu1 %v5079_v57  ;;  %v5196_v44 = vcombine.low %v5131_v61, %v5135_v62  ;;  %v5203_v57 = vcombine.high %v5138_v5, %v5142_v6  ;;  %v5205_v9 = vcombine.high %v5139_v7, %v5143_v0  ;;  %v5132_v61 = vld [vmem:[%s6220_s19 + $0x350] sm:$0xff] }
 0x3c1   : > { %v5136_v62 = vld [vmem:[%s6220_s19 + $0x370] sm:$0xff] }
 0x3c3   : > { %1566 = vmatpush1.bf16.msra.mxu0 %v5076_v12  ;;  %1607 = vmatpush1.bf16.msra.mxu1 %v5078_v60  ;;  %v5151_v12 = vld [vmem:[%s6220_s19 + $0x3e8] sm:$0xff]  ;;  %v5202_v60 = vcombine.low %v5138_v5, %v5142_v6  ;;  %v5199_v5 = vcombine.high %v5132_v61, %v5136_v62 }
 0x3c4   : > { %1567 = vmatprep.subr.bf16.mxu0 %v5085_v13  ;;  %1608 = vmatprep.subr.bf16.mxu1 %v5087_v46  ;;  %v5204_v13 = vcombine.low %v5139_v7, %v5143_v0  ;;  %v5211_v46 = vcombine.high %v5146_v10, %v5150_v11  ;;  %v5213_v53 = vcombine.high %v5147_v47, %v5151_v12  ;;  %v5140_v7 = vld [vmem:[%s6220_s19 + $0x390] sm:$0xff] }
 0x3c5   : > { %v5144_v0 = vld [vmem:[%s6220_s19 + $0x3b0] sm:$0xff] }
 0x3c7   : > { %1568 = vmatpush1.bf16.msra.mxu0 %v5084_v15  ;;  %1609 = vmatpush1.bf16.msra.mxu1 %v5086_v16  ;;  %v5097_v15 = vld [vmem:[%s6220_s19 + $0x238] sm:$0xff]  ;;  %v5210_v16 = vcombine.low %v5146_v10, %v5150_v11  ;;  %v5207_v10 = vcombine.high %v5140_v7, %v5144_v0 }
 0x3c8   : > { %2069 = vmatprep.subr.bf16.mxu0 %v5155_v17  ;;  %2110 = vmatprep.subr.bf16.mxu1 %v5157_v19  ;;  %v5212_v17 = vcombine.low %v5147_v47, %v5151_v12  ;;  %v5159_v19 = vcombine.high %v5092_v59, %v5096_v3  ;;  %v5161_v20 = vcombine.high %v5093_v14, %v5097_v15  ;;  %v5148_v47 = vld [vmem:[%s6220_s19 + $0x3d0] sm:$0xff] }
 0x3c9   : > { %v5152_v12 = vld [vmem:[%s6220_s19 + $0x3f0] sm:$0xff] }
 0x3ca   : > { %1586 = vmatmul.mubr.bf16.vlgmr.msra.gmra.mrb[4].mxu0 %v6365_v22  ;;  %1627 = vmatmul.mubr.bf16.vlgmr.msra.gmra.mrb[4].mxu1 %v6365_v22  ;;  %v5170_v22 = vcombine.low %v5106_v29, %v5110_v31  ;;  %v5167_v29 = vcombine.high %v5100_v21, %v5104_v23 }
 0x3cb   : > { %2070 = vmatpush1.bf16.msra.mxu0 %v5154_v25  ;;  %2111 = vmatpush1.bf16.msra.mxu1 %v5156_v26  ;;  %v5105_v25 = vld [vmem:[%s6220_s19 + $0x278] sm:$0xff] }
 0x3cc   : > { %2071 = vmatprep.subr.bf16.mxu0 %v5163_v27  ;;  %2112 = vmatprep.subr.bf16.mxu1 %v5165_v28  ;;  %v6440_v26 = vld [vmem:[%s6362_s10 + $0x1] sm:$0x1]  ;;  %v5158_v27 = vcombine.low %v5092_v59, %v5096_v3  ;;  %v5160_v28 = vcombine.low %v5093_v14, %v5097_v15  ;;  %v5169_v31 = vcombine.high %v5101_v24, %v5105_v25  ;;  %v5220_v14 = vld [vmem:[%s6220_s19 + $0x400] sm:$0xff] }
 0x3cd   : > { %2101 = vmatprep.mubr.bf16.mxu0 %v5951_v18  ;;  %2142 = vmatprep.mubr.bf16.mxu1 %v5951_v18  ;;  %v5215_v59 = vcombine.high %v5148_v47, %v5152_v12  ;;  %v5224_v15 = vld [vmem:[%s6220_s19 + $0x420] sm:$0xff] }
 0x3cf   : > { %2072 = vmatpush1.bf16.msra.mxu0 %v5162_v34  ;;  %2113 = vmatpush1.bf16.msra.mxu1 %v5164_v35  ;;  %v5109_v34 = vld [vmem:[%s6220_s19 + $0x298] sm:$0xff] }
 0x3d0   : > { %2073 = vmatprep.subr.bf16.mxu0 %v5171_v36  ;;  %2114 = vmatprep.subr.bf16.mxu1 %v5173_v30  ;;  %v5113_v35 = vld [vmem:[%s6220_s19 + $0x2b8] sm:$0xff]  ;;  %v5166_v36 = vcombine.low %v5100_v21, %v5104_v23  ;;  %v5168_v30 = vcombine.low %v5101_v24, %v5105_v25  ;;  %v5285_v21 = vcombine.high %v5220_v14, %v5224_v15  ;;  %v5228_v24 = vld [vmem:[%s6220_s19 + $0x440] sm:$0xff] }
 0x3d1   : > { %v5177_v38 = vcombine.high %v5109_v34, %v5113_v35  ;;  %v5232_v25 = vld [vmem:[%s6220_s19 + $0x460] sm:$0xff] }
 0x3d3   : > { %2074 = vmatpush1.bf16.msra.mxu0 %v5170_v22  ;;  %2115 = vmatpush1.bf16.msra.mxu1 %v5172_v41  ;;  %v5117_v22 = vld [vmem:[%s6220_s19 + $0x2d8] sm:$0xff] }
 0x3d4   : > { %2075 = vmatprep.subr.bf16.mxu0 %v5179_v43  ;;  %2116 = vmatprep.subr.bf16.mxu1 %v5181_v45  ;;  %v5121_v41 = vld [vmem:[%s6220_s19 + $0x2f8] sm:$0xff]  ;;  %v5174_v43 = vcombine.low %v5108_v32, %v5112_v33  ;;  %v5176_v45 = vcombine.low %v5109_v34, %v5113_v35  ;;  %v5293_v32 = vcombine.high %v5228_v24, %v5232_v25  ;;  %v5236_v34 = vld [vmem:[%s6220_s19 + $0x480] sm:$0xff] }
 0x3d5   : > { %v5185_v49 = vcombine.high %v5117_v22, %v5121_v41  ;;  %v5240_v35 = vld [vmem:[%s6220_s19 + $0x4a0] sm:$0xff] }
 0x3d7   : > { %2076 = vmatpush1.bf16.msra.mxu0 %v5178_v52  ;;  %2117 = vmatpush1.bf16.msra.mxu1 %v5180_v50  ;;  %v5125_v52 = vld [vmem:[%s6220_s19 + $0x318] sm:$0xff] }
 0x3d8   : > { %2077 = vmatprep.subr.bf16.mxu0 %v5187_v54  ;;  %2118 = vmatprep.subr.bf16.mxu1 %v5189_v55  ;;  %v5129_v50 = vld [vmem:[%s6220_s19 + $0x338] sm:$0xff]  ;;  %v5182_v54 = vcombine.low %v5116_v39, %v5120_v40  ;;  %v5184_v55 = vcombine.low %v5117_v22, %v5121_v41  ;;  %v5301_v39 = vcombine.high %v5236_v34, %v5240_v35  ;;  %v5244_v22 = vld [vmem:[%s6220_s19 + $0x4c0] sm:$0xff] }
 0x3d9   : > { %v5193_v58 = vcombine.high %v5125_v52, %v5129_v50  ;;  %v5248_v41 = vld [vmem:[%s6220_s19 + $0x4e0] sm:$0xff] }
 0x3db   : > { %2078 = vmatpush1.bf16.msra.mxu0 %v5186_v63  ;;  %2119 = vmatpush1.bf16.msra.mxu1 %v5188_v1  ;;  %v5133_v63 = vld [vmem:[%s6220_s19 + $0x358] sm:$0xff] }
 0x3dc   : > { %2079 = vmatprep.subr.bf16.mxu0 %v5195_v2  ;;  %2120 = vmatprep.subr.bf16.mxu1 %v5197_v4  ;;  %v5137_v1 = vld [vmem:[%s6220_s19 + $0x378] sm:$0xff]  ;;  %v5190_v2 = vcombine.low %v5124_v42, %v5128_v51  ;;  %v5192_v4 = vcombine.low %v5125_v52, %v5129_v50  ;;  %v5252_v51 = vld [vmem:[%s6220_s19 + $0x500] sm:$0xff]  ;;  %v5253_v50 = vld [vmem:[%s6220_s19 + $0x508] sm:$0xff] }
 0x3dd   : > { %v5201_v6 = vcombine.high %v5133_v63, %v5137_v1  ;;  %v5256_v52 = vld [vmem:[%s6220_s19 + $0x520] sm:$0xff] }
 0x3df   : > { %2080 = vmatpush1.bf16.msra.mxu0 %v5194_v8  ;;  %2121 = vmatpush1.bf16.msra.mxu1 %v5196_v44  ;;  %v5141_v8 = vld [vmem:[%s6220_s19 + $0x398] sm:$0xff] }
 0x3e0   : > { %2081 = vmatprep.subr.bf16.mxu0 %v5203_v57  ;;  %2122 = vmatprep.subr.bf16.mxu1 %v5205_v9  ;;  %v5145_v44 = vld [vmem:[%s6220_s19 + $0x3b8] sm:$0xff]  ;;  %v5198_v57 = vcombine.low %v5132_v61, %v5136_v62  ;;  %v5200_v9 = vcombine.low %v5133_v63, %v5137_v1  ;;  %v5260_v62 = vld [vmem:[%s6220_s19 + $0x540] sm:$0xff]  ;;  %v5261_v1 = vld [vmem:[%s6220_s19 + $0x548] sm:$0xff] }
 0x3e1   : > { %v5209_v11 = vcombine.high %v5141_v8, %v5145_v44  ;;  %v5264_v63 = vld [vmem:[%s6220_s19 + $0x560] sm:$0xff] }
 0x3e3   : > { %2082 = vmatpush1.bf16.msra.mxu0 %v5202_v60  ;;  %2123 = vmatpush1.bf16.msra.mxu1 %v5204_v13  ;;  %v5149_v60 = vld [vmem:[%s6220_s19 + $0x3d8] sm:$0xff] }
 0x3e4   : > { %2083 = vmatprep.subr.bf16.mxu0 %v5211_v46  ;;  %2124 = vmatprep.subr.bf16.mxu1 %v5213_v53  ;;  %v5153_v13 = vld [vmem:[%s6220_s19 + $0x3f8] sm:$0xff]  ;;  %v5206_v46 = vcombine.low %v5140_v7, %v5144_v0  ;;  %v5208_v53 = vcombine.low %v5141_v8, %v5145_v44  ;;  %v5268_v0 = vld [vmem:[%s6220_s19 + $0x580] sm:$0xff]  ;;  %v5269_v44 = vld [vmem:[%s6220_s19 + $0x588] sm:$0xff] }
 0x3e5   : > { %v5217_v3 = vcombine.high %v5149_v60, %v5153_v13  ;;  %v5272_v8 = vld [vmem:[%s6220_s19 + $0x5a0] sm:$0xff] }
 0x3e7   : > { %2084 = vmatpush1.bf16.msra.mxu0 %v5210_v16  ;;  %2125 = vmatpush1.bf16.msra.mxu1 %v5212_v17  ;;  %v5221_v16 = vld [vmem:[%s6220_s19 + $0x408] sm:$0xff] }
 0x3e8   : > { %2151 = vmatprep.subr.bf16.mxu0 %v5159_v19  ;;  %2192 = vmatprep.subr.bf16.mxu1 %v5161_v20  ;;  %v5225_v17 = vld [vmem:[%s6220_s19 + $0x428] sm:$0xff]  ;;  %v5214_v19 = vcombine.low %v5148_v47, %v5152_v12  ;;  %v5216_v20 = vcombine.low %v5149_v60, %v5153_v13  ;;  %v5276_v12 = vld [vmem:[%s6220_s19 + $0x5c0] sm:$0xff] }
 0x3e9   : > { %v5287_v23 = vcombine.high %v5221_v16, %v5225_v17  ;;  %v5280_v60 = vld [vmem:[%s6220_s19 + $0x5e0] sm:$0xff]  ;;  %v5277_v13 = vld [vmem:[%s6220_s19 + $0x5c8] sm:$0xff] }
 0x3ea   : > { %2102 = vmatmul.mubr.bf16.vlgmr.msra.gmra.mrb[8].mxu0 %v6440_v26  ;;  %2143 = vmatmul.mubr.bf16.vlgmr.msra.gmra.mrb[8].mxu1 %v6440_v26 }
 0x3eb   : > { %2152 = vmatpush1.bf16.msra.mxu0 %v5158_v27  ;;  %2193 = vmatpush1.bf16.msra.mxu1 %v5160_v28  ;;  %v5229_v27 = vld [vmem:[%s6220_s19 + $0x448] sm:$0xff] }
 0x3ec   : > { %2153 = vmatprep.subr.bf16.mxu0 %v5167_v29  ;;  %2194 = vmatprep.subr.bf16.mxu1 %v5169_v31  ;;  %v5233_v28 = vld [vmem:[%s6220_s19 + $0x468] sm:$0xff]  ;;  %v5284_v29 = vcombine.low %v5220_v14, %v5224_v15  ;;  %v5286_v31 = vcombine.low %v5221_v16, %v5225_v17  ;;  %v5222_v15 = vld [vmem:[%s6220_s19 + $0x410] sm:$0xff]  ;;  %v5223_v17 = vld [vmem:[%s6220_s19 + $0x418] sm:$0xff] }
 0x3ed   : > { %2183 = vmatprep.mubr.bf16.mxu0 %v5951_v18  ;;  %2224 = vmatprep.mubr.bf16.mxu1 %v5951_v18  ;;  %v5295_v33 = vcombine.high %v5229_v27, %v5233_v28  ;;  %v5226_v16 = vld [vmem:[%s6220_s19 + $0x430] sm:$0xff] }
 0x3ef   : > { %2154 = vmatpush1.bf16.msra.mxu0 %v5166_v36  ;;  %2195 = vmatpush1.bf16.msra.mxu1 %v5168_v30  ;;  %v5237_v36 = vld [vmem:[%s6220_s19 + $0x488] sm:$0xff] }
 0x3f0   : > { %2155 = vmatprep.subr.bf16.mxu0 %v5175_v37  ;;  %2196 = vmatprep.subr.bf16.mxu1 %v5177_v38  ;;  %v5241_v30 = vld [vmem:[%s6220_s19 + $0x4a8] sm:$0xff]  ;;  %v5292_v37 = vcombine.low %v5228_v24, %v5232_v25  ;;  %v5294_v38 = vcombine.low %v5229_v27, %v5233_v28  ;;  %v5230_v25 = vld [vmem:[%s6220_s19 + $0x450] sm:$0xff]  ;;  %v5231_v28 = vld [vmem:[%s6220_s19 + $0x458] sm:$0xff] }
 0x3f1   : > { %v5303_v40 = vcombine.high %v5237_v36, %v5241_v30  ;;  %v5234_v27 = vld [vmem:[%s6220_s19 + $0x470] sm:$0xff] }
 0x3f3   : > { %2156 = vmatpush1.bf16.msra.mxu0 %v5174_v43  ;;  %2197 = vmatpush1.bf16.msra.mxu1 %v5176_v45  ;;  %v5245_v43 = vld [vmem:[%s6220_s19 + $0x4c8] sm:$0xff] }
 0x3f4   : > { %2157 = vmatprep.subr.bf16.mxu0 %v5183_v48  ;;  %2198 = vmatprep.subr.bf16.mxu1 %v5185_v49  ;;  %v5249_v45 = vld [vmem:[%s6220_s19 + $0x4e8] sm:$0xff]  ;;  %v5302_v48 = vcombine.low %v5237_v36, %v5241_v30  ;;  %v5309_v49 = vcombine.high %v5244_v22, %v5248_v41  ;;  %v5238_v36 = vld [vmem:[%s6220_s19 + $0x490] sm:$0xff] }
 0x3f5   : > { %v5311_v42 = vcombine.high %v5245_v43, %v5249_v45  ;;  %v5242_v30 = vld [vmem:[%s6220_s19 + $0x4b0] sm:$0xff] }
 0x3f7   : > { %2158 = vmatpush1.bf16.msra.mxu0 %v5182_v54  ;;  %2199 = vmatpush1.bf16.msra.mxu1 %v5184_v55  ;;  %v5257_v54 = vld [vmem:[%s6220_s19 + $0x528] sm:$0xff]  ;;  %v5308_v55 = vcombine.low %v5244_v22, %v5248_v41  ;;  %v5305_v22 = vcombine.high %v5238_v36, %v5242_v30 }
 0x3f8   : > { %2159 = vmatprep.subr.bf16.mxu0 %v5191_v56  ;;  %2200 = vmatprep.subr.bf16.mxu1 %v5193_v58  ;;  %v5310_v56 = vcombine.low %v5245_v43, %v5249_v45  ;;  %v5317_v58 = vcombine.high %v5252_v51, %v5256_v52  ;;  %v5319_v61 = vcombine.high %v5253_v50, %v5257_v54  ;;  %v5246_v43 = vld [vmem:[%s6220_s19 + $0x4d0] sm:$0xff] }
 0x3f9   : > { %v5250_v45 = vld [vmem:[%s6220_s19 + $0x4f0] sm:$0xff] }
 0x3fb   : > { %2160 = vmatpush1.bf16.msra.mxu0 %v5190_v2  ;;  %2201 = vmatpush1.bf16.msra.mxu1 %v5192_v4  ;;  %v5265_v2 = vld [vmem:[%s6220_s19 + $0x568] sm:$0xff]  ;;  %v5316_v4 = vcombine.low %v5252_v51, %v5256_v52  ;;  %v5313_v51 = vcombine.high %v5246_v43, %v5250_v45 }
 0x3fc   : > { %2161 = vmatprep.subr.bf16.mxu0 %v5199_v5  ;;  %2202 = vmatprep.subr.bf16.mxu1 %v5201_v6  ;;  %v5318_v5 = vcombine.low %v5253_v50, %v5257_v54  ;;  %v5325_v6 = vcombine.high %v5260_v62, %v5264_v63  ;;  %v5327_v7 = vcombine.high %v5261_v1, %v5265_v2  ;;  %v5254_v50 = vld [vmem:[%s6220_s19 + $0x510] sm:$0xff] }
 0x3fd   : > { %v5258_v54 = vld [vmem:[%s6220_s19 + $0x530] sm:$0xff] }
 0x3ff   : > { %2162 = vmatpush1.bf16.msra.mxu0 %v5198_v57  ;;  %2203 = vmatpush1.bf16.msra.mxu1 %v5200_v9  ;;  %v5273_v57 = vld [vmem:[%s6220_s19 + $0x5a8] sm:$0xff]  ;;  %v5324_v9 = vcombine.low %v5260_v62, %v5264_v63  ;;  %v5321_v62 = vcombine.high %v5254_v50, %v5258_v54 }
 0x400   : > { %2163 = vmatprep.subr.bf16.mxu0 %v5207_v10  ;;  %2204 = vmatprep.subr.bf16.mxu1 %v5209_v11  ;;  %v5326_v10 = vcombine.low %v5261_v1, %v5265_v2  ;;  %v5333_v11 = vcombine.high %v5268_v0, %v5272_v8  ;;  %v5335_v47 = vcombine.high %v5269_v44, %v5273_v57  ;;  %v5262_v1 = vld [vmem:[%s6220_s19 + $0x550] sm:$0xff] }
 0x401   : > { %v5266_v2 = vld [vmem:[%s6220_s19 + $0x570] sm:$0xff] }
 0x403   : > { %2164 = vmatpush1.bf16.msra.mxu0 %v5206_v46  ;;  %2205 = vmatpush1.bf16.msra.mxu1 %v5208_v53  ;;  %v5281_v46 = vld [vmem:[%s6220_s19 + $0x5e8] sm:$0xff]  ;;  %v5332_v53 = vcombine.low %v5268_v0, %v5272_v8  ;;  %v5329_v0 = vcombine.high %v5262_v1, %v5266_v2 }
 0x404   : > { %2165 = vmatprep.subr.bf16.mxu0 %v5215_v59  ;;  %2206 = vmatprep.subr.bf16.mxu1 %v5217_v3  ;;  %v5334_v59 = vcombine.low %v5269_v44, %v5273_v57  ;;  %v5341_v3 = vcombine.high %v5276_v12, %v5280_v60  ;;  %v5343_v14 = vcombine.high %v5277_v13, %v5281_v46  ;;  %v5270_v44 = vld [vmem:[%s6220_s19 + $0x590] sm:$0xff] }
 0x405   : > { %v5274_v57 = vld [vmem:[%s6220_s19 + $0x5b0] sm:$0xff] }
 0x407   : > { %2166 = vmatpush1.bf16.msra.mxu0 %v5214_v19  ;;  %2207 = vmatpush1.bf16.msra.mxu1 %v5216_v20  ;;  %v5227_v19 = vld [vmem:[%s6220_s19 + $0x438] sm:$0xff]  ;;  %v5340_v20 = vcombine.low %v5276_v12, %v5280_v60  ;;  %v5337_v12 = vcombine.high %v5270_v44, %v5274_v57 }
 0x408   : > { %2667 = vmatprep.subr.bf16.mxu0 %v5285_v21  ;;  %2708 = vmatprep.subr.bf16.mxu1 %v5287_v23  ;;  %v5342_v21 = vcombine.low %v5277_v13, %v5281_v46  ;;  %v5289_v23 = vcombine.high %v5222_v15, %v5226_v16  ;;  %v5291_v24 = vcombine.high %v5223_v17, %v5227_v19  ;;  %v5278_v13 = vld [vmem:[%s6220_s19 + $0x5d0] sm:$0xff] }
 0x409   : > { %v5282_v46 = vld [vmem:[%s6220_s19 + $0x5f0] sm:$0xff] }
 0x40a   : > { %2184 = vmatmul.mubr.bf16.vlgmr.msra.gmra.mrb[12].mxu0 %v6440_v26  ;;  %2225 = vmatmul.mubr.bf16.vlgmr.msra.gmra.mrb[12].mxu1 %v6440_v26  ;;  %v5300_v26 = vcombine.low %v5236_v34, %v5240_v35  ;;  %v5297_v34 = vcombine.high %v5230_v25, %v5234_v27 }
 0x40b   : > { %2668 = vmatpush1.bf16.msra.mxu0 %v5284_v29  ;;  %2709 = vmatpush1.bf16.msra.mxu1 %v5286_v31  ;;  %v5235_v29 = vld [vmem:[%s6220_s19 + $0x478] sm:$0xff] }
 0x40c   : > { %2669 = vmatprep.subr.bf16.mxu0 %v5293_v32  ;;  %2710 = vmatprep.subr.bf16.mxu1 %v5295_v33  ;;  %v6515_v31 = vld [vmem:[%s6362_s10 + $0x2] sm:$0x1]  ;;  %v5288_v32 = vcombine.low %v5222_v15, %v5226_v16  ;;  %v5290_v33 = vcombine.low %v5223_v17, %v5227_v19  ;;  %v5299_v35 = vcombine.high %v5231_v28, %v5235_v29  ;;  %v5350_v17 = vld [vmem:[%s6220_s19 + $0x600] sm:$0xff] }
 0x40d   : > { %2699 = vmatprep.mubr.bf16.mxu0 %v5951_v18  ;;  %2740 = vmatprep.mubr.bf16.mxu1 %v5951_v18  ;;  %v5345_v15 = vcombine.high %v5278_v13, %v5282_v46  ;;  %v5354_v19 = vld [vmem:[%s6220_s19 + $0x620] sm:$0xff] }
 0x40f   : > { %2670 = vmatpush1.bf16.msra.mxu0 %v5292_v37  ;;  %2711 = vmatpush1.bf16.msra.mxu1 %v5294_v38  ;;  %v5239_v37 = vld [vmem:[%s6220_s19 + $0x498] sm:$0xff] }
 0x410   : > { %2671 = vmatprep.subr.bf16.mxu0 %v5301_v39  ;;  %2712 = vmatprep.subr.bf16.mxu1 %v5303_v40  ;;  %v5243_v38 = vld [vmem:[%s6220_s19 + $0x4b8] sm:$0xff]  ;;  %v5296_v39 = vcombine.low %v5230_v25, %v5234_v27  ;;  %v5298_v40 = vcombine.low %v5231_v28, %v5235_v29  ;;  %v5415_v25 = vcombine.high %v5350_v17, %v5354_v19  ;;  %v5358_v28 = vld [vmem:[%s6220_s19 + $0x640] sm:$0xff] }
 0x411   : > { %v5307_v41 = vcombine.high %v5239_v37, %v5243_v38  ;;  %v5362_v29 = vld [vmem:[%s6220_s19 + $0x660] sm:$0xff] }
 0x413   : > { %2672 = vmatpush1.bf16.msra.mxu0 %v5300_v26  ;;  %2713 = vmatpush1.bf16.msra.mxu1 %v5302_v48  ;;  %v5247_v26 = vld [vmem:[%s6220_s19 + $0x4d8] sm:$0xff] }
 0x414   : > { %2673 = vmatprep.subr.bf16.mxu0 %v5309_v49  ;;  %2714 = vmatprep.subr.bf16.mxu1 %v5311_v42  ;;  %v5251_v48 = vld [vmem:[%s6220_s19 + $0x4f8] sm:$0xff]  ;;  %v5304_v49 = vcombine.low %v5238_v36, %v5242_v30  ;;  %v5306_v42 = vcombine.low %v5239_v37, %v5243_v38  ;;  %v5423_v36 = vcombine.high %v5358_v28, %v5362_v29  ;;  %v5366_v37 = vld [vmem:[%s6220_s19 + $0x680] sm:$0xff] }
 0x415   : > { %v5315_v52 = vcombine.high %v5247_v26, %v5251_v48  ;;  %v5370_v38 = vld [vmem:[%s6220_s19 + $0x6a0] sm:$0xff] }
 0x417   : > { %2674 = vmatpush1.bf16.msra.mxu0 %v5308_v55  ;;  %2715 = vmatpush1.bf16.msra.mxu1 %v5310_v56  ;;  %v5255_v55 = vld [vmem:[%s6220_s19 + $0x518] sm:$0xff] }
 0x418   : > { %2675 = vmatprep.subr.bf16.mxu0 %v5317_v58  ;;  %2716 = vmatprep.subr.bf16.mxu1 %v5319_v61  ;;  %v5259_v56 = vld [vmem:[%s6220_s19 + $0x538] sm:$0xff]  ;;  %v5312_v58 = vcombine.low %v5246_v43, %v5250_v45  ;;  %v5314_v61 = vcombine.low %v5247_v26, %v5251_v48  ;;  %v5431_v43 = vcombine.high %v5366_v37, %v5370_v38  ;;  %v5374_v26 = vld [vmem:[%s6220_s19 + $0x6c0] sm:$0xff] }
 0x419   : > { %v5323_v63 = vcombine.high %v5255_v55, %v5259_v56  ;;  %v5378_v48 = vld [vmem:[%s6220_s19 + $0x6e0] sm:$0xff] }
 0x41b   : > { %2676 = vmatpush1.bf16.msra.mxu0 %v5316_v4  ;;  %2717 = vmatpush1.bf16.msra.mxu1 %v5318_v5  ;;  %v5263_v4 = vld [vmem:[%s6220_s19 + $0x558] sm:$0xff] }
 0x41c   : > { %2677 = vmatprep.subr.bf16.mxu0 %v5325_v6  ;;  %2718 = vmatprep.subr.bf16.mxu1 %v5327_v7  ;;  %v5267_v5 = vld [vmem:[%s6220_s19 + $0x578] sm:$0xff]  ;;  %v5320_v6 = vcombine.low %v5254_v50, %v5258_v54  ;;  %v5322_v7 = vcombine.low %v5255_v55, %v5259_v56  ;;  %v5382_v54 = vld [vmem:[%s6220_s19 + $0x700] sm:$0xff]  ;;  %v5383_v56 = vld [vmem:[%s6220_s19 + $0x708] sm:$0xff] }
 0x41d   : > { %v5331_v8 = vcombine.high %v5263_v4, %v5267_v5  ;;  %v5386_v55 = vld [vmem:[%s6220_s19 + $0x720] sm:$0xff] }
 0x41f   : > { %2678 = vmatpush1.bf16.msra.mxu0 %v5324_v9  ;;  %2719 = vmatpush1.bf16.msra.mxu1 %v5326_v10  ;;  %v5271_v9 = vld [vmem:[%s6220_s19 + $0x598] sm:$0xff] }
 0x420   : > { %2679 = vmatprep.subr.bf16.mxu0 %v5333_v11  ;;  %2720 = vmatprep.subr.bf16.mxu1 %v5335_v47  ;;  %v5275_v10 = vld [vmem:[%s6220_s19 + $0x5b8] sm:$0xff]  ;;  %v5328_v11 = vcombine.low %v5262_v1, %v5266_v2  ;;  %v5330_v47 = vcombine.low %v5263_v4, %v5267_v5  ;;  %v5390_v2 = vld [vmem:[%s6220_s19 + $0x740] sm:$0xff]  ;;  %v5391_v5 = vld [vmem:[%s6220_s19 + $0x748] sm:$0xff] }
 0x421   : > { %v5339_v60 = vcombine.high %v5271_v9, %v5275_v10  ;;  %v5394_v4 = vld [vmem:[%s6220_s19 + $0x760] sm:$0xff] }
 0x423   : > { %2680 = vmatpush1.bf16.msra.mxu0 %v5332_v53  ;;  %2721 = vmatpush1.bf16.msra.mxu1 %v5334_v59  ;;  %v5279_v53 = vld [vmem:[%s6220_s19 + $0x5d8] sm:$0xff] }
 0x424   : > { %2681 = vmatprep.subr.bf16.mxu0 %v5341_v3  ;;  %2722 = vmatprep.subr.bf16.mxu1 %v5343_v14  ;;  %v5283_v59 = vld [vmem:[%s6220_s19 + $0x5f8] sm:$0xff]  ;;  %v5336_v3 = vcombine.low %v5270_v44, %v5274_v57  ;;  %v5338_v14 = vcombine.low %v5271_v9, %v5275_v10  ;;  %v5398_v57 = vld [vmem:[%s6220_s19 + $0x780] sm:$0xff]  ;;  %v5399_v10 = vld [vmem:[%s6220_s19 + $0x788] sm:$0xff] }
 0x425   : > { %v5347_v16 = vcombine.high %v5279_v53, %v5283_v59  ;;  %v5402_v9 = vld [vmem:[%s6220_s19 + $0x7a0] sm:$0xff] }
 0x427   : > { %2682 = vmatpush1.bf16.msra.mxu0 %v5340_v20  ;;  %2723 = vmatpush1.bf16.msra.mxu1 %v5342_v21  ;;  %v5351_v20 = vld [vmem:[%s6220_s19 + $0x608] sm:$0xff] }
 0x428   : > { %2749 = vmatprep.subr.bf16.mxu0 %v5289_v23  ;;  %2790 = vmatprep.subr.bf16.mxu1 %v5291_v24  ;;  %v5355_v21 = vld [vmem:[%s6220_s19 + $0x628] sm:$0xff]  ;;  %v5344_v23 = vcombine.low %v5278_v13, %v5282_v46  ;;  %v5346_v24 = vcombine.low %v5279_v53, %v5283_v59  ;;  %v5406_v46 = vld [vmem:[%s6220_s19 + $0x7c0] sm:$0xff] }
 0x429   : > { %v5417_v27 = vcombine.high %v5351_v20, %v5355_v21  ;;  %v5410_v53 = vld [vmem:[%s6220_s19 + $0x7e0] sm:$0xff]  ;;  %v5407_v59 = vld [vmem:[%s6220_s19 + $0x7c8] sm:$0xff] }
 0x42a   : > { %2700 = vmatmul.mubr.bf16.vlgmr.msra.gmra.mrb[16].mxu0 %v6515_v31  ;;  %2741 = vmatmul.mubr.bf16.vlgmr.msra.gmra.mrb[16].mxu1 %v6515_v31 }
 0x42b   : > { %2750 = vmatpush1.bf16.msra.mxu0 %v5288_v32  ;;  %2791 = vmatpush1.bf16.msra.mxu1 %v5290_v33  ;;  %v5359_v32 = vld [vmem:[%s6220_s19 + $0x648] sm:$0xff] }
 0x42c   : > { %2751 = vmatprep.subr.bf16.mxu0 %v5297_v34  ;;  %2792 = vmatprep.subr.bf16.mxu1 %v5299_v35  ;;  %v5363_v33 = vld [vmem:[%s6220_s19 + $0x668] sm:$0xff]  ;;  %v5414_v34 = vcombine.low %v5350_v17, %v5354_v19  ;;  %v5416_v35 = vcombine.low %v5351_v20, %v5355_v21  ;;  %v5352_v19 = vld [vmem:[%s6220_s19 + $0x610] sm:$0xff]  ;;  %v5353_v21 = vld [vmem:[%s6220_s19 + $0x618] sm:$0xff] }
 0x42d   : > { %2781 = vmatprep.mubr.bf16.mxu0 %v5951_v18  ;;  %2822 = vmatprep.mubr.bf16.mxu1 %v5951_v18  ;;  %v5425_v30 = vcombine.high %v5359_v32, %v5363_v33  ;;  %v5356_v20 = vld [vmem:[%s6220_s19 + $0x630] sm:$0xff] }
 0x42f   : > { %2752 = vmatpush1.bf16.msra.mxu0 %v5296_v39  ;;  %2793 = vmatpush1.bf16.msra.mxu1 %v5298_v40  ;;  %v5367_v39 = vld [vmem:[%s6220_s19 + $0x688] sm:$0xff] }
 0x430   : > { %2753 = vmatprep.subr.bf16.mxu0 %v5305_v22  ;;  %2794 = vmatprep.subr.bf16.mxu1 %v5307_v41  ;;  %v5371_v40 = vld [vmem:[%s6220_s19 + $0x6a8] sm:$0xff]  ;;  %v5422_v22 = vcombine.low %v5358_v28, %v5362_v29  ;;  %v5424_v41 = vcombine.low %v5359_v32, %v5363_v33  ;;  %v5360_v29 = vld [vmem:[%s6220_s19 + $0x650] sm:$0xff]  ;;  %v5361_v33 = vld [vmem:[%s6220_s19 + $0x658] sm:$0xff] }
 0x431   : > { %v5433_v45 = vcombine.high %v5367_v39, %v5371_v40  ;;  %v5364_v32 = vld [vmem:[%s6220_s19 + $0x670] sm:$0xff] }
 0x433   : > { %2754 = vmatpush1.bf16.msra.mxu0 %v5304_v49  ;;  %2795 = vmatpush1.bf16.msra.mxu1 %v5306_v42  ;;  %v5375_v49 = vld [vmem:[%s6220_s19 + $0x6c8] sm:$0xff] }
 0x434   : > { %2755 = vmatprep.subr.bf16.mxu0 %v5313_v51  ;;  %2796 = vmatprep.subr.bf16.mxu1 %v5315_v52  ;;  %v5379_v42 = vld [vmem:[%s6220_s19 + $0x6e8] sm:$0xff]  ;;  %v5432_v51 = vcombine.low %v5367_v39, %v5371_v40  ;;  %v5439_v52 = vcombine.high %v5374_v26, %v5378_v48  ;;  %v5368_v39 = vld [vmem:[%s6220_s19 + $0x690] sm:$0xff] }
 0x435   : > { %v5441_v50 = vcombine.high %v5375_v49, %v5379_v42  ;;  %v5372_v40 = vld [vmem:[%s6220_s19 + $0x6b0] sm:$0xff] }
 0x437   : > { %2756 = vmatpush1.bf16.msra.mxu0 %v5312_v58  ;;  %2797 = vmatpush1.bf16.msra.mxu1 %v5314_v61  ;;  %v5387_v58 = vld [vmem:[%s6220_s19 + $0x728] sm:$0xff]  ;;  %v5438_v61 = vcombine.low %v5374_v26, %v5378_v48  ;;  %v5435_v26 = vcombine.high %v5368_v39, %v5372_v40 }
 0x438   : > { %2757 = vmatprep.subr.bf16.mxu0 %v5321_v62  ;;  %2798 = vmatprep.subr.bf16.mxu1 %v5323_v63  ;;  %v5440_v62 = vcombine.low %v5375_v49, %v5379_v42  ;;  %v5447_v63 = vcombine.high %v5382_v54, %v5386_v55  ;;  %v5449_v1 = vcombine.high %v5383_v56, %v5387_v58  ;;  %v5376_v49 = vld [vmem:[%s6220_s19 + $0x6d0] sm:$0xff] }
 0x439   : > { %v5380_v42 = vld [vmem:[%s6220_s19 + $0x6f0] sm:$0xff] }
 0x43b   : > { %2758 = vmatpush1.bf16.msra.mxu0 %v5320_v6  ;;  %2799 = vmatpush1.bf16.msra.mxu1 %v5322_v7  ;;  %v5395_v6 = vld [vmem:[%s6220_s19 + $0x768] sm:$0xff]  ;;  %v5446_v7 = vcombine.low %v5382_v54, %v5386_v55  ;;  %v5443_v54 = vcombine.high %v5376_v49, %v5380_v42 }
 0x43c   : > { %2759 = vmatprep.subr.bf16.mxu0 %v5329_v0  ;;  %2800 = vmatprep.subr.bf16.mxu1 %v5331_v8  ;;  %v5448_v0 = vcombine.low %v5383_v56, %v5387_v58  ;;  %v5455_v8 = vcombine.high %v5390_v2, %v5394_v4  ;;  %v5457_v44 = vcombine.high %v5391_v5, %v5395_v6  ;;  %v5384_v56 = vld [vmem:[%s6220_s19 + $0x710] sm:$0xff] }
 0x43d   : > { %v5388_v58 = vld [vmem:[%s6220_s19 + $0x730] sm:$0xff] }
 0x43f   : > { %2760 = vmatpush1.bf16.msra.mxu0 %v5328_v11  ;;  %2801 = vmatpush1.bf16.msra.mxu1 %v5330_v47  ;;  %v5403_v11 = vld [vmem:[%s6220_s19 + $0x7a8] sm:$0xff]  ;;  %v5454_v47 = vcombine.low %v5390_v2, %v5394_v4  ;;  %v5952_v4 = vmov 1983009808  }
 0x440   : > { %2761 = vmatprep.subr.bf16.mxu0 %v5337_v12  ;;  %2802 = vmatprep.subr.bf16.mxu1 %v5339_v60  ;;  %v5456_v12 = vcombine.low %v5391_v5, %v5395_v6  ;;  %v5463_v60 = vcombine.high %v5398_v57, %v5402_v9  ;;  %v5465_v13 = vcombine.high %v5399_v10, %v5403_v11  ;;  %v1646_v5 = vunpack.c.l.s4 %v5952_v4 }
 0x441   : > { %v1648_v6 = vlaneseq }
 0x443   : > { %2762 = vmatpush1.bf16.msra.mxu0 %v5336_v3  ;;  %2803 = vmatpush1.bf16.msra.mxu1 %v5338_v14  ;;  %v5411_v3 = vld [vmem:[%s6220_s19 + $0x7e8] sm:$0xff]  ;;  %v5462_v14 = vcombine.low %v5398_v57, %v5402_v9  ;;  %v5450_v57 = vcombine.low %v5384_v56, %v5388_v58 }
 0x444   : > { %2763 = vmatprep.subr.bf16.mxu0 %v5345_v15  ;;  %2804 = vmatprep.subr.bf16.mxu1 %v5347_v16  ;;  %v5464_v15 = vcombine.low %v5399_v10, %v5403_v11  ;;  %v5471_v16 = vcombine.high %v5406_v46, %v5410_v53  ;;  %v5473_v17 = vcombine.high %v5407_v59, %v5411_v3  ;;  %v1647_v11 = vunpack.c.0.s8 %v1646_v5 }
 0x447   : > { %2764 = vmatpush1.bf16.msra.mxu0 %v5344_v23  ;;  %2805 = vmatpush1.bf16.msra.mxu1 %v5346_v24  ;;  %v5357_v23 = vld [vmem:[%s6220_s19 + $0x638] sm:$0xff]  ;;  %v5470_v24 = vcombine.low %v5406_v46, %v5410_v53 }
 0x448   : > { %3265 = vmatprep.subr.bf16.mxu0 %v5415_v25  ;;  %3306 = vmatprep.subr.bf16.mxu1 %v5417_v27  ;;  %v5472_v25 = vcombine.low %v5407_v59, %v5411_v3  ;;  %v5419_v27 = vcombine.high %v5352_v19, %v5356_v20  ;;  %v5421_v28 = vcombine.high %v5353_v21, %v5357_v23  ;;  %v5401_v46 = vld [vmem:[%s6220_s19 + $0x798] sm:$0xff] }
 0x449   : > { %v5405_v53 = vld [vmem:[%s6220_s19 + $0x7b8] sm:$0xff] }
 0x44a   : > { %2782 = vmatmul.mubr.bf16.vlgmr.msra.gmra.mrb[20].mxu0 %v6515_v31  ;;  %2823 = vmatmul.mubr.bf16.vlgmr.msra.gmra.mrb[20].mxu1 %v6515_v31  ;;  %v5430_v31 = vcombine.low %v5366_v37, %v5370_v38  ;;  %v5427_v37 = vcombine.high %v5360_v29, %v5364_v32 }
 0x44b   : > { %3266 = vmatpush1.bf16.msra.mxu0 %v5414_v34  ;;  %3307 = vmatpush1.bf16.msra.mxu1 %v5416_v35  ;;  %v5365_v34 = vld [vmem:[%s6220_s19 + $0x678] sm:$0xff] }
 0x44c   : > { %3267 = vmatprep.subr.bf16.mxu0 %v5423_v36  ;;  %3308 = vmatprep.subr.bf16.mxu1 %v5425_v30  ;;  %v6590_v35 = vld [vmem:[%s6362_s10 + $0x3] sm:$0x1]  ;;  %v5418_v36 = vcombine.low %v5352_v19, %v5356_v20  ;;  %v5420_v30 = vcombine.low %v5353_v21, %v5357_v23  ;;  %v5429_v38 = vcombine.high %v5361_v33, %v5365_v34  ;;  %v5408_v19 = vld [vmem:[%s6220_s19 + $0x7d0] sm:$0xff] }
 0x44d   : > { %3297 = vmatprep.mubr.bf16.mxu0 %v5951_v18  ;;  %3338 = vmatprep.mubr.bf16.mxu1 %v5951_v18  ;;  %v5412_v20 = vld [vmem:[%s6220_s19 + $0x7f0] sm:$0xff] }
 0x44f   : > { %3268 = vmatpush1.bf16.msra.mxu0 %v5422_v22  ;;  %3309 = vmatpush1.bf16.msra.mxu1 %v5424_v41  ;;  %v5369_v22 = vld [vmem:[%s6220_s19 + $0x698] sm:$0xff] }
 0x450   : > { %3269 = vmatprep.subr.bf16.mxu0 %v5431_v43  ;;  %3310 = vmatprep.subr.bf16.mxu1 %v5433_v45  ;;  %v5373_v41 = vld [vmem:[%s6220_s19 + $0x6b8] sm:$0xff]  ;;  %v5426_v43 = vcombine.low %v5360_v29, %v5364_v32  ;;  %v5428_v45 = vcombine.low %v5361_v33, %v5365_v34 }
 0x451   : > { %v5437_v48 = vcombine.high %v5369_v22, %v5373_v41 }
 0x453   : > { %3270 = vmatpush1.bf16.msra.mxu0 %v5430_v31  ;;  %3311 = vmatpush1.bf16.msra.mxu1 %v5432_v51  ;;  %v5377_v31 = vld [vmem:[%s6220_s19 + $0x6d8] sm:$0xff] }
 0x454   : > { %3271 = vmatprep.subr.bf16.mxu0 %v5439_v52  ;;  %3312 = vmatprep.subr.bf16.mxu1 %v5441_v50  ;;  %v5381_v51 = vld [vmem:[%s6220_s19 + $0x6f8] sm:$0xff]  ;;  %v5434_v52 = vcombine.low %v5368_v39, %v5372_v40  ;;  %v5436_v50 = vcombine.low %v5369_v22, %v5373_v41  ;;  %v5474_v41 = vcombine.low %v5408_v19, %v5412_v20 }
 0x455   : > { %v5445_v55 = vcombine.high %v5377_v31, %v5381_v51 }
 0x457   : > { %3272 = vmatpush1.bf16.msra.mxu0 %v5438_v61  ;;  %3313 = vmatpush1.bf16.msra.mxu1 %v5440_v62  ;;  %v5385_v61 = vld [vmem:[%s6220_s19 + $0x718] sm:$0xff] }
 0x458   : > { %3273 = vmatprep.subr.bf16.mxu0 %v5447_v63  ;;  %3314 = vmatprep.subr.bf16.mxu1 %v5449_v1  ;;  %v5389_v62 = vld [vmem:[%s6220_s19 + $0x738] sm:$0xff]  ;;  %v5442_v63 = vcombine.low %v5376_v49, %v5380_v42  ;;  %v5451_v1 = vcombine.high %v5384_v56, %v5388_v58 }
 0x459   : > { %v5453_v2 = vcombine.high %v5385_v61, %v5389_v62  ;;  %v5452_v9 = vcombine.low %v5385_v61, %v5389_v62 }
 0x45b   : > { %3274 = vmatpush1.bf16.msra.mxu0 %v5446_v7  ;;  %3315 = vmatpush1.bf16.msra.mxu1 %v5448_v0  ;;  %v5392_v7 = vld [vmem:[%s6220_s19 + $0x750] sm:$0xff] }
 0x45c   : > { %3275 = vmatprep.subr.bf16.mxu0 %v5455_v8  ;;  %3316 = vmatprep.subr.bf16.mxu1 %v5457_v44  ;;  %v5396_v0 = vld [vmem:[%s6220_s19 + $0x770] sm:$0xff]  ;;  %v5393_v8 = vld [vmem:[%s6220_s19 + $0x758] sm:$0xff] }
 0x45d   : > { %v5397_v44 = vld [vmem:[%s6220_s19 + $0x778] sm:$0xff]  ;;  %v5459_v10 = vcombine.high %v5392_v7, %v5396_v0  ;;  %v5458_v59 = vcombine.low %v5392_v7, %v5396_v0  ;;  %v1083_v7 = vld [vmem:[#allocation3] sm:$0xff] }
 0x45e   : > { %v5460_v3 = vcombine.low %v5393_v8, %v5397_v44 }
 0x45f   : > { %3276 = vmatpush1.bf16.msra.mxu0 %v5454_v47  ;;  %3317 = vmatpush1.bf16.msra.mxu1 %v5456_v12  ;;  %v6612_v47 = vshrl.u32 %v1648_v6, 7  ;;  %v5461_v12 = vcombine.high %v5393_v8, %v5397_v44 }
 0x460   : > { %3277 = vmatprep.subr.bf16.mxu0 %v5463_v60  ;;  %3318 = vmatprep.subr.bf16.mxu1 %v5465_v13  ;;  %v5400_v60 = vld [vmem:[%s6220_s19 + $0x790] sm:$0xff] }
 0x461   : > { %v5404_v13 = vld [vmem:[%s6220_s19 + $0x7b0] sm:$0xff] }
 0x462   : > { %v5466_v32 = vcombine.low %v5400_v60, %v5404_v13 }
 0x463   : > { %3278 = vmatpush1.bf16.msra.mxu0 %v5462_v14  ;;  %3319 = vmatpush1.bf16.msra.mxu1 %v5464_v15  ;;  %v5467_v14 = vcombine.high %v5400_v60, %v5404_v13 }
 0x464   : > { %3279 = vmatprep.subr.bf16.mxu0 %v5471_v16  ;;  %3320 = vmatprep.subr.bf16.mxu1 %v5473_v17  ;;  %v6619_v16 = vsub.s32 %v1647_v11, %v6612_v47  ;;  %v5469_v17 = vcombine.high %v5401_v46, %v5405_v53 }
 0x467   : > { %3280 = vmatpush1.bf16.msra.mxu0 %v5470_v24  ;;  %3321 = vmatpush1.bf16.msra.mxu1 %v5472_v25  ;;  %v5409_v24 = vld [vmem:[%s6220_s19 + $0x7d8] sm:$0xff] }
 0x468   : > { %3347 = vmatprep.subr.bf16.mxu0 %v5419_v27  ;;  %3388 = vmatprep.subr.bf16.mxu1 %v5421_v28  ;;  %v5413_v25 = vld [vmem:[%s6220_s19 + $0x7f8] sm:$0xff] }
 0x469   : > { %v5477_v40 = vcombine.high %v5409_v24, %v5413_v25 }
 0x46a   : > { %3298 = vmatmul.mubr.bf16.vlgmr.msra.gmra.mrb[24].mxu0 %v6590_v35  ;;  %3339 = vmatmul.mubr.bf16.vlgmr.msra.gmra.mrb[24].mxu1 %v6590_v35 }
 0x46b   : > { %3348 = vmatpush1.bf16.msra.mxu0 %v5418_v36  ;;  %3389 = vmatpush1.bf16.msra.mxu1 %v5420_v30  ;;  %v5468_v30 = vcombine.low %v5401_v46, %v5405_v53 }
 0x46c   : > { %3349 = vmatprep.subr.bf16.mxu0 %v5427_v37  ;;  %3390 = vmatprep.subr.bf16.mxu1 %v5429_v38  ;;  %v5475_v37 = vcombine.high %v5408_v19, %v5412_v20 }
 0x46d   : > { %3379 = vmatprep.mubr.bf16.mxu0 %v5951_v18  ;;  %3420 = vmatprep.mubr.bf16.mxu1 %v5951_v18  ;;  %v5444_v18 = vcombine.low %v5377_v31, %v5381_v51 }
 0x46f   : > { %3350 = vmatpush1.bf16.msra.mxu0 %v5426_v43  ;;  %3391 = vmatpush1.bf16.msra.mxu1 %v5428_v45  ;;  %v5476_v45 = vcombine.low %v5409_v24, %v5413_v25 }
 0x470   : > { %3351 = vmatprep.subr.bf16.mxu0 %v5435_v26  ;;  %3392 = vmatprep.subr.bf16.mxu1 %v5437_v48 }
 0x473   : > { %3352 = vmatpush1.bf16.msra.mxu0 %v5434_v52  ;;  %3393 = vmatpush1.bf16.msra.mxu1 %v5436_v50 }
 0x474   : > { %3353 = vmatprep.subr.bf16.mxu0 %v5443_v54  ;;  %3394 = vmatprep.subr.bf16.mxu1 %v5445_v55 }
 0x477   : > { %3354 = vmatpush1.bf16.msra.mxu0 %v5442_v63  ;;  %3395 = vmatpush1.bf16.msra.mxu1 %v5444_v18 }
 0x478   : > { %3355 = vmatprep.subr.bf16.mxu0 %v5451_v1  ;;  %3396 = vmatprep.subr.bf16.mxu1 %v5453_v2 }
 0x47b   : > { %3356 = vmatpush1.bf16.msra.mxu0 %v5450_v57  ;;  %3397 = vmatpush1.bf16.msra.mxu1 %v5452_v9 }
 0x47c   : > { %3357 = vmatprep.subr.bf16.mxu0 %v5459_v10  ;;  %3398 = vmatprep.subr.bf16.mxu1 %v5461_v12 }
 0x47d   : > { %v1505_v15 = vpop.f32.mrb[0].mxu0  ;;  %v1546_v21 = vpop.f32.mrb[0].mxu1 }
 0x47e   : > { %v1507_v23 = vpop.f32.mrb[1].mxu0  ;;  %v1548_v28 = vpop.f32.mrb[1].mxu1 }
 0x47f   : > { %v1643_v27 = vcombine.low %v1505_v15, %v1507_v23  ;;  %v1509_v29 = vpop.f32.mrb[2].mxu0  ;;  %3358 = vmatpush1.bf16.msra.mxu0 %v5458_v59  ;;  %v1644_v33 = vcombine.low %v1546_v21, %v1548_v28  ;;  %v1550_v34 = vpop.f32.mrb[2].mxu1  ;;  %3399 = vmatpush1.bf16.msra.mxu1 %v5460_v3  ;;  %v1084_v15 = vld [vmem:[#allocation3 + $0x8] sm:$0xff] }
 0x480   : > { %v1510_v36 = vpop.f32.mrb[3].mxu0  ;;  %3359 = vmatprep.subr.bf16.mxu0 %v5467_v14  ;;  %v1551_v39 = vpop.f32.mrb[3].mxu1  ;;  %3400 = vmatprep.subr.bf16.mxu1 %v5469_v17 }
 0x481   : > { %v1651_v38 = vrot.slane %v1643_v27, %v6619_v16  ;;  %v1658_v22 = vrot.slane %v1644_v33, %v6619_v16 }
 0x483   : > { %3360 = vmatpush1.bf16.msra.mxu0 %v5466_v32  ;;  %v1659_v43 = vcombine.low %v1651_v38, %v1658_v22  ;;  %3401 = vmatpush1.bf16.msra.mxu1 %v5468_v30 }
 0x484   : > { %3361 = vmatprep.subr.bf16.mxu0 %v5475_v37  ;;  %3402 = vmatprep.subr.bf16.mxu1 %v5477_v40 }
 0x485   : > { %v1679_v57 = vadd.f32 %v1659_v43, %v1083_v7 }
 0x487   : > { %3362 = vmatpush1.bf16.msra.mxu0 %v5474_v41  ;;  %3403 = vmatpush1.bf16.msra.mxu1 %v5476_v45 }
 0x48a   : > { %3380 = vmatmul.mubr.bf16.vlgmr.msra.gmra.mrb[28].mxu0 %v6590_v35  ;;  %3421 = vmatmul.mubr.bf16.vlgmr.msra.gmra.mrb[28].mxu1 %v6590_v35 }
 0x49d   : > { %v1587_v26 = vpop.f32.mrb[4].mxu0  ;;  %v1628_v48 = vpop.f32.mrb[4].mxu1 }
 0x49e   : > { %v1589_v49 = vpop.f32.mrb[5].mxu0  ;;  %v1630_v31 = vpop.f32.mrb[5].mxu1 }
 0x49f   : > { %v1660_v42 = vcombine.low %v1587_v26, %v1589_v49  ;;  %v1591_v51 = vpop.f32.mrb[6].mxu0  ;;  %v1661_v52 = vcombine.low %v1628_v48, %v1630_v31  ;;  %v1632_v50 = vpop.f32.mrb[6].mxu1 }
 0x4a0   : > { %v1592_v54 = vpop.f32.mrb[7].mxu0  ;;  %v1633_v56 = vpop.f32.mrb[7].mxu1 }
 0x4a1   : > { %v1668_v55 = vrot.slane %v1660_v42, %v6619_v16  ;;  %v1675_v58 = vrot.slane %v1661_v52, %v6619_v16 }
 0x4a3   : > { %v1676_v61 = vcombine.low %v1668_v55, %v1675_v58 }
 0x4a5   : > { %v1680_v21 = vadd.f32 %v1676_v61, %v1084_v15 }
 0x4bd   : > { %v2103_v62 = vpop.f32.mrb[8].mxu0  ;;  %v2144_v63 = vpop.f32.mrb[8].mxu1 }
 0x4be   : > { %v2105_v18 = vpop.f32.mrb[9].mxu0  ;;  %v2146_v35 = vpop.f32.mrb[9].mxu1 }
 0x4bf   : > { %v2241_v1 = vcombine.low %v2103_v62, %v2105_v18  ;;  %v2107_v2 = vpop.f32.mrb[10].mxu0  ;;  %v2242_v4 = vcombine.low %v2144_v63, %v2146_v35  ;;  %v2148_v5 = vpop.f32.mrb[10].mxu1 }
 0x4c0   : > { %v2108_v6 = vpop.f32.mrb[11].mxu0  ;;  %v2149_v8 = vpop.f32.mrb[11].mxu1 }
 0x4c1   : > { %v2249_v0 = vrot.slane %v2241_v1, %v6619_v16  ;;  %v2256_v44 = vrot.slane %v2242_v4, %v6619_v16 }
 0x4c3   : > { %v2257_v9 = vcombine.low %v2249_v0, %v2256_v44 }
 0x4c5   : > { %v2277_v10 = vadd.f32 %v2257_v9, %v1679_v57 }
 0x4dd   : > { %v2185_v11 = vpop.f32.mrb[12].mxu0  ;;  %v2226_v12 = vpop.f32.mrb[12].mxu1 }
 0x4de   : > { %v2187_v60 = vpop.f32.mrb[13].mxu0  ;;  %v2228_v46 = vpop.f32.mrb[13].mxu1 }
 0x4df   : > { %v2258_v13 = vcombine.low %v2185_v11, %v2187_v60  ;;  %v2189_v53 = vpop.f32.mrb[14].mxu0  ;;  %v2259_v59 = vcombine.low %v2226_v12, %v2228_v46  ;;  %v2230_v3 = vpop.f32.mrb[14].mxu1 }
 0x4e0   : > { %v2190_v14 = vpop.f32.mrb[15].mxu0  ;;  %v2231_v19 = vpop.f32.mrb[15].mxu1 }
 0x4e1   : > { %v2266_v17 = vrot.slane %v2258_v13, %v6619_v16  ;;  %v2273_v20 = vrot.slane %v2259_v59, %v6619_v16 }
 0x4e3   : > { %v2274_v23 = vcombine.low %v2266_v17, %v2273_v20 }
 0x4e5   : > { %v2278_v24 = vadd.f32 %v2274_v23, %v1680_v21 }
 0x4fd   : > { %v2701_v25 = vpop.f32.mrb[16].mxu0  ;;  %v2742_v27 = vpop.f32.mrb[16].mxu1 }
 0x4fe   : > { %v2703_v28 = vpop.f32.mrb[17].mxu0  ;;  %v2744_v32 = vpop.f32.mrb[17].mxu1 }
 0x4ff   : > { %v2839_v29 = vcombine.low %v2701_v25, %v2703_v28  ;;  %v2705_v33 = vpop.f32.mrb[18].mxu0  ;;  %v2840_v34 = vcombine.low %v2742_v27, %v2744_v32  ;;  %v2746_v36 = vpop.f32.mrb[18].mxu1 }
 0x500   : > { %v2706_v30 = vpop.f32.mrb[19].mxu0  ;;  %v2747_v38 = vpop.f32.mrb[19].mxu1 }
 0x501   : > { %v2847_v37 = vrot.slane %v2839_v29, %v6619_v16  ;;  %v2854_v39 = vrot.slane %v2840_v34, %v6619_v16 }
 0x503   : > { %v2855_v40 = vcombine.low %v2847_v37, %v2854_v39 }
 0x505   : > { %v2875_v22 = vadd.f32 %v2855_v40, %v2277_v10 }
 0x51d   : > { %v2783_v41 = vpop.f32.mrb[20].mxu0  ;;  %v2824_v43 = vpop.f32.mrb[20].mxu1 }
 0x51e   : > { %v2785_v45 = vpop.f32.mrb[21].mxu0  ;;  %v2826_v48 = vpop.f32.mrb[21].mxu1 }
 0x51f   : > { %v2856_v26 = vcombine.low %v2783_v41, %v2785_v45  ;;  %v2787_v49 = vpop.f32.mrb[22].mxu0  ;;  %v2857_v42 = vcombine.low %v2824_v43, %v2826_v48  ;;  %v2828_v31 = vpop.f32.mrb[22].mxu1 }
 0x520   : > { %v2788_v51 = vpop.f32.mrb[23].mxu0  ;;  %v2829_v50 = vpop.f32.mrb[23].mxu1 }
 0x521   : > { %v2864_v52 = vrot.slane %v2856_v26, %v6619_v16  ;;  %v2871_v54 = vrot.slane %v2857_v42, %v6619_v16 }
 0x523   : > { %v2872_v55 = vcombine.low %v2864_v52, %v2871_v54 }
 0x525   : > { %v2876_v56 = vadd.f32 %v2872_v55, %v2278_v24 }
 0x53d   : > { %v3299_v58 = vpop.f32.mrb[24].mxu0  ;;  %v3340_v61 = vpop.f32.mrb[24].mxu1 }
 0x53e   : > { %v3301_v62 = vpop.f32.mrb[25].mxu0  ;;  %v3342_v18 = vpop.f32.mrb[25].mxu1 }
 0x53f   : > { %v3437_v63 = vcombine.low %v3299_v58, %v3301_v62  ;;  %v3303_v1 = vpop.f32.mrb[26].mxu0  ;;  %v3438_v35 = vcombine.low %v3340_v61, %v3342_v18  ;;  %v3344_v2 = vpop.f32.mrb[26].mxu1 }
 0x540   : > { %v3304_v4 = vpop.f32.mrb[27].mxu0  ;;  %v3345_v6 = vpop.f32.mrb[27].mxu1 }
 0x541   : > { %v3445_v5 = vrot.slane %v3437_v63, %v6619_v16  ;;  %v3452_v7 = vrot.slane %v3438_v35, %v6619_v16 }
 0x543   : > { %v3453_v0 = vcombine.low %v3445_v5, %v3452_v7 }
 0x545   : > { %v3473_v8 = vadd.f32 %v3453_v0, %v2875_v22 }
 0x547   : > { %3475 = vst [vmem:[#allocation3] sm:$0xff] %v3473_v8 }
 0x55d   : > { %v3381_v44 = vpop.f32.mrb[28].mxu0  ;;  %v3422_v57 = vpop.f32.mrb[28].mxu1 }
 0x55e   : > { %v3383_v9 = vpop.f32.mrb[29].mxu0  ;;  %v3424_v11 = vpop.f32.mrb[29].mxu1 }
 0x55f   : > { %v3454_v10 = vcombine.low %v3381_v44, %v3383_v9  ;;  %v3385_v12 = vpop.f32.mrb[30].mxu0  ;;  %v3455_v60 = vcombine.low %v3422_v57, %v3424_v11  ;;  %v3426_v13 = vpop.f32.mrb[30].mxu1 }
 0x560   : > { %v3386_v46 = vpop.f32.mrb[31].mxu0  ;;  %v3427_v59 = vpop.f32.mrb[31].mxu1 }
 0x561   : > { %v3462_v53 = vrot.slane %v3454_v10, %v6619_v16  ;;  %v3469_v3 = vrot.slane %v3455_v60, %v6619_v16  ;;  %3480 = sbr.rel (%p5478_p12) target bundleno = 2120 (0x848), region = 80 }
 0x563   : > { %v3470_v14 = vcombine.low %v3462_v53, %v3469_v3 }
 0x565   : > { %v3474_v15 = vadd.f32 %v3470_v14, %v2876_v56 }
 0x567   : > { %3476 = vst [vmem:[#allocation3 + $0x8] sm:$0xff] %v3474_v15 }
 0x568   : > { %5907 = dma.done.wait [#allocation5], 65536 }
 0x569   : > { %5908 = vsyncadd [#allocation5], 4294901760  ;;  %v3614_v17 = vld [vmem:[#allocation4 + $0x8] sm:$0xff]  ;;  %v3616_v19 = vld [vmem:[#allocation4 + $0x18] sm:$0xff]  ;;  %v3491_v45 = vsub.s32 0, %v6612_v47  ;;  %v3495_v26 = vsub.s32 1, %v6612_v47 }
 0x56a   : > { %v3613_v20 = vld [vmem:[#allocation4] sm:$0xff]  ;;  %4167 = vmatprep.subr.bf16.mxu0 %v3614_v17  ;;  %4331 = vmatprep.subr.bf16.mxu1 %v3616_v19  ;;  %v3615_v21 = vld [vmem:[#allocation4 + $0x10] sm:$0xff]  ;;  %v3622_v23 = vld [vmem:[#allocation4 + $0x48] sm:$0xff]  ;;  %v3499_v48 = vsub.s32 2, %v6612_v47  ;;  %v3503_v31 = vsub.s32 3, %v6612_v47 }
 0x56b   : > { %v3624_v24 = vld [vmem:[#allocation4 + $0x58] sm:$0xff]  ;;  %4168 = vmatpush1.bf16.msra.mxu0 %v3613_v20  ;;  %4332 = vmatpush1.bf16.msra.mxu1 %v3615_v21  ;;  %v3621_v25 = vld [vmem:[#allocation4 + $0x40] sm:$0xff]  ;;  %v3623_v27 = vld [vmem:[#allocation4 + $0x50] sm:$0xff] }
 0x56c   : > { %4169 = vmatprep.subr.bf16.mxu0 %v3622_v23  ;;  %4333 = vmatprep.subr.bf16.mxu1 %v3624_v24  ;;  %v3630_v28 = vld [vmem:[#allocation4 + $0x88] sm:$0xff]  ;;  %v3632_v29 = vld [vmem:[#allocation4 + $0x98] sm:$0xff]  ;;  %v3629_v32 = vld [vmem:[#allocation4 + $0x80] sm:$0xff] }
 0x56d   : > { %v3631_v33 = vld [vmem:[#allocation4 + $0x90] sm:$0xff]  ;;  %v3638_v34 = vld [vmem:[#allocation4 + $0xc8] sm:$0xff]  ;;  %v3640_v36 = vld [vmem:[#allocation4 + $0xd8] sm:$0xff] }
 0x56e   : > { %v3637_v30 = vld [vmem:[#allocation4 + $0xc0] sm:$0xff]  ;;  %v3639_v37 = vld [vmem:[#allocation4 + $0xd0] sm:$0xff]  ;;  %v3646_v38 = vld [vmem:[#allocation4 + $0x108] sm:$0xff] }
 0x56f   : > { %4170 = vmatpush1.bf16.msra.mxu0 %v3621_v25  ;;  %4334 = vmatpush1.bf16.msra.mxu1 %v3623_v27  ;;  %v3648_v39 = vld [vmem:[#allocation4 + $0x118] sm:$0xff]  ;;  %v3645_v40 = vld [vmem:[#allocation4 + $0x100] sm:$0xff]  ;;  %v3647_v22 = vld [vmem:[#allocation4 + $0x110] sm:$0xff] }
 0x570   : > { %4171 = vmatprep.subr.bf16.mxu0 %v3630_v28  ;;  %4335 = vmatprep.subr.bf16.mxu1 %v3632_v29  ;;  %v3654_v41 = vld [vmem:[#allocation4 + $0x148] sm:$0xff]  ;;  %v3656_v43 = vld [vmem:[#allocation4 + $0x158] sm:$0xff]  ;;  %v3653_v49 = vld [vmem:[#allocation4 + $0x140] sm:$0xff] }
 0x571   : > { %v3655_v42 = vld [vmem:[#allocation4 + $0x150] sm:$0xff]  ;;  %v3662_v51 = vld [vmem:[#allocation4 + $0x188] sm:$0xff]  ;;  %v3664_v52 = vld [vmem:[#allocation4 + $0x198] sm:$0xff] }
 0x572   : > { %v6648_v50 = vld [vmem:[#allocation14] sm:$0xff]  ;;  %v3663_v61 = vld [vmem:[#allocation4 + $0x190] sm:$0xff]  ;;  %v3672_v18 = vld [vmem:[#allocation4 + $0x1d8] sm:$0xff] }
 0x573   : > { %4172 = vmatpush1.bf16.msra.mxu0 %v3629_v32  ;;  %4336 = vmatpush1.bf16.msra.mxu1 %v3631_v33  ;;  %v3492_v54 = vrot.slane %v6648_v50, %v3491_v45  ;;  %v3496_v55 = vrot.slane %v6648_v50, %v3495_v26  ;;  %v3500_v56 = vrot.slane %v6648_v50, %v3499_v48  ;;  %v3661_v58 = vld [vmem:[#allocation4 + $0x180] sm:$0xff]  ;;  %v3670_v63 = vld [vmem:[#allocation4 + $0x1c8] sm:$0xff]  ;;  %v3671_v5 = vld [vmem:[#allocation4 + $0x1d0] sm:$0xff] }
 0x574   : > { %4173 = vmatprep.subr.bf16.mxu0 %v3638_v34  ;;  %4337 = vmatprep.subr.bf16.mxu1 %v3640_v36  ;;  %v3504_v62 = vrot.slane %v6648_v50, %v3503_v31  ;;  %v3669_v4 = vld [vmem:[#allocation4 + $0x1c0] sm:$0xff]  ;;  %v3678_v7 = vld [vmem:[#allocation4 + $0x208] sm:$0xff]  ;;  %v3680_v0 = vld [vmem:[#allocation4 + $0x218] sm:$0xff] }
 0x575   : > { %v3521_v1 = vcombine.low %v3492_v54, %v3496_v55  ;;  %v3485_v8 = vld [vmem:[#allocation3] sm:$0xff]  ;;  %v3677_v57 = vld [vmem:[#allocation4 + $0x200] sm:$0xff]  ;;  %v3686_v11 = vld [vmem:[#allocation4 + $0x248] sm:$0xff] }
 0x576   : > { %v3522_v35 = vcombine.low %v3500_v56, %v3504_v62  ;;  %v3679_v9 = vld [vmem:[#allocation4 + $0x210] sm:$0xff]  ;;  %v3688_v12 = vld [vmem:[#allocation4 + $0x258] sm:$0xff]  ;;  %v3685_v13 = vld [vmem:[#allocation4 + $0x240] sm:$0xff] }
 0x577   : > { %4174 = vmatpush1.bf16.msra.mxu0 %v3637_v30  ;;  %4338 = vmatpush1.bf16.msra.mxu1 %v3639_v37  ;;  %v3529_v2 = vrot.slane %v3521_v1, %v6619_v16  ;;  %v3687_v46 = vld [vmem:[#allocation4 + $0x250] sm:$0xff]  ;;  %v3694_v59 = vld [vmem:[#allocation4 + $0x288] sm:$0xff]  ;;  %v3696_v3 = vld [vmem:[#allocation4 + $0x298] sm:$0xff] }
 0x578   : > { %4175 = vmatprep.subr.bf16.mxu0 %v3646_v38  ;;  %4339 = vmatprep.subr.bf16.mxu1 %v3648_v39  ;;  %v3536_v6 = vrot.slane %v3522_v35, %v6619_v16  ;;  %v3693_v15 = vld [vmem:[#allocation4 + $0x280] sm:$0xff]  ;;  %v3695_v17 = vld [vmem:[#allocation4 + $0x290] sm:$0xff]  ;;  %v3702_v20 = vld [vmem:[#allocation4 + $0x2c8] sm:$0xff] }
 0x579   : > { %v3704_v21 = vld [vmem:[#allocation4 + $0x2d8] sm:$0xff]  ;;  %v3701_v23 = vld [vmem:[#allocation4 + $0x2c0] sm:$0xff]  ;;  %v3703_v24 = vld [vmem:[#allocation4 + $0x2d0] sm:$0xff] }
 0x57a   : > { %v3537_v44 = vcombine.low %v3529_v2, %v3536_v6  ;;  %v3710_v25 = vld [vmem:[#allocation4 + $0x308] sm:$0xff]  ;;  %v3712_v27 = vld [vmem:[#allocation4 + $0x318] sm:$0xff]  ;;  %v3709_v28 = vld [vmem:[#allocation4 + $0x300] sm:$0xff] }
 0x57b   : > { %4176 = vmatpush1.bf16.msra.mxu0 %v3645_v40  ;;  %4340 = vmatpush1.bf16.msra.mxu1 %v3647_v22  ;;  %v3711_v29 = vld [vmem:[#allocation4 + $0x310] sm:$0xff]  ;;  %v3718_v32 = vld [vmem:[#allocation4 + $0x348] sm:$0xff]  ;;  %v3720_v33 = vld [vmem:[#allocation4 + $0x358] sm:$0xff] }
 0x57c   : > { %4177 = vmatprep.subr.bf16.mxu0 %v3654_v41  ;;  %4341 = vmatprep.subr.bf16.mxu1 %v3656_v43  ;;  %v3557_v10 = vadd.f32 %v3537_v44, %v3485_v8  ;;  %v3717_v34 = vld [vmem:[#allocation4 + $0x340] sm:$0xff]  ;;  %v3719_v36 = vld [vmem:[#allocation4 + $0x350] sm:$0xff]  ;;  %v3726_v30 = vld [vmem:[#allocation4 + $0x388] sm:$0xff] }
 0x57d   : > { %v3728_v37 = vld [vmem:[#allocation4 + $0x398] sm:$0xff]  ;;  %v3725_v39 = vld [vmem:[#allocation4 + $0x380] sm:$0xff]  ;;  %v3727_v40 = vld [vmem:[#allocation4 + $0x390] sm:$0xff] }
 0x57e   : > { %v3559_v60 = vmax.f32 %v3557_v10, 0.0  ;;  %v3734_v22 = vld [vmem:[#allocation4 + $0x3c8] sm:$0xff]  ;;  %v3736_v41 = vld [vmem:[#allocation4 + $0x3d8] sm:$0xff]  ;;  %v3741_v56 = vld [vmem:[#allocation4 + $0x400] sm:$0xff] }
 0x57f   : > { %4178 = vmatpush1.bf16.msra.mxu0 %v3653_v49  ;;  %4342 = vmatpush1.bf16.msra.mxu1 %v3655_v42  ;;  %v3733_v49 = vld [vmem:[#allocation4 + $0x3c0] sm:$0xff]  ;;  %v3735_v42 = vld [vmem:[#allocation4 + $0x3d0] sm:$0xff]  ;;  %v3752_v62 = vld [vmem:[#allocation4 + $0x458] sm:$0xff] }
 0x580   : > { %4179 = vmatprep.subr.bf16.mxu0 %v3662_v51  ;;  %4343 = vmatprep.subr.bf16.mxu1 %v3664_v52  ;;  %v3570_v53 = vrot.slane %v3559_v60, %v6619_v16  ;;  %v3563_v38 = vcombine.high %v3559_v60, %v3559_v60  ;;  %v3742_v51 = vld [vmem:[#allocation4 + $0x408] sm:$0xff]  ;;  %v3744_v52 = vld [vmem:[#allocation4 + $0x418] sm:$0xff]  ;;  %v3751_v1 = vld [vmem:[#allocation4 + $0x450] sm:$0xff] }
 0x581   : > { %v3758_v35 = vld [vmem:[#allocation4 + $0x488] sm:$0xff]  ;;  %v3760_v2 = vld [vmem:[#allocation4 + $0x498] sm:$0xff]  ;;  %v3767_v8 = vld [vmem:[#allocation4 + $0x4d0] sm:$0xff] }
 0x582   : > { %v3578_v14 = vcombine.high %v3570_v53, %v3570_v53  ;;  %v6670_v43 = vrot.slane %v3563_v38, %v6619_v16  ;;  %v6674_v55 = vpack.c.bf16 %v3570_v53, %v3570_v53  ;;  %v3766_v6 = vld [vmem:[#allocation4 + $0x4c8] sm:$0xff]  ;;  %v3775_v10 = vld [vmem:[#allocation4 + $0x510] sm:$0xff]  ;;  %v3781_v60 = vld [vmem:[#allocation4 + $0x540] sm:$0xff] }
 0x583   : > { %4180 = vmatpush1.bf16.msra.mxu0 %v3661_v58  ;;  %4344 = vmatpush1.bf16.msra.mxu1 %v3663_v61  ;;  %v3743_v58 = vld [vmem:[#allocation4 + $0x410] sm:$0xff]  ;;  %v3750_v61 = vld [vmem:[#allocation4 + $0x448] sm:$0xff]  ;;  %v3792_v53 = vld [vmem:[#allocation4 + $0x598] sm:$0xff] }
 0x584   : > { %4181 = vmatprep.subr.bf16.mxu0 %v3670_v63  ;;  %4345 = vmatprep.subr.bf16.mxu1 %v3672_v18  ;;  %v6665_v19 = vpack.c.bf16 %v3578_v14, %v3578_v14  ;;  %v3579_v54 = vcombine.high %v6670_v43, %v6670_v43  ;;  %v3749_v18 = vld [vmem:[#allocation4 + $0x440] sm:$0xff]  ;;  %v3774_v44 = vld [vmem:[#allocation4 + $0x508] sm:$0xff] }
 0x585   : > { %v3798_v14 = vld [vmem:[#allocation4 + $0x5c8] sm:$0xff] }
 0x586   : > { %4199 = vmatprep.mubr.bf16.mxu0 %v6665_v19  ;;  %4363 = vmatprep.mubr.bf16.mxu1 %v6665_v19  ;;  %v6676_v63 = vpack.c.bf16 %v3579_v54, %v3579_v54  ;;  %v3830_v54 = vld [vmem:[#allocation4 + $0x6c8] sm:$0xff] }
 0x587   : > { %4182 = vmatpush1.bf16.msra.mxu0 %v3669_v4  ;;  %4346 = vmatpush1.bf16.msra.mxu1 %v3671_v5  ;;  %v3757_v4 = vld [vmem:[#allocation4 + $0x480] sm:$0xff]  ;;  %v3759_v5 = vld [vmem:[#allocation4 + $0x490] sm:$0xff] }
 0x588   : > { %4183 = vmatprep.subr.bf16.mxu0 %v3678_v7  ;;  %4347 = vmatprep.subr.bf16.mxu1 %v3680_v0  ;;  %v3768_v7 = vld [vmem:[#allocation4 + $0x4d8] sm:$0xff]  ;;  %v3765_v0 = vld [vmem:[#allocation4 + $0x4c0] sm:$0xff] }
 0x58b   : > { %4184 = vmatpush1.bf16.msra.mxu0 %v3677_v57  ;;  %4348 = vmatpush1.bf16.msra.mxu1 %v3679_v9  ;;  %v3776_v57 = vld [vmem:[#allocation4 + $0x518] sm:$0xff]  ;;  %v3773_v9 = vld [vmem:[#allocation4 + $0x500] sm:$0xff] }
 0x58c   : > { %4185 = vmatprep.subr.bf16.mxu0 %v3686_v11  ;;  %4349 = vmatprep.subr.bf16.mxu1 %v3688_v12  ;;  %v3782_v11 = vld [vmem:[#allocation4 + $0x548] sm:$0xff]  ;;  %v3784_v12 = vld [vmem:[#allocation4 + $0x558] sm:$0xff] }
 0x58f   : > { %4186 = vmatpush1.bf16.msra.mxu0 %v3685_v13  ;;  %4350 = vmatpush1.bf16.msra.mxu1 %v3687_v46  ;;  %v3783_v13 = vld [vmem:[#allocation4 + $0x550] sm:$0xff]  ;;  %v3790_v46 = vld [vmem:[#allocation4 + $0x588] sm:$0xff] }
 0x590   : > { %4187 = vmatprep.subr.bf16.mxu0 %v3694_v59  ;;  %4351 = vmatprep.subr.bf16.mxu1 %v3696_v3  ;;  %v3789_v59 = vld [vmem:[#allocation4 + $0x580] sm:$0xff]  ;;  %v3791_v3 = vld [vmem:[#allocation4 + $0x590] sm:$0xff] }
 0x593   : > { %4188 = vmatpush1.bf16.msra.mxu0 %v3693_v15  ;;  %4352 = vmatpush1.bf16.msra.mxu1 %v3695_v17  ;;  %v3800_v15 = vld [vmem:[#allocation4 + $0x5d8] sm:$0xff]  ;;  %v3797_v17 = vld [vmem:[#allocation4 + $0x5c0] sm:$0xff] }
 0x594   : > { %4189 = vmatprep.subr.bf16.mxu0 %v3702_v20  ;;  %4353 = vmatprep.subr.bf16.mxu1 %v3704_v21  ;;  %v3799_v20 = vld [vmem:[#allocation4 + $0x5d0] sm:$0xff]  ;;  %v3806_v21 = vld [vmem:[#allocation4 + $0x608] sm:$0xff] }
 0x597   : > { %4190 = vmatpush1.bf16.msra.mxu0 %v3701_v23  ;;  %4354 = vmatpush1.bf16.msra.mxu1 %v3703_v24  ;;  %v3808_v23 = vld [vmem:[#allocation4 + $0x618] sm:$0xff]  ;;  %v3507_v24 = vsub.s32 4, %v6612_v47 }
 0x598   : > { %4191 = vmatprep.subr.bf16.mxu0 %v3710_v25  ;;  %4355 = vmatprep.subr.bf16.mxu1 %v3712_v27  ;;  %v3511_v25 = vsub.s32 5, %v6612_v47  ;;  %v3515_v27 = vsub.s32 6, %v6612_v47 }
 0x59b   : > { %4192 = vmatpush1.bf16.msra.mxu0 %v3709_v28  ;;  %4356 = vmatpush1.bf16.msra.mxu1 %v3711_v29  ;;  %v3519_v28 = vsub.s32 7, %v6612_v47  ;;  %v3805_v29 = vld [vmem:[#allocation4 + $0x600] sm:$0xff] }
 0x59c   : > { %4193 = vmatprep.subr.bf16.mxu0 %v3718_v32  ;;  %4357 = vmatprep.subr.bf16.mxu1 %v3720_v33  ;;  %v3807_v32 = vld [vmem:[#allocation4 + $0x610] sm:$0xff]  ;;  %v3814_v33 = vld [vmem:[#allocation4 + $0x648] sm:$0xff] }
 0x59d   : > { %v3520_v38 = vrot.slane %v6648_v50, %v3519_v28 }
 0x59f   : > { %4194 = vmatpush1.bf16.msra.mxu0 %v3717_v34  ;;  %4358 = vmatpush1.bf16.msra.mxu1 %v3719_v36  ;;  %v3816_v34 = vld [vmem:[#allocation4 + $0x658] sm:$0xff]  ;;  %v3508_v36 = vrot.slane %v6648_v50, %v3507_v24 }
 0x5a0   : > { %4195 = vmatprep.subr.bf16.mxu0 %v3726_v30  ;;  %4359 = vmatprep.subr.bf16.mxu1 %v3728_v37  ;;  %v3512_v30 = vrot.slane %v6648_v50, %v3511_v25  ;;  %v3516_v37 = vrot.slane %v6648_v50, %v3515_v27 }
 0x5a3   : > { %4196 = vmatpush1.bf16.msra.mxu0 %v3725_v39  ;;  %4360 = vmatpush1.bf16.msra.mxu1 %v3727_v40  ;;  %v3813_v39 = vld [vmem:[#allocation4 + $0x640] sm:$0xff]  ;;  %v3815_v40 = vld [vmem:[#allocation4 + $0x650] sm:$0xff] }
 0x5a4   : > { %4197 = vmatprep.subr.bf16.mxu0 %v3734_v22  ;;  %4361 = vmatprep.subr.bf16.mxu1 %v3736_v41  ;;  %v3822_v22 = vld [vmem:[#allocation4 + $0x688] sm:$0xff]  ;;  %v3824_v41 = vld [vmem:[#allocation4 + $0x698] sm:$0xff] }
 0x5a7   : > { %4198 = vmatpush1.bf16.msra.mxu0 %v3733_v49  ;;  %4362 = vmatpush1.bf16.msra.mxu1 %v3735_v42  ;;  %v3538_v49 = vcombine.low %v3508_v36, %v3512_v30  ;;  %v3539_v42 = vcombine.low %v3516_v37, %v3520_v38  ;;  %v3888_v36 = vld [vmem:[#allocation4 + $0x898] sm:$0xff]  ;;  %v3885_v30 = vld [vmem:[#allocation4 + $0x880] sm:$0xff]  ;;  %v3887_v37 = vld [vmem:[#allocation4 + $0x890] sm:$0xff] }
 0x5a8   : > { %4208 = vmatprep.subr.bf16.mxu0 %v3742_v51  ;;  %4372 = vmatprep.subr.bf16.mxu1 %v3744_v52  ;;  %v3821_v51 = vld [vmem:[#allocation4 + $0x680] sm:$0xff]  ;;  %v3823_v52 = vld [vmem:[#allocation4 + $0x690] sm:$0xff]  ;;  %v3894_v38 = vld [vmem:[#allocation4 + $0x8c8] sm:$0xff] }
 0x5a9   : > { %v3546_v50 = vrot.slane %v3538_v49, %v6619_v16  ;;  %v3904_v49 = vld [vmem:[#allocation4 + $0x918] sm:$0xff] }
 0x5aa   : > { %4200 = vmatmul.mubr.bf16.vlgmr.msra.gmra.mrb[0].mxu0 %v6674_v55  ;;  %4364 = vmatmul.mubr.bf16.vlgmr.msra.gmra.mrb[0].mxu1 %v6674_v55 }
 0x5ab   : > { %4209 = vmatpush1.bf16.msra.mxu0 %v3741_v56  ;;  %4373 = vmatpush1.bf16.msra.mxu1 %v3743_v58  ;;  %v3832_v56 = vld [vmem:[#allocation4 + $0x6d8] sm:$0xff]  ;;  %v3553_v58 = vrot.slane %v3539_v42, %v6619_v16  ;;  %v3901_v42 = vld [vmem:[#allocation4 + $0x900] sm:$0xff] }
 0x5ac   : > { %4210 = vmatprep.subr.bf16.mxu0 %v3750_v61  ;;  %4374 = vmatprep.subr.bf16.mxu1 %v3752_v62  ;;  %v3829_v61 = vld [vmem:[#allocation4 + $0x6c0] sm:$0xff]  ;;  %v3831_v62 = vld [vmem:[#allocation4 + $0x6d0] sm:$0xff] }
 0x5ad   : > { %4240 = vmatprep.mubr.bf16.mxu0 %v6676_v63  ;;  %4404 = vmatprep.mubr.bf16.mxu1 %v6676_v63 }
 0x5af   : > { %4211 = vmatpush1.bf16.msra.mxu0 %v3749_v18  ;;  %4375 = vmatpush1.bf16.msra.mxu1 %v3751_v1  ;;  %v3838_v18 = vld [vmem:[#allocation4 + $0x708] sm:$0xff]  ;;  %v3840_v1 = vld [vmem:[#allocation4 + $0x718] sm:$0xff] }
 0x5b0   : > { %4212 = vmatprep.subr.bf16.mxu0 %v3758_v35  ;;  %4376 = vmatprep.subr.bf16.mxu1 %v3760_v2  ;;  %v3554_v35 = vcombine.low %v3546_v50, %v3553_v58  ;;  %v3486_v2 = vld [vmem:[#allocation3 + $0x8] sm:$0xff]  ;;  %v3911_v50 = vld [vmem:[#allocation4 + $0x950] sm:$0xff]  ;;  %v3918_v58 = vld [vmem:[#allocation4 + $0x988] sm:$0xff] }
 0x5b3   : > { %4213 = vmatpush1.bf16.msra.mxu0 %v3757_v4  ;;  %4377 = vmatpush1.bf16.msra.mxu1 %v3759_v5  ;;  %v3837_v4 = vld [vmem:[#allocation4 + $0x700] sm:$0xff]  ;;  %v3839_v5 = vld [vmem:[#allocation4 + $0x710] sm:$0xff] }
 0x5b4   : > { %4214 = vmatprep.subr.bf16.mxu0 %v3766_v6  ;;  %4378 = vmatprep.subr.bf16.mxu1 %v3768_v7  ;;  %v3846_v6 = vld [vmem:[#allocation4 + $0x748] sm:$0xff]  ;;  %v3848_v7 = vld [vmem:[#allocation4 + $0x758] sm:$0xff] }
 0x5b7   : > { %4215 = vmatpush1.bf16.msra.mxu0 %v3765_v0  ;;  %4379 = vmatpush1.bf16.msra.mxu1 %v3767_v8  ;;  %v3558_v0 = vadd.f32 %v3554_v35, %v3486_v2  ;;  %v3845_v8 = vld [vmem:[#allocation4 + $0x740] sm:$0xff]  ;;  %v3928_v35 = vld [vmem:[#allocation4 + $0x9d8] sm:$0xff] }
 0x5b8   : > { %4216 = vmatprep.subr.bf16.mxu0 %v3774_v44  ;;  %4380 = vmatprep.subr.bf16.mxu1 %v3776_v57  ;;  %v3847_v44 = vld [vmem:[#allocation4 + $0x750] sm:$0xff]  ;;  %v3854_v57 = vld [vmem:[#allocation4 + $0x788] sm:$0xff]  ;;  %v3925_v2 = vld [vmem:[#allocation4 + $0x9c0] sm:$0xff] }
 0x5bb   : > { %4217 = vmatpush1.bf16.msra.mxu0 %v3773_v9  ;;  %4381 = vmatpush1.bf16.msra.mxu1 %v3775_v10  ;;  %v3856_v9 = vld [vmem:[#allocation4 + $0x798] sm:$0xff]  ;;  %v6700_v10 = vmax.f32 %v3558_v0, 0.0  ;;  %v3935_v0 = vld [vmem:[#allocation4 + $0xa10] sm:$0xff] }
 0x5bc   : > { %4218 = vmatprep.subr.bf16.mxu0 %v3782_v11  ;;  %4382 = vmatprep.subr.bf16.mxu1 %v3784_v12  ;;  %v3853_v11 = vld [vmem:[#allocation4 + $0x780] sm:$0xff]  ;;  %v3855_v12 = vld [vmem:[#allocation4 + $0x790] sm:$0xff] }
 0x5bf   : > { %4219 = vmatpush1.bf16.msra.mxu0 %v3781_v60  ;;  %4383 = vmatpush1.bf16.msra.mxu1 %v3783_v13  ;;  %v3862_v60 = vld [vmem:[#allocation4 + $0x7c8] sm:$0xff]  ;;  %v3864_v13 = vld [vmem:[#allocation4 + $0x7d8] sm:$0xff] }
 0x5c0   : > { %4220 = vmatprep.subr.bf16.mxu0 %v3790_v46  ;;  %4384 = vmatprep.subr.bf16.mxu1 %v3792_v53  ;;  %v6704_v46 = vrot.slane %v6700_v10, %v6619_v16  ;;  %v3861_v53 = vld [vmem:[#allocation4 + $0x7c0] sm:$0xff] }
 0x5c3   : > { %4221 = vmatpush1.bf16.msra.mxu0 %v3789_v59  ;;  %4385 = vmatpush1.bf16.msra.mxu1 %v3791_v3  ;;  %v3863_v59 = vld [vmem:[#allocation4 + $0x7d0] sm:$0xff]  ;;  %v3870_v3 = vld [vmem:[#allocation4 + $0x808] sm:$0xff] }
 0x5c4   : > { %4222 = vmatprep.subr.bf16.mxu0 %v3798_v14  ;;  %4386 = vmatprep.subr.bf16.mxu1 %v3800_v15  ;;  %v3872_v14 = vld [vmem:[#allocation4 + $0x818] sm:$0xff]  ;;  %v3595_v15 = vcombine.high %v6704_v46, %v6704_v46 }
 0x5c7   : > { %4223 = vmatpush1.bf16.msra.mxu0 %v3797_v17  ;;  %4387 = vmatpush1.bf16.msra.mxu1 %v3799_v20  ;;  %v6710_v17 = vpack.c.bf16 %v6670_v43, %v6670_v43  ;;  %v3869_v20 = vld [vmem:[#allocation4 + $0x800] sm:$0xff] }
 0x5c8   : > { %4224 = vmatprep.subr.bf16.mxu0 %v3806_v21  ;;  %4388 = vmatprep.subr.bf16.mxu1 %v3808_v23  ;;  %v3871_v21 = vld [vmem:[#allocation4 + $0x810] sm:$0xff]  ;;  %v3878_v23 = vld [vmem:[#allocation4 + $0x848] sm:$0xff]  ;;  %v3877_v43 = vld [vmem:[#allocation4 + $0x840] sm:$0xff] }
 0x5cb   : > { %4225 = vmatpush1.bf16.msra.mxu0 %v3805_v29  ;;  %4389 = vmatpush1.bf16.msra.mxu1 %v3807_v32  ;;  %v3880_v29 = vld [vmem:[#allocation4 + $0x858] sm:$0xff]  ;;  %v6712_v32 = vpack.c.bf16 %v3595_v15, %v3595_v15  ;;  %v3966_v15 = vld [vmem:[#allocation4 + $0xb08] sm:$0xff] }
 0x5cc   : > { %4226 = vmatprep.subr.bf16.mxu0 %v3814_v33  ;;  %4390 = vmatprep.subr.bf16.mxu1 %v3816_v34  ;;  %v3879_v33 = vld [vmem:[#allocation4 + $0x850] sm:$0xff]  ;;  %v3886_v34 = vld [vmem:[#allocation4 + $0x888] sm:$0xff] }
 0x5cf   : > { %4227 = vmatpush1.bf16.msra.mxu0 %v3813_v39  ;;  %4391 = vmatpush1.bf16.msra.mxu1 %v3815_v40  ;;  %v3896_v39 = vld [vmem:[#allocation4 + $0x8d8] sm:$0xff]  ;;  %v3893_v40 = vld [vmem:[#allocation4 + $0x8c0] sm:$0xff] }
 0x5d0   : > { %4228 = vmatprep.subr.bf16.mxu0 %v3822_v22  ;;  %4392 = vmatprep.subr.bf16.mxu1 %v3824_v41  ;;  %v3895_v22 = vld [vmem:[#allocation4 + $0x8d0] sm:$0xff]  ;;  %v3902_v41 = vld [vmem:[#allocation4 + $0x908] sm:$0xff] }
 0x5d3   : > { %4229 = vmatpush1.bf16.msra.mxu0 %v3821_v51  ;;  %4393 = vmatpush1.bf16.msra.mxu1 %v3823_v52  ;;  %v3903_v51 = vld [vmem:[#allocation4 + $0x910] sm:$0xff]  ;;  %v3910_v52 = vld [vmem:[#allocation4 + $0x948] sm:$0xff] }
 0x5d4   : > { %4230 = vmatprep.subr.bf16.mxu0 %v3830_v54  ;;  %4394 = vmatprep.subr.bf16.mxu1 %v3832_v56  ;;  %v3912_v54 = vld [vmem:[#allocation4 + $0x958] sm:$0xff]  ;;  %v3909_v56 = vld [vmem:[#allocation4 + $0x940] sm:$0xff] }
 0x5d7   : > { %4231 = vmatpush1.bf16.msra.mxu0 %v3829_v61  ;;  %4395 = vmatpush1.bf16.msra.mxu1 %v3831_v62  ;;  %v3920_v61 = vld [vmem:[#allocation4 + $0x998] sm:$0xff]  ;;  %v3917_v62 = vld [vmem:[#allocation4 + $0x980] sm:$0xff] }
 0x5d8   : > { %4232 = vmatprep.subr.bf16.mxu0 %v3838_v18  ;;  %4396 = vmatprep.subr.bf16.mxu1 %v3840_v1  ;;  %v3919_v18 = vld [vmem:[#allocation4 + $0x990] sm:$0xff]  ;;  %v3926_v1 = vld [vmem:[#allocation4 + $0x9c8] sm:$0xff] }
 0x5db   : > { %4233 = vmatpush1.bf16.msra.mxu0 %v3837_v4  ;;  %4397 = vmatpush1.bf16.msra.mxu1 %v3839_v5  ;;  %v3927_v4 = vld [vmem:[#allocation4 + $0x9d0] sm:$0xff]  ;;  %v3934_v5 = vld [vmem:[#allocation4 + $0xa08] sm:$0xff] }
 0x5dc   : > { %4234 = vmatprep.subr.bf16.mxu0 %v3846_v6  ;;  %4398 = vmatprep.subr.bf16.mxu1 %v3848_v7  ;;  %v3936_v6 = vld [vmem:[#allocation4 + $0xa18] sm:$0xff]  ;;  %v3933_v7 = vld [vmem:[#allocation4 + $0xa00] sm:$0xff] }
 0x5df   : > { %4235 = vmatpush1.bf16.msra.mxu0 %v3845_v8  ;;  %4399 = vmatpush1.bf16.msra.mxu1 %v3847_v44  ;;  %v3942_v8 = vld [vmem:[#allocation4 + $0xa48] sm:$0xff]  ;;  %v3944_v44 = vld [vmem:[#allocation4 + $0xa58] sm:$0xff] }
 0x5e0   : > { %4236 = vmatprep.subr.bf16.mxu0 %v3854_v57  ;;  %4400 = vmatprep.subr.bf16.mxu1 %v3856_v9  ;;  %v3941_v57 = vld [vmem:[#allocation4 + $0xa40] sm:$0xff]  ;;  %v3943_v9 = vld [vmem:[#allocation4 + $0xa50] sm:$0xff] }
 0x5e3   : > { %4237 = vmatpush1.bf16.msra.mxu0 %v3853_v11  ;;  %4401 = vmatpush1.bf16.msra.mxu1 %v3855_v12  ;;  %v3950_v11 = vld [vmem:[#allocation4 + $0xa88] sm:$0xff]  ;;  %v3952_v12 = vld [vmem:[#allocation4 + $0xa98] sm:$0xff] }
 0x5e4   : > { %4238 = vmatprep.subr.bf16.mxu0 %v3862_v60  ;;  %4402 = vmatprep.subr.bf16.mxu1 %v3864_v13  ;;  %v3949_v60 = vld [vmem:[#allocation4 + $0xa80] sm:$0xff]  ;;  %v3951_v13 = vld [vmem:[#allocation4 + $0xa90] sm:$0xff] }
 0x5e7   : > { %4239 = vmatpush1.bf16.msra.mxu0 %v3861_v53  ;;  %4403 = vmatpush1.bf16.msra.mxu1 %v3863_v59  ;;  %v3958_v53 = vld [vmem:[#allocation4 + $0xac8] sm:$0xff]  ;;  %v3960_v59 = vld [vmem:[#allocation4 + $0xad8] sm:$0xff] }
 0x5e8   : > { %4249 = vmatprep.subr.bf16.mxu0 %v3870_v3  ;;  %4413 = vmatprep.subr.bf16.mxu1 %v3872_v14  ;;  %v3957_v3 = vld [vmem:[#allocation4 + $0xac0] sm:$0xff]  ;;  %v3959_v14 = vld [vmem:[#allocation4 + $0xad0] sm:$0xff] }
 0x5ea   : > { %4241 = vmatmul.mubr.bf16.vlgmr.msra.gmra.mrb[0].mxu0 %v6710_v17  ;;  %4405 = vmatmul.mubr.bf16.vlgmr.msra.gmra.mrb[0].mxu1 %v6710_v17 }
 0x5eb   : > { %4250 = vmatpush1.bf16.msra.mxu0 %v3869_v20  ;;  %4414 = vmatpush1.bf16.msra.mxu1 %v3871_v21  ;;  %v3968_v20 = vld [vmem:[#allocation4 + $0xb18] sm:$0xff]  ;;  %v3965_v21 = vld [vmem:[#allocation4 + $0xb00] sm:$0xff] }
 0x5ec   : > { %4251 = vmatprep.subr.bf16.mxu0 %v3878_v23  ;;  %4415 = vmatprep.subr.bf16.mxu1 %v3880_v29  ;;  %v3967_v23 = vld [vmem:[#allocation4 + $0xb10] sm:$0xff]  ;;  %v3974_v29 = vld [vmem:[#allocation4 + $0xb48] sm:$0xff] }
 0x5ed   : > { %4281 = vmatprep.mubr.bf16.mxu0 %v6712_v32  ;;  %4445 = vmatprep.mubr.bf16.mxu1 %v6712_v32 }
 0x5ef   : > { %4252 = vmatpush1.bf16.msra.mxu0 %v3877_v43  ;;  %4416 = vmatpush1.bf16.msra.mxu1 %v3879_v33  ;;  %v3976_v43 = vld [vmem:[#allocation4 + $0xb58] sm:$0xff]  ;;  %v3973_v33 = vld [vmem:[#allocation4 + $0xb40] sm:$0xff] }
 0x5f0   : > { %4253 = vmatprep.subr.bf16.mxu0 %v3886_v34  ;;  %4417 = vmatprep.subr.bf16.mxu1 %v3888_v36  ;;  %v3975_v34 = vld [vmem:[#allocation4 + $0xb50] sm:$0xff]  ;;  %v3982_v36 = vld [vmem:[#allocation4 + $0xb88] sm:$0xff] }
 0x5f3   : > { %4254 = vmatpush1.bf16.msra.mxu0 %v3885_v30  ;;  %4418 = vmatpush1.bf16.msra.mxu1 %v3887_v37  ;;  %v3984_v30 = vld [vmem:[#allocation4 + $0xb98] sm:$0xff]  ;;  %v3580_v37 = vcombine.high %v6700_v10, %v6700_v10 }
 0x5f4   : > { %4255 = vmatprep.subr.bf16.mxu0 %v3894_v38  ;;  %4419 = vmatprep.subr.bf16.mxu1 %v3896_v39  ;;  %v3981_v38 = vld [vmem:[#allocation4 + $0xb80] sm:$0xff]  ;;  %v3983_v39 = vld [vmem:[#allocation4 + $0xb90] sm:$0xff] }
 0x5f7   : > { %4256 = vmatpush1.bf16.msra.mxu0 %v3893_v40  ;;  %4420 = vmatpush1.bf16.msra.mxu1 %v3895_v22  ;;  %v3990_v40 = vld [vmem:[#allocation4 + $0xbc8] sm:$0xff]  ;;  %v3992_v22 = vld [vmem:[#allocation4 + $0xbd8] sm:$0xff] }
 0x5f8   : > { %4257 = vmatprep.subr.bf16.mxu0 %v3902_v41  ;;  %4421 = vmatprep.subr.bf16.mxu1 %v3904_v49  ;;  %v6721_v41 = vrot.slane %v3580_v37, %v6619_v16  ;;  %v3989_v49 = vld [vmem:[#allocation4 + $0xbc0] sm:$0xff] }
 0x5f9   : > { %v4069_v37 = vld [vmem:[#allocation4 + $0xe40] sm:$0xff] }
 0x5fa   : > { %v3596_v10 = vcombine.high %v6721_v41, %v6721_v41 }
 0x5fb   : > { %4258 = vmatpush1.bf16.msra.mxu0 %v3901_v42  ;;  %4422 = vmatpush1.bf16.msra.mxu1 %v3903_v51  ;;  %v3991_v42 = vld [vmem:[#allocation4 + $0xbd0] sm:$0xff]  ;;  %v3998_v51 = vld [vmem:[#allocation4 + $0xc08] sm:$0xff] }
 0x5fc   : > { %4259 = vmatprep.subr.bf16.mxu0 %v3910_v52  ;;  %4423 = vmatprep.subr.bf16.mxu1 %v3912_v54  ;;  %v4000_v52 = vld [vmem:[#allocation4 + $0xc18] sm:$0xff]  ;;  %v6727_v54 = vpack.c.bf16 %v6704_v46, %v6704_v46  ;;  %v4005_v46 = vld [vmem:[#allocation4 + $0xc40] sm:$0xff] }
 0x5ff   : > { %4260 = vmatpush1.bf16.msra.mxu0 %v3909_v56  ;;  %4424 = vmatpush1.bf16.msra.mxu1 %v3911_v50  ;;  %v3997_v56 = vld [vmem:[#allocation4 + $0xc00] sm:$0xff]  ;;  %v3999_v50 = vld [vmem:[#allocation4 + $0xc10] sm:$0xff] }
 0x600   : > { %4261 = vmatprep.subr.bf16.mxu0 %v3918_v58  ;;  %4425 = vmatprep.subr.bf16.mxu1 %v3920_v61  ;;  %v4006_v58 = vld [vmem:[#allocation4 + $0xc48] sm:$0xff]  ;;  %v4008_v61 = vld [vmem:[#allocation4 + $0xc58] sm:$0xff] }
 0x603   : > { %4262 = vmatpush1.bf16.msra.mxu0 %v3917_v62  ;;  %4426 = vmatpush1.bf16.msra.mxu1 %v3919_v18  ;;  %v6729_v62 = vpack.c.bf16 %v3596_v10, %v3596_v10  ;;  %v4007_v18 = vld [vmem:[#allocation4 + $0xc50] sm:$0xff] }
 0x604   : > { %4263 = vmatprep.subr.bf16.mxu0 %v3926_v1  ;;  %4427 = vmatprep.subr.bf16.mxu1 %v3928_v35  ;;  %v4014_v1 = vld [vmem:[#allocation4 + $0xc88] sm:$0xff]  ;;  %v4016_v35 = vld [vmem:[#allocation4 + $0xc98] sm:$0xff]  ;;  %v4087_v10 = vld [vmem:[#allocation4 + $0xed0] sm:$0xff] }
 0x607   : > { %4264 = vmatpush1.bf16.msra.mxu0 %v3925_v2  ;;  %4428 = vmatpush1.bf16.msra.mxu1 %v3927_v4  ;;  %v4013_v2 = vld [vmem:[#allocation4 + $0xc80] sm:$0xff]  ;;  %v4015_v4 = vld [vmem:[#allocation4 + $0xc90] sm:$0xff] }
 0x608   : > { %4265 = vmatprep.subr.bf16.mxu0 %v3934_v5  ;;  %4429 = vmatprep.subr.bf16.mxu1 %v3936_v6  ;;  %v4022_v5 = vld [vmem:[#allocation4 + $0xcc8] sm:$0xff]  ;;  %v4024_v6 = vld [vmem:[#allocation4 + $0xcd8] sm:$0xff] }
 0x60b   : > { %4266 = vmatpush1.bf16.msra.mxu0 %v3933_v7  ;;  %4430 = vmatpush1.bf16.msra.mxu1 %v3935_v0  ;;  %v4021_v7 = vld [vmem:[#allocation4 + $0xcc0] sm:$0xff]  ;;  %v4023_v0 = vld [vmem:[#allocation4 + $0xcd0] sm:$0xff] }
 0x60c   : > { %4267 = vmatprep.subr.bf16.mxu0 %v3942_v8  ;;  %4431 = vmatprep.subr.bf16.mxu1 %v3944_v44  ;;  %v4030_v8 = vld [vmem:[#allocation4 + $0xd08] sm:$0xff]  ;;  %v4032_v44 = vld [vmem:[#allocation4 + $0xd18] sm:$0xff] }
 0x60f   : > { %4268 = vmatpush1.bf16.msra.mxu0 %v3941_v57  ;;  %4432 = vmatpush1.bf16.msra.mxu1 %v3943_v9  ;;  %v4029_v57 = vld [vmem:[#allocation4 + $0xd00] sm:$0xff]  ;;  %v4031_v9 = vld [vmem:[#allocation4 + $0xd10] sm:$0xff] }
 0x610   : > { %4269 = vmatprep.subr.bf16.mxu0 %v3950_v11  ;;  %4433 = vmatprep.subr.bf16.mxu1 %v3952_v12  ;;  %v4038_v11 = vld [vmem:[#allocation4 + $0xd48] sm:$0xff]  ;;  %v4040_v12 = vld [vmem:[#allocation4 + $0xd58] sm:$0xff] }
 0x613   : > { %4270 = vmatpush1.bf16.msra.mxu0 %v3949_v60  ;;  %4434 = vmatpush1.bf16.msra.mxu1 %v3951_v13  ;;  %v4037_v60 = vld [vmem:[#allocation4 + $0xd40] sm:$0xff]  ;;  %v4039_v13 = vld [vmem:[#allocation4 + $0xd50] sm:$0xff] }
 0x614   : > { %4271 = vmatprep.subr.bf16.mxu0 %v3958_v53  ;;  %4435 = vmatprep.subr.bf16.mxu1 %v3960_v59  ;;  %v4046_v53 = vld [vmem:[#allocation4 + $0xd88] sm:$0xff]  ;;  %v4048_v59 = vld [vmem:[#allocation4 + $0xd98] sm:$0xff] }
 0x617   : > { %4272 = vmatpush1.bf16.msra.mxu0 %v3957_v3  ;;  %4436 = vmatpush1.bf16.msra.mxu1 %v3959_v14  ;;  %v4045_v3 = vld [vmem:[#allocation4 + $0xd80] sm:$0xff]  ;;  %v4047_v14 = vld [vmem:[#allocation4 + $0xd90] sm:$0xff] }
 0x618   : > { %4273 = vmatprep.subr.bf16.mxu0 %v3966_v15  ;;  %4437 = vmatprep.subr.bf16.mxu1 %v3968_v20  ;;  %v4054_v15 = vld [vmem:[#allocation4 + $0xdc8] sm:$0xff]  ;;  %v4056_v20 = vld [vmem:[#allocation4 + $0xdd8] sm:$0xff] }
 0x61b   : > { %4274 = vmatpush1.bf16.msra.mxu0 %v3965_v21  ;;  %4438 = vmatpush1.bf16.msra.mxu1 %v3967_v23  ;;  %v4053_v21 = vld [vmem:[#allocation4 + $0xdc0] sm:$0xff]  ;;  %v4055_v23 = vld [vmem:[#allocation4 + $0xdd0] sm:$0xff] }
 0x61c   : > { %4275 = vmatprep.subr.bf16.mxu0 %v3974_v29  ;;  %4439 = vmatprep.subr.bf16.mxu1 %v3976_v43  ;;  %v4062_v29 = vld [vmem:[#allocation4 + $0xe08] sm:$0xff]  ;;  %v4064_v43 = vld [vmem:[#allocation4 + $0xe18] sm:$0xff] }
 0x61f   : > { %4276 = vmatpush1.bf16.msra.mxu0 %v3973_v33  ;;  %4440 = vmatpush1.bf16.msra.mxu1 %v3975_v34  ;;  %v4061_v33 = vld [vmem:[#allocation4 + $0xe00] sm:$0xff]  ;;  %v4063_v34 = vld [vmem:[#allocation4 + $0xe10] sm:$0xff] }
 0x620   : > { %4277 = vmatprep.subr.bf16.mxu0 %v3982_v36  ;;  %4441 = vmatprep.subr.bf16.mxu1 %v3984_v30  ;;  %v4070_v36 = vld [vmem:[#allocation4 + $0xe48] sm:$0xff]  ;;  %v4072_v30 = vld [vmem:[#allocation4 + $0xe58] sm:$0xff] }
 0x623   : > { %4278 = vmatpush1.bf16.msra.mxu0 %v3981_v38  ;;  %4442 = vmatpush1.bf16.msra.mxu1 %v3983_v39  ;;  %v4071_v38 = vld [vmem:[#allocation4 + $0xe50] sm:$0xff]  ;;  %v4078_v39 = vld [vmem:[#allocation4 + $0xe88] sm:$0xff] }
 0x624   : > { %4279 = vmatprep.subr.bf16.mxu0 %v3990_v40  ;;  %4443 = vmatprep.subr.bf16.mxu1 %v3992_v22  ;;  %v4080_v40 = vld [vmem:[#allocation4 + $0xe98] sm:$0xff]  ;;  %v4077_v22 = vld [vmem:[#allocation4 + $0xe80] sm:$0xff] }
 0x627   : > { %4280 = vmatpush1.bf16.msra.mxu0 %v3989_v49  ;;  %4444 = vmatpush1.bf16.msra.mxu1 %v3991_v42  ;;  %v4079_v49 = vld [vmem:[#allocation4 + $0xe90] sm:$0xff]  ;;  %v4086_v42 = vld [vmem:[#allocation4 + $0xec8] sm:$0xff] }
 0x628   : > { %4290 = vmatprep.subr.bf16.mxu0 %v3998_v51  ;;  %4454 = vmatprep.subr.bf16.mxu1 %v4000_v52  ;;  %v4088_v51 = vld [vmem:[#allocation4 + $0xed8] sm:$0xff]  ;;  %v4085_v52 = vld [vmem:[#allocation4 + $0xec0] sm:$0xff] }
 0x62a   : > { %4282 = vmatmul.mubr.bf16.vlgmr.msra.gmra.mrb[0].mxu0 %v6727_v54  ;;  %4446 = vmatmul.mubr.bf16.vlgmr.msra.gmra.mrb[0].mxu1 %v6727_v54 }
 0x62b   : > { %4291 = vmatpush1.bf16.msra.mxu0 %v3997_v56  ;;  %4455 = vmatpush1.bf16.msra.mxu1 %v3999_v50  ;;  %v4094_v56 = vld [vmem:[#allocation4 + $0xf08] sm:$0xff]  ;;  %v4096_v50 = vld [vmem:[#allocation4 + $0xf18] sm:$0xff] }
 0x62c   : > { %4292 = vmatprep.subr.bf16.mxu0 %v4006_v58  ;;  %4456 = vmatprep.subr.bf16.mxu1 %v4008_v61  ;;  %v4093_v58 = vld [vmem:[#allocation4 + $0xf00] sm:$0xff]  ;;  %v4095_v61 = vld [vmem:[#allocation4 + $0xf10] sm:$0xff] }
 0x62d   : > { %4322 = vmatprep.mubr.bf16.mxu0 %v6729_v62  ;;  %4486 = vmatprep.mubr.bf16.mxu1 %v6729_v62 }
 0x62f   : > { %4293 = vmatpush1.bf16.msra.mxu0 %v4005_v46  ;;  %4457 = vmatpush1.bf16.msra.mxu1 %v4007_v18  ;;  %v4102_v46 = vld [vmem:[#allocation4 + $0xf48] sm:$0xff]  ;;  %v4104_v18 = vld [vmem:[#allocation4 + $0xf58] sm:$0xff] }
 0x630   : > { %4294 = vmatprep.subr.bf16.mxu0 %v4014_v1  ;;  %4458 = vmatprep.subr.bf16.mxu1 %v4016_v35  ;;  %v4101_v1 = vld [vmem:[#allocation4 + $0xf40] sm:$0xff]  ;;  %v4103_v35 = vld [vmem:[#allocation4 + $0xf50] sm:$0xff] }
 0x633   : > { %4295 = vmatpush1.bf16.msra.mxu0 %v4013_v2  ;;  %4459 = vmatpush1.bf16.msra.mxu1 %v4015_v4  ;;  %v4110_v2 = vld [vmem:[#allocation4 + $0xf88] sm:$0xff]  ;;  %v4112_v4 = vld [vmem:[#allocation4 + $0xf98] sm:$0xff] }
 0x634   : > { %4296 = vmatprep.subr.bf16.mxu0 %v4022_v5  ;;  %4460 = vmatprep.subr.bf16.mxu1 %v4024_v6  ;;  %v4109_v5 = vld [vmem:[#allocation4 + $0xf80] sm:$0xff]  ;;  %v4111_v6 = vld [vmem:[#allocation4 + $0xf90] sm:$0xff] }
 0x637   : > { %4297 = vmatpush1.bf16.msra.mxu0 %v4021_v7  ;;  %4461 = vmatpush1.bf16.msra.mxu1 %v4023_v0  ;;  %v4118_v7 = vld [vmem:[#allocation4 + $0xfc8] sm:$0xff]  ;;  %v4120_v0 = vld [vmem:[#allocation4 + $0xfd8] sm:$0xff] }
 0x638   : > { %4298 = vmatprep.subr.bf16.mxu0 %v4030_v8  ;;  %4462 = vmatprep.subr.bf16.mxu1 %v4032_v44  ;;  %v4117_v8 = vld [vmem:[#allocation4 + $0xfc0] sm:$0xff]  ;;  %v4119_v44 = vld [vmem:[#allocation4 + $0xfd0] sm:$0xff] }
 0x63b   : > { %4299 = vmatpush1.bf16.msra.mxu0 %v4029_v57  ;;  %4463 = vmatpush1.bf16.msra.mxu1 %v4031_v9  ;;  %v3618_v57 = vld [vmem:[#allocation4 + $0x28] sm:$0xff]  ;;  %v3620_v9 = vld [vmem:[#allocation4 + $0x38] sm:$0xff] }
 0x63c   : > { %4300 = vmatprep.subr.bf16.mxu0 %v4038_v11  ;;  %4464 = vmatprep.subr.bf16.mxu1 %v4040_v12  ;;  %v6737_v11 = vpack.c.bf16 %v6721_v41, %v6721_v41  ;;  %v3617_v12 = vld [vmem:[#allocation4 + $0x20] sm:$0xff]  ;;  %v3634_v41 = vld [vmem:[#allocation4 + $0xa8] sm:$0xff] }
 0x63f   : > { %4301 = vmatpush1.bf16.msra.mxu0 %v4037_v60  ;;  %4465 = vmatpush1.bf16.msra.mxu1 %v4039_v13  ;;  %v3619_v60 = vld [vmem:[#allocation4 + $0x30] sm:$0xff]  ;;  %v3626_v13 = vld [vmem:[#allocation4 + $0x68] sm:$0xff] }
 0x640   : > { %4302 = vmatprep.subr.bf16.mxu0 %v4046_v53  ;;  %4466 = vmatprep.subr.bf16.mxu1 %v4048_v59  ;;  %v3628_v53 = vld [vmem:[#allocation4 + $0x78] sm:$0xff]  ;;  %v3625_v59 = vld [vmem:[#allocation4 + $0x60] sm:$0xff] }
 0x643   : > { %4303 = vmatpush1.bf16.msra.mxu0 %v4045_v3  ;;  %4467 = vmatpush1.bf16.msra.mxu1 %v4047_v14  ;;  %v3627_v3 = vld [vmem:[#allocation4 + $0x70] sm:$0xff]  ;;  %v3636_v14 = vld [vmem:[#allocation4 + $0xb8] sm:$0xff] }
 0x644   : > { %4304 = vmatprep.subr.bf16.mxu0 %v4054_v15  ;;  %4468 = vmatprep.subr.bf16.mxu1 %v4056_v20  ;;  %v3633_v15 = vld [vmem:[#allocation4 + $0xa0] sm:$0xff]  ;;  %v3635_v20 = vld [vmem:[#allocation4 + $0xb0] sm:$0xff] }
 0x647   : > { %4305 = vmatpush1.bf16.msra.mxu0 %v4053_v21  ;;  %4469 = vmatpush1.bf16.msra.mxu1 %v4055_v23  ;;  %v3642_v21 = vld [vmem:[#allocation4 + $0xe8] sm:$0xff]  ;;  %v3644_v23 = vld [vmem:[#allocation4 + $0xf8] sm:$0xff] }
 0x648   : > { %4306 = vmatprep.subr.bf16.mxu0 %v4062_v29  ;;  %4470 = vmatprep.subr.bf16.mxu1 %v4064_v43  ;;  %v3641_v29 = vld [vmem:[#allocation4 + $0xe0] sm:$0xff]  ;;  %v3643_v43 = vld [vmem:[#allocation4 + $0xf0] sm:$0xff] }
 0x64b   : > { %4307 = vmatpush1.bf16.msra.mxu0 %v4061_v33  ;;  %4471 = vmatpush1.bf16.msra.mxu1 %v4063_v34  ;;  %v3650_v33 = vld [vmem:[#allocation4 + $0x128] sm:$0xff]  ;;  %v3652_v34 = vld [vmem:[#allocation4 + $0x138] sm:$0xff] }
 0x64c   : > { %4308 = vmatprep.subr.bf16.mxu0 %v4070_v36  ;;  %4472 = vmatprep.subr.bf16.mxu1 %v4072_v30  ;;  %v3651_v36 = vld [vmem:[#allocation4 + $0x130] sm:$0xff]  ;;  %v3658_v30 = vld [vmem:[#allocation4 + $0x168] sm:$0xff] }
 0x64f   : > { %4309 = vmatpush1.bf16.msra.mxu0 %v4069_v37  ;;  %4473 = vmatpush1.bf16.msra.mxu1 %v4071_v38  ;;  %v3660_v37 = vld [vmem:[#allocation4 + $0x178] sm:$0xff]  ;;  %v3657_v38 = vld [vmem:[#allocation4 + $0x160] sm:$0xff] }
 0x650   : > { %4310 = vmatprep.subr.bf16.mxu0 %v4078_v39  ;;  %4474 = vmatprep.subr.bf16.mxu1 %v4080_v40  ;;  %v3659_v39 = vld [vmem:[#allocation4 + $0x170] sm:$0xff]  ;;  %v3666_v40 = vld [vmem:[#allocation4 + $0x1a8] sm:$0xff] }
 0x653   : > { %4311 = vmatpush1.bf16.msra.mxu0 %v4077_v22  ;;  %4475 = vmatpush1.bf16.msra.mxu1 %v4079_v49  ;;  %v3668_v22 = vld [vmem:[#allocation4 + $0x1b8] sm:$0xff]  ;;  %v3665_v49 = vld [vmem:[#allocation4 + $0x1a0] sm:$0xff] }
 0x654   : > { %4312 = vmatprep.subr.bf16.mxu0 %v4086_v42  ;;  %4476 = vmatprep.subr.bf16.mxu1 %v4088_v51  ;;  %v3667_v42 = vld [vmem:[#allocation4 + $0x1b0] sm:$0xff]  ;;  %v3674_v51 = vld [vmem:[#allocation4 + $0x1e8] sm:$0xff] }
 0x657   : > { %4313 = vmatpush1.bf16.msra.mxu0 %v4085_v52  ;;  %4477 = vmatpush1.bf16.msra.mxu1 %v4087_v10  ;;  %v3676_v52 = vld [vmem:[#allocation4 + $0x1f8] sm:$0xff]  ;;  %v3673_v10 = vld [vmem:[#allocation4 + $0x1e0] sm:$0xff] }
 0x658   : > { %4314 = vmatprep.subr.bf16.mxu0 %v4094_v56  ;;  %4478 = vmatprep.subr.bf16.mxu1 %v4096_v50  ;;  %v3675_v56 = vld [vmem:[#allocation4 + $0x1f0] sm:$0xff]  ;;  %v3682_v50 = vld [vmem:[#allocation4 + $0x228] sm:$0xff] }
 0x65b   : > { %4315 = vmatpush1.bf16.msra.mxu0 %v4093_v58  ;;  %4479 = vmatpush1.bf16.msra.mxu1 %v4095_v61  ;;  %v3684_v58 = vld [vmem:[#allocation4 + $0x238] sm:$0xff]  ;;  %v3681_v61 = vld [vmem:[#allocation4 + $0x220] sm:$0xff] }
 0x65c   : > { %4316 = vmatprep.subr.bf16.mxu0 %v4102_v46  ;;  %4480 = vmatprep.subr.bf16.mxu1 %v4104_v18  ;;  %v3683_v46 = vld [vmem:[#allocation4 + $0x230] sm:$0xff]  ;;  %v3690_v18 = vld [vmem:[#allocation4 + $0x268] sm:$0xff] }
 0x65f   : > { %4317 = vmatpush1.bf16.msra.mxu0 %v4101_v1  ;;  %4481 = vmatpush1.bf16.msra.mxu1 %v4103_v35  ;;  %v3692_v1 = vld [vmem:[#allocation4 + $0x278] sm:$0xff]  ;;  %v3689_v35 = vld [vmem:[#allocation4 + $0x260] sm:$0xff] }
 0x660   : > { %4318 = vmatprep.subr.bf16.mxu0 %v4110_v2  ;;  %4482 = vmatprep.subr.bf16.mxu1 %v4112_v4  ;;  %v3691_v2 = vld [vmem:[#allocation4 + $0x270] sm:$0xff]  ;;  %v3698_v4 = vld [vmem:[#allocation4 + $0x2a8] sm:$0xff] }
 0x663   : > { %4319 = vmatpush1.bf16.msra.mxu0 %v4109_v5  ;;  %4483 = vmatpush1.bf16.msra.mxu1 %v4111_v6  ;;  %v3700_v5 = vld [vmem:[#allocation4 + $0x2b8] sm:$0xff]  ;;  %v3697_v6 = vld [vmem:[#allocation4 + $0x2a0] sm:$0xff] }
 0x664   : > { %4320 = vmatprep.subr.bf16.mxu0 %v4118_v7  ;;  %4484 = vmatprep.subr.bf16.mxu1 %v4120_v0  ;;  %v3699_v7 = vld [vmem:[#allocation4 + $0x2b0] sm:$0xff]  ;;  %v3706_v0 = vld [vmem:[#allocation4 + $0x2e8] sm:$0xff] }
 0x667   : > { %4321 = vmatpush1.bf16.msra.mxu0 %v4117_v8  ;;  %4485 = vmatpush1.bf16.msra.mxu1 %v4119_v44  ;;  %v3708_v8 = vld [vmem:[#allocation4 + $0x2f8] sm:$0xff]  ;;  %v3705_v44 = vld [vmem:[#allocation4 + $0x2e0] sm:$0xff] }
 0x668   : > { %4495 = vmatprep.subr.bf16.mxu0 %v3618_v57  ;;  %4659 = vmatprep.subr.bf16.mxu1 %v3620_v9  ;;  %v3707_v57 = vld [vmem:[#allocation4 + $0x2f0] sm:$0xff]  ;;  %v3714_v9 = vld [vmem:[#allocation4 + $0x328] sm:$0xff] }
 0x66a   : > { %4323 = vmatmul.mubr.bf16.vlgmr.msra.gmra.mrb[0].mxu0 %v6737_v11  ;;  %4487 = vmatmul.mubr.bf16.vlgmr.msra.gmra.mrb[0].mxu1 %v6737_v11 }
 0x66b   : > { %4496 = vmatpush1.bf16.msra.mxu0 %v3617_v12  ;;  %4660 = vmatpush1.bf16.msra.mxu1 %v3619_v60  ;;  %v3716_v12 = vld [vmem:[#allocation4 + $0x338] sm:$0xff]  ;;  %v3713_v60 = vld [vmem:[#allocation4 + $0x320] sm:$0xff] }
 0x66c   : > { %4497 = vmatprep.subr.bf16.mxu0 %v3626_v13  ;;  %4661 = vmatprep.subr.bf16.mxu1 %v3628_v53  ;;  %v3715_v13 = vld [vmem:[#allocation4 + $0x330] sm:$0xff]  ;;  %v3722_v53 = vld [vmem:[#allocation4 + $0x368] sm:$0xff] }
 0x66d   : > { %4527 = vmatprep.mubr.bf16.mxu0 %v6665_v19  ;;  %4691 = vmatprep.mubr.bf16.mxu1 %v6665_v19  ;;  %v3649_v19 = vld [vmem:[#allocation4 + $0x120] sm:$0xff] }
 0x66f   : > { %4498 = vmatpush1.bf16.msra.mxu0 %v3625_v59  ;;  %4662 = vmatpush1.bf16.msra.mxu1 %v3627_v3  ;;  %v3724_v59 = vld [vmem:[#allocation4 + $0x378] sm:$0xff]  ;;  %v3721_v3 = vld [vmem:[#allocation4 + $0x360] sm:$0xff] }
 0x670   : > { %4499 = vmatprep.subr.bf16.mxu0 %v3634_v41  ;;  %4663 = vmatprep.subr.bf16.mxu1 %v3636_v14  ;;  %v3723_v41 = vld [vmem:[#allocation4 + $0x370] sm:$0xff]  ;;  %v3730_v14 = vld [vmem:[#allocation4 + $0x3a8] sm:$0xff] }
 0x673   : > { %4500 = vmatpush1.bf16.msra.mxu0 %v3633_v15  ;;  %4664 = vmatpush1.bf16.msra.mxu1 %v3635_v20  ;;  %v3732_v15 = vld [vmem:[#allocation4 + $0x3b8] sm:$0xff]  ;;  %v3729_v20 = vld [vmem:[#allocation4 + $0x3a0] sm:$0xff] }
 0x674   : > { %4501 = vmatprep.subr.bf16.mxu0 %v3642_v21  ;;  %4665 = vmatprep.subr.bf16.mxu1 %v3644_v23  ;;  %v3731_v21 = vld [vmem:[#allocation4 + $0x3b0] sm:$0xff]  ;;  %v3738_v23 = vld [vmem:[#allocation4 + $0x3e8] sm:$0xff] }
 0x677   : > { %4502 = vmatpush1.bf16.msra.mxu0 %v3641_v29  ;;  %4666 = vmatpush1.bf16.msra.mxu1 %v3643_v43  ;;  %v3740_v29 = vld [vmem:[#allocation4 + $0x3f8] sm:$0xff]  ;;  %v3737_v43 = vld [vmem:[#allocation4 + $0x3e0] sm:$0xff] }
 0x678   : > { %4503 = vmatprep.subr.bf16.mxu0 %v3650_v33  ;;  %4667 = vmatprep.subr.bf16.mxu1 %v3652_v34  ;;  %v3739_v33 = vld [vmem:[#allocation4 + $0x3f0] sm:$0xff]  ;;  %v3746_v34 = vld [vmem:[#allocation4 + $0x428] sm:$0xff] }
 0x67b   : > { %4504 = vmatpush1.bf16.msra.mxu0 %v3649_v19  ;;  %4668 = vmatpush1.bf16.msra.mxu1 %v3651_v36  ;;  %v3748_v19 = vld [vmem:[#allocation4 + $0x438] sm:$0xff]  ;;  %v3745_v36 = vld [vmem:[#allocation4 + $0x420] sm:$0xff] }
 0x67c   : > { %4505 = vmatprep.subr.bf16.mxu0 %v3658_v30  ;;  %4669 = vmatprep.subr.bf16.mxu1 %v3660_v37  ;;  %v3747_v30 = vld [vmem:[#allocation4 + $0x430] sm:$0xff]  ;;  %v3754_v37 = vld [vmem:[#allocation4 + $0x468] sm:$0xff] }
 0x67f   : > { %4506 = vmatpush1.bf16.msra.mxu0 %v3657_v38  ;;  %4670 = vmatpush1.bf16.msra.mxu1 %v3659_v39  ;;  %v3756_v38 = vld [vmem:[#allocation4 + $0x478] sm:$0xff]  ;;  %v3753_v39 = vld [vmem:[#allocation4 + $0x460] sm:$0xff] }
 0x680   : > { %4507 = vmatprep.subr.bf16.mxu0 %v3666_v40  ;;  %4671 = vmatprep.subr.bf16.mxu1 %v3668_v22  ;;  %v3755_v40 = vld [vmem:[#allocation4 + $0x470] sm:$0xff]  ;;  %v3762_v22 = vld [vmem:[#allocation4 + $0x4a8] sm:$0xff] }
 0x683   : > { %4508 = vmatpush1.bf16.msra.mxu0 %v3665_v49  ;;  %4672 = vmatpush1.bf16.msra.mxu1 %v3667_v42  ;;  %v3764_v49 = vld [vmem:[#allocation4 + $0x4b8] sm:$0xff]  ;;  %v3761_v42 = vld [vmem:[#allocation4 + $0x4a0] sm:$0xff] }
 0x684   : > { %4509 = vmatprep.subr.bf16.mxu0 %v3674_v51  ;;  %4673 = vmatprep.subr.bf16.mxu1 %v3676_v52  ;;  %v3763_v51 = vld [vmem:[#allocation4 + $0x4b0] sm:$0xff]  ;;  %v3770_v52 = vld [vmem:[#allocation4 + $0x4e8] sm:$0xff] }
 0x687   : > { %4510 = vmatpush1.bf16.msra.mxu0 %v3673_v10  ;;  %4674 = vmatpush1.bf16.msra.mxu1 %v3675_v56  ;;  %v3769_v10 = vld [vmem:[#allocation4 + $0x4e0] sm:$0xff]  ;;  %v3771_v56 = vld [vmem:[#allocation4 + $0x4f0] sm:$0xff] }
 0x688   : > { %4511 = vmatprep.subr.bf16.mxu0 %v3682_v50  ;;  %4675 = vmatprep.subr.bf16.mxu1 %v3684_v58  ;;  %v3778_v50 = vld [vmem:[#allocation4 + $0x528] sm:$0xff]  ;;  %v3780_v58 = vld [vmem:[#allocation4 + $0x538] sm:$0xff] }
 0x68b   : > { %4512 = vmatpush1.bf16.msra.mxu0 %v3681_v61  ;;  %4676 = vmatpush1.bf16.msra.mxu1 %v3683_v46  ;;  %v3779_v61 = vld [vmem:[#allocation4 + $0x530] sm:$0xff]  ;;  %v3786_v46 = vld [vmem:[#allocation4 + $0x568] sm:$0xff] }
 0x68c   : > { %4513 = vmatprep.subr.bf16.mxu0 %v3690_v18  ;;  %4677 = vmatprep.subr.bf16.mxu1 %v3692_v1  ;;  %v3788_v18 = vld [vmem:[#allocation4 + $0x578] sm:$0xff]  ;;  %v3785_v1 = vld [vmem:[#allocation4 + $0x560] sm:$0xff] }
 0x68f   : > { %4514 = vmatpush1.bf16.msra.mxu0 %v3689_v35  ;;  %4678 = vmatpush1.bf16.msra.mxu1 %v3691_v2  ;;  %v3787_v35 = vld [vmem:[#allocation4 + $0x570] sm:$0xff]  ;;  %v3794_v2 = vld [vmem:[#allocation4 + $0x5a8] sm:$0xff] }
 0x690   : > { %4515 = vmatprep.subr.bf16.mxu0 %v3698_v4  ;;  %4679 = vmatprep.subr.bf16.mxu1 %v3700_v5  ;;  %v3796_v4 = vld [vmem:[#allocation4 + $0x5b8] sm:$0xff]  ;;  %v3793_v5 = vld [vmem:[#allocation4 + $0x5a0] sm:$0xff] }
 0x693   : > { %4516 = vmatpush1.bf16.msra.mxu0 %v3697_v6  ;;  %4680 = vmatpush1.bf16.msra.mxu1 %v3699_v7  ;;  %v3795_v6 = vld [vmem:[#allocation4 + $0x5b0] sm:$0xff]  ;;  %v3802_v7 = vld [vmem:[#allocation4 + $0x5e8] sm:$0xff] }
 0x694   : > { %4517 = vmatprep.subr.bf16.mxu0 %v3706_v0  ;;  %4681 = vmatprep.subr.bf16.mxu1 %v3708_v8  ;;  %v3804_v0 = vld [vmem:[#allocation4 + $0x5f8] sm:$0xff]  ;;  %v3801_v8 = vld [vmem:[#allocation4 + $0x5e0] sm:$0xff] }
 0x697   : > { %4518 = vmatpush1.bf16.msra.mxu0 %v3705_v44  ;;  %4682 = vmatpush1.bf16.msra.mxu1 %v3707_v57  ;;  %v3803_v44 = vld [vmem:[#allocation4 + $0x5f0] sm:$0xff]  ;;  %v3810_v57 = vld [vmem:[#allocation4 + $0x628] sm:$0xff] }
 0x698   : > { %4519 = vmatprep.subr.bf16.mxu0 %v3714_v9  ;;  %4683 = vmatprep.subr.bf16.mxu1 %v3716_v12  ;;  %v3812_v9 = vld [vmem:[#allocation4 + $0x638] sm:$0xff]  ;;  %v3809_v12 = vld [vmem:[#allocation4 + $0x620] sm:$0xff] }
 0x69b   : > { %4520 = vmatpush1.bf16.msra.mxu0 %v3713_v60  ;;  %4684 = vmatpush1.bf16.msra.mxu1 %v3715_v13  ;;  %v3811_v60 = vld [vmem:[#allocation4 + $0x630] sm:$0xff]  ;;  %v3818_v13 = vld [vmem:[#allocation4 + $0x668] sm:$0xff] }
 0x69c   : > { %4521 = vmatprep.subr.bf16.mxu0 %v3722_v53  ;;  %4685 = vmatprep.subr.bf16.mxu1 %v3724_v59  ;;  %v3820_v53 = vld [vmem:[#allocation4 + $0x678] sm:$0xff]  ;;  %v3817_v59 = vld [vmem:[#allocation4 + $0x660] sm:$0xff] }
 0x69f   : > { %4522 = vmatpush1.bf16.msra.mxu0 %v3721_v3  ;;  %4686 = vmatpush1.bf16.msra.mxu1 %v3723_v41  ;;  %v3819_v3 = vld [vmem:[#allocation4 + $0x670] sm:$0xff]  ;;  %v3826_v41 = vld [vmem:[#allocation4 + $0x6a8] sm:$0xff] }
 0x6a0   : > { %4523 = vmatprep.subr.bf16.mxu0 %v3730_v14  ;;  %4687 = vmatprep.subr.bf16.mxu1 %v3732_v15  ;;  %v3828_v14 = vld [vmem:[#allocation4 + $0x6b8] sm:$0xff]  ;;  %v3825_v15 = vld [vmem:[#allocation4 + $0x6a0] sm:$0xff] }
 0x6a3   : > { %4524 = vmatpush1.bf16.msra.mxu0 %v3729_v20  ;;  %4688 = vmatpush1.bf16.msra.mxu1 %v3731_v21  ;;  %v3827_v20 = vld [vmem:[#allocation4 + $0x6b0] sm:$0xff]  ;;  %v3834_v21 = vld [vmem:[#allocation4 + $0x6e8] sm:$0xff] }
 0x6a4   : > { %4525 = vmatprep.subr.bf16.mxu0 %v3738_v23  ;;  %4689 = vmatprep.subr.bf16.mxu1 %v3740_v29  ;;  %v3836_v23 = vld [vmem:[#allocation4 + $0x6f8] sm:$0xff]  ;;  %v3833_v29 = vld [vmem:[#allocation4 + $0x6e0] sm:$0xff] }
 0x6a7   : > { %4526 = vmatpush1.bf16.msra.mxu0 %v3737_v43  ;;  %4690 = vmatpush1.bf16.msra.mxu1 %v3739_v33  ;;  %v3835_v43 = vld [vmem:[#allocation4 + $0x6f0] sm:$0xff]  ;;  %v3842_v33 = vld [vmem:[#allocation4 + $0x728] sm:$0xff] }
 0x6a8   : > { %4536 = vmatprep.subr.bf16.mxu0 %v3746_v34  ;;  %4700 = vmatprep.subr.bf16.mxu1 %v3748_v19  ;;  %v3844_v34 = vld [vmem:[#allocation4 + $0x738] sm:$0xff]  ;;  %v3841_v19 = vld [vmem:[#allocation4 + $0x720] sm:$0xff] }
 0x6aa   : > { %4528 = vmatmul.mubr.bf16.vlgmr.msra.gmra.mrb[4].mxu0 %v6674_v55  ;;  %4692 = vmatmul.mubr.bf16.vlgmr.msra.gmra.mrb[4].mxu1 %v6674_v55  ;;  %v3772_v55 = vld [vmem:[#allocation4 + $0x4f8] sm:$0xff] }
 0x6ab   : > { %4537 = vmatpush1.bf16.msra.mxu0 %v3745_v36  ;;  %4701 = vmatpush1.bf16.msra.mxu1 %v3747_v30  ;;  %v3843_v36 = vld [vmem:[#allocation4 + $0x730] sm:$0xff]  ;;  %v3850_v30 = vld [vmem:[#allocation4 + $0x768] sm:$0xff] }
 0x6ac   : > { %4538 = vmatprep.subr.bf16.mxu0 %v3754_v37  ;;  %4702 = vmatprep.subr.bf16.mxu1 %v3756_v38  ;;  %v3852_v37 = vld [vmem:[#allocation4 + $0x778] sm:$0xff]  ;;  %v3849_v38 = vld [vmem:[#allocation4 + $0x760] sm:$0xff] }
 0x6ad   : > { %4568 = vmatprep.mubr.bf16.mxu0 %v6676_v63  ;;  %4732 = vmatprep.mubr.bf16.mxu1 %v6676_v63  ;;  %v3777_v63 = vld [vmem:[#allocation4 + $0x520] sm:$0xff] }
 0x6af   : > { %4539 = vmatpush1.bf16.msra.mxu0 %v3753_v39  ;;  %4703 = vmatpush1.bf16.msra.mxu1 %v3755_v40  ;;  %v3851_v39 = vld [vmem:[#allocation4 + $0x770] sm:$0xff]  ;;  %v3858_v40 = vld [vmem:[#allocation4 + $0x7a8] sm:$0xff] }
 0x6b0   : > { %4540 = vmatprep.subr.bf16.mxu0 %v3762_v22  ;;  %4704 = vmatprep.subr.bf16.mxu1 %v3764_v49  ;;  %v3860_v22 = vld [vmem:[#allocation4 + $0x7b8] sm:$0xff]  ;;  %v3857_v49 = vld [vmem:[#allocation4 + $0x7a0] sm:$0xff] }
 0x6b3   : > { %4541 = vmatpush1.bf16.msra.mxu0 %v3761_v42  ;;  %4705 = vmatpush1.bf16.msra.mxu1 %v3763_v51  ;;  %v3859_v42 = vld [vmem:[#allocation4 + $0x7b0] sm:$0xff]  ;;  %v3866_v51 = vld [vmem:[#allocation4 + $0x7e8] sm:$0xff] }
 0x6b4   : > { %4542 = vmatprep.subr.bf16.mxu0 %v3770_v52  ;;  %4706 = vmatprep.subr.bf16.mxu1 %v3772_v55  ;;  %v3868_v52 = vld [vmem:[#allocation4 + $0x7f8] sm:$0xff]  ;;  %v3865_v55 = vld [vmem:[#allocation4 + $0x7e0] sm:$0xff] }
 0x6b7   : > { %4543 = vmatpush1.bf16.msra.mxu0 %v3769_v10  ;;  %4707 = vmatpush1.bf16.msra.mxu1 %v3771_v56  ;;  %v3867_v10 = vld [vmem:[#allocation4 + $0x7f0] sm:$0xff]  ;;  %v3874_v56 = vld [vmem:[#allocation4 + $0x828] sm:$0xff] }
 0x6b8   : > { %4544 = vmatprep.subr.bf16.mxu0 %v3778_v50  ;;  %4708 = vmatprep.subr.bf16.mxu1 %v3780_v58  ;;  %v3876_v50 = vld [vmem:[#allocation4 + $0x838] sm:$0xff]  ;;  %v3873_v58 = vld [vmem:[#allocation4 + $0x820] sm:$0xff] }
 0x6bb   : > { %4545 = vmatpush1.bf16.msra.mxu0 %v3777_v63  ;;  %4709 = vmatpush1.bf16.msra.mxu1 %v3779_v61  ;;  %v3875_v63 = vld [vmem:[#allocation4 + $0x830] sm:$0xff]  ;;  %v3882_v61 = vld [vmem:[#allocation4 + $0x868] sm:$0xff] }
 0x6bc   : > { %4546 = vmatprep.subr.bf16.mxu0 %v3786_v46  ;;  %4710 = vmatprep.subr.bf16.mxu1 %v3788_v18  ;;  %v3884_v46 = vld [vmem:[#allocation4 + $0x878] sm:$0xff]  ;;  %v3881_v18 = vld [vmem:[#allocation4 + $0x860] sm:$0xff] }
 0x6bf   : > { %4547 = vmatpush1.bf16.msra.mxu0 %v3785_v1  ;;  %4711 = vmatpush1.bf16.msra.mxu1 %v3787_v35  ;;  %v3883_v1 = vld [vmem:[#allocation4 + $0x870] sm:$0xff]  ;;  %v3890_v35 = vld [vmem:[#allocation4 + $0x8a8] sm:$0xff] }
 0x6c0   : > { %4548 = vmatprep.subr.bf16.mxu0 %v3794_v2  ;;  %4712 = vmatprep.subr.bf16.mxu1 %v3796_v4  ;;  %v3892_v2 = vld [vmem:[#allocation4 + $0x8b8] sm:$0xff]  ;;  %v3889_v4 = vld [vmem:[#allocation4 + $0x8a0] sm:$0xff] }
 0x6c3   : > { %4549 = vmatpush1.bf16.msra.mxu0 %v3793_v5  ;;  %4713 = vmatpush1.bf16.msra.mxu1 %v3795_v6  ;;  %v3891_v5 = vld [vmem:[#allocation4 + $0x8b0] sm:$0xff]  ;;  %v3898_v6 = vld [vmem:[#allocation4 + $0x8e8] sm:$0xff] }
 0x6c4   : > { %4550 = vmatprep.subr.bf16.mxu0 %v3802_v7  ;;  %4714 = vmatprep.subr.bf16.mxu1 %v3804_v0  ;;  %v3897_v7 = vld [vmem:[#allocation4 + $0x8e0] sm:$0xff]  ;;  %v3899_v0 = vld [vmem:[#allocation4 + $0x8f0] sm:$0xff] }
 0x6c7   : > { %4551 = vmatpush1.bf16.msra.mxu0 %v3801_v8  ;;  %4715 = vmatpush1.bf16.msra.mxu1 %v3803_v44  ;;  %v3906_v8 = vld [vmem:[#allocation4 + $0x928] sm:$0xff]  ;;  %v3908_v44 = vld [vmem:[#allocation4 + $0x938] sm:$0xff] }
 0x6c8   : > { %4552 = vmatprep.subr.bf16.mxu0 %v3810_v57  ;;  %4716 = vmatprep.subr.bf16.mxu1 %v3812_v9  ;;  %v3907_v57 = vld [vmem:[#allocation4 + $0x930] sm:$0xff]  ;;  %v3914_v9 = vld [vmem:[#allocation4 + $0x968] sm:$0xff] }
 0x6cb   : > { %4553 = vmatpush1.bf16.msra.mxu0 %v3809_v12  ;;  %4717 = vmatpush1.bf16.msra.mxu1 %v3811_v60  ;;  %v3916_v12 = vld [vmem:[#allocation4 + $0x978] sm:$0xff]  ;;  %v3913_v60 = vld [vmem:[#allocation4 + $0x960] sm:$0xff] }
 0x6cc   : > { %4554 = vmatprep.subr.bf16.mxu0 %v3818_v13  ;;  %4718 = vmatprep.subr.bf16.mxu1 %v3820_v53  ;;  %v3915_v13 = vld [vmem:[#allocation4 + $0x970] sm:$0xff]  ;;  %v3922_v53 = vld [vmem:[#allocation4 + $0x9a8] sm:$0xff] }
 0x6cf   : > { %4555 = vmatpush1.bf16.msra.mxu0 %v3817_v59  ;;  %4719 = vmatpush1.bf16.msra.mxu1 %v3819_v3  ;;  %v3924_v59 = vld [vmem:[#allocation4 + $0x9b8] sm:$0xff]  ;;  %v3921_v3 = vld [vmem:[#allocation4 + $0x9a0] sm:$0xff] }
 0x6d0   : > { %4556 = vmatprep.subr.bf16.mxu0 %v3826_v41  ;;  %4720 = vmatprep.subr.bf16.mxu1 %v3828_v14  ;;  %v3923_v41 = vld [vmem:[#allocation4 + $0x9b0] sm:$0xff]  ;;  %v3930_v14 = vld [vmem:[#allocation4 + $0x9e8] sm:$0xff] }
 0x6d3   : > { %4557 = vmatpush1.bf16.msra.mxu0 %v3825_v15  ;;  %4721 = vmatpush1.bf16.msra.mxu1 %v3827_v20  ;;  %v3932_v15 = vld [vmem:[#allocation4 + $0x9f8] sm:$0xff]  ;;  %v3929_v20 = vld [vmem:[#allocation4 + $0x9e0] sm:$0xff] }
 0x6d4   : > { %4558 = vmatprep.subr.bf16.mxu0 %v3834_v21  ;;  %4722 = vmatprep.subr.bf16.mxu1 %v3836_v23  ;;  %v3931_v21 = vld [vmem:[#allocation4 + $0x9f0] sm:$0xff]  ;;  %v3938_v23 = vld [vmem:[#allocation4 + $0xa28] sm:$0xff] }
 0x6d7   : > { %4559 = vmatpush1.bf16.msra.mxu0 %v3833_v29  ;;  %4723 = vmatpush1.bf16.msra.mxu1 %v3835_v43  ;;  %v3940_v29 = vld [vmem:[#allocation4 + $0xa38] sm:$0xff]  ;;  %v3937_v43 = vld [vmem:[#allocation4 + $0xa20] sm:$0xff] }
 0x6d8   : > { %4560 = vmatprep.subr.bf16.mxu0 %v3842_v33  ;;  %4724 = vmatprep.subr.bf16.mxu1 %v3844_v34  ;;  %v3939_v33 = vld [vmem:[#allocation4 + $0xa30] sm:$0xff]  ;;  %v3946_v34 = vld [vmem:[#allocation4 + $0xa68] sm:$0xff] }
 0x6db   : > { %4561 = vmatpush1.bf16.msra.mxu0 %v3841_v19  ;;  %4725 = vmatpush1.bf16.msra.mxu1 %v3843_v36  ;;  %v3948_v19 = vld [vmem:[#allocation4 + $0xa78] sm:$0xff]  ;;  %v3945_v36 = vld [vmem:[#allocation4 + $0xa60] sm:$0xff] }
 0x6dc   : > { %4562 = vmatprep.subr.bf16.mxu0 %v3850_v30  ;;  %4726 = vmatprep.subr.bf16.mxu1 %v3852_v37  ;;  %v3947_v30 = vld [vmem:[#allocation4 + $0xa70] sm:$0xff]  ;;  %v3954_v37 = vld [vmem:[#allocation4 + $0xaa8] sm:$0xff] }
 0x6df   : > { %4563 = vmatpush1.bf16.msra.mxu0 %v3849_v38  ;;  %4727 = vmatpush1.bf16.msra.mxu1 %v3851_v39  ;;  %v3956_v38 = vld [vmem:[#allocation4 + $0xab8] sm:$0xff]  ;;  %v3953_v39 = vld [vmem:[#allocation4 + $0xaa0] sm:$0xff] }
 0x6e0   : > { %4564 = vmatprep.subr.bf16.mxu0 %v3858_v40  ;;  %4728 = vmatprep.subr.bf16.mxu1 %v3860_v22  ;;  %v3955_v40 = vld [vmem:[#allocation4 + $0xab0] sm:$0xff]  ;;  %v3962_v22 = vld [vmem:[#allocation4 + $0xae8] sm:$0xff] }
 0x6e3   : > { %4565 = vmatpush1.bf16.msra.mxu0 %v3857_v49  ;;  %4729 = vmatpush1.bf16.msra.mxu1 %v3859_v42  ;;  %v3964_v49 = vld [vmem:[#allocation4 + $0xaf8] sm:$0xff]  ;;  %v3961_v42 = vld [vmem:[#allocation4 + $0xae0] sm:$0xff] }
 0x6e4   : > { %4566 = vmatprep.subr.bf16.mxu0 %v3866_v51  ;;  %4730 = vmatprep.subr.bf16.mxu1 %v3868_v52  ;;  %v3963_v51 = vld [vmem:[#allocation4 + $0xaf0] sm:$0xff]  ;;  %v3970_v52 = vld [vmem:[#allocation4 + $0xb28] sm:$0xff] }
 0x6e7   : > { %4567 = vmatpush1.bf16.msra.mxu0 %v3865_v55  ;;  %4731 = vmatpush1.bf16.msra.mxu1 %v3867_v10  ;;  %v3972_v55 = vld [vmem:[#allocation4 + $0xb38] sm:$0xff]  ;;  %v3969_v10 = vld [vmem:[#allocation4 + $0xb20] sm:$0xff] }
 0x6e8   : > { %4577 = vmatprep.subr.bf16.mxu0 %v3874_v56  ;;  %4741 = vmatprep.subr.bf16.mxu1 %v3876_v50  ;;  %v3971_v56 = vld [vmem:[#allocation4 + $0xb30] sm:$0xff]  ;;  %v3978_v50 = vld [vmem:[#allocation4 + $0xb68] sm:$0xff] }
 0x6ea   : > { %4569 = vmatmul.mubr.bf16.vlgmr.msra.gmra.mrb[4].mxu0 %v6710_v17  ;;  %4733 = vmatmul.mubr.bf16.vlgmr.msra.gmra.mrb[4].mxu1 %v6710_v17  ;;  %v3900_v17 = vld [vmem:[#allocation4 + $0x8f8] sm:$0xff] }
 0x6eb   : > { %4578 = vmatpush1.bf16.msra.mxu0 %v3873_v58  ;;  %4742 = vmatpush1.bf16.msra.mxu1 %v3875_v63  ;;  %v3980_v58 = vld [vmem:[#allocation4 + $0xb78] sm:$0xff]  ;;  %v3977_v63 = vld [vmem:[#allocation4 + $0xb60] sm:$0xff] }
 0x6ec   : > { %4579 = vmatprep.subr.bf16.mxu0 %v3882_v61  ;;  %4743 = vmatprep.subr.bf16.mxu1 %v3884_v46  ;;  %v3979_v61 = vld [vmem:[#allocation4 + $0xb70] sm:$0xff]  ;;  %v3986_v46 = vld [vmem:[#allocation4 + $0xba8] sm:$0xff] }
 0x6ed   : > { %4609 = vmatprep.mubr.bf16.mxu0 %v6712_v32  ;;  %4773 = vmatprep.mubr.bf16.mxu1 %v6712_v32  ;;  %v3905_v32 = vld [vmem:[#allocation4 + $0x920] sm:$0xff] }
 0x6ef   : > { %4580 = vmatpush1.bf16.msra.mxu0 %v3881_v18  ;;  %4744 = vmatpush1.bf16.msra.mxu1 %v3883_v1  ;;  %v3988_v18 = vld [vmem:[#allocation4 + $0xbb8] sm:$0xff]  ;;  %v3985_v1 = vld [vmem:[#allocation4 + $0xba0] sm:$0xff] }
 0x6f0   : > { %4581 = vmatprep.subr.bf16.mxu0 %v3890_v35  ;;  %4745 = vmatprep.subr.bf16.mxu1 %v3892_v2  ;;  %v3987_v35 = vld [vmem:[#allocation4 + $0xbb0] sm:$0xff]  ;;  %v3994_v2 = vld [vmem:[#allocation4 + $0xbe8] sm:$0xff] }
 0x6f3   : > { %4582 = vmatpush1.bf16.msra.mxu0 %v3889_v4  ;;  %4746 = vmatpush1.bf16.msra.mxu1 %v3891_v5  ;;  %v3996_v4 = vld [vmem:[#allocation4 + $0xbf8] sm:$0xff]  ;;  %v3993_v5 = vld [vmem:[#allocation4 + $0xbe0] sm:$0xff] }
 0x6f4   : > { %4583 = vmatprep.subr.bf16.mxu0 %v3898_v6  ;;  %4747 = vmatprep.subr.bf16.mxu1 %v3900_v17  ;;  %v3995_v6 = vld [vmem:[#allocation4 + $0xbf0] sm:$0xff]  ;;  %v4002_v17 = vld [vmem:[#allocation4 + $0xc28] sm:$0xff] }
 0x6f7   : > { %4584 = vmatpush1.bf16.msra.mxu0 %v3897_v7  ;;  %4748 = vmatpush1.bf16.msra.mxu1 %v3899_v0  ;;  %v4004_v7 = vld [vmem:[#allocation4 + $0xc38] sm:$0xff]  ;;  %v4001_v0 = vld [vmem:[#allocation4 + $0xc20] sm:$0xff] }
 0x6f8   : > { %4585 = vmatprep.subr.bf16.mxu0 %v3906_v8  ;;  %4749 = vmatprep.subr.bf16.mxu1 %v3908_v44  ;;  %v4003_v8 = vld [vmem:[#allocation4 + $0xc30] sm:$0xff]  ;;  %v4010_v44 = vld [vmem:[#allocation4 + $0xc68] sm:$0xff] }
 0x6fb   : > { %4586 = vmatpush1.bf16.msra.mxu0 %v3905_v32  ;;  %4750 = vmatpush1.bf16.msra.mxu1 %v3907_v57  ;;  %v4012_v32 = vld [vmem:[#allocation4 + $0xc78] sm:$0xff]  ;;  %v4009_v57 = vld [vmem:[#allocation4 + $0xc60] sm:$0xff] }
 0x6fc   : > { %4587 = vmatprep.subr.bf16.mxu0 %v3914_v9  ;;  %4751 = vmatprep.subr.bf16.mxu1 %v3916_v12  ;;  %v4011_v9 = vld [vmem:[#allocation4 + $0xc70] sm:$0xff]  ;;  %v4018_v12 = vld [vmem:[#allocation4 + $0xca8] sm:$0xff] }
 0x6ff   : > { %4588 = vmatpush1.bf16.msra.mxu0 %v3913_v60  ;;  %4752 = vmatpush1.bf16.msra.mxu1 %v3915_v13  ;;  %v4020_v60 = vld [vmem:[#allocation4 + $0xcb8] sm:$0xff]  ;;  %v4017_v13 = vld [vmem:[#allocation4 + $0xca0] sm:$0xff] }
 0x700   : > { %4589 = vmatprep.subr.bf16.mxu0 %v3922_v53  ;;  %4753 = vmatprep.subr.bf16.mxu1 %v3924_v59  ;;  %v4019_v53 = vld [vmem:[#allocation4 + $0xcb0] sm:$0xff]  ;;  %v4026_v59 = vld [vmem:[#allocation4 + $0xce8] sm:$0xff] }
 0x703   : > { %4590 = vmatpush1.bf16.msra.mxu0 %v3921_v3  ;;  %4754 = vmatpush1.bf16.msra.mxu1 %v3923_v41  ;;  %v4025_v3 = vld [vmem:[#allocation4 + $0xce0] sm:$0xff]  ;;  %v4027_v41 = vld [vmem:[#allocation4 + $0xcf0] sm:$0xff] }
 0x704   : > { %4591 = vmatprep.subr.bf16.mxu0 %v3930_v14  ;;  %4755 = vmatprep.subr.bf16.mxu1 %v3932_v15  ;;  %v4034_v14 = vld [vmem:[#allocation4 + $0xd28] sm:$0xff]  ;;  %v4036_v15 = vld [vmem:[#allocation4 + $0xd38] sm:$0xff] }
 0x707   : > { %4592 = vmatpush1.bf16.msra.mxu0 %v3929_v20  ;;  %4756 = vmatpush1.bf16.msra.mxu1 %v3931_v21  ;;  %v6755_v20 = vld [vmem:[#allocation15] sm:$0xff] }
 0x708   : > { %4593 = vmatprep.subr.bf16.mxu0 %v3938_v23  ;;  %4757 = vmatprep.subr.bf16.mxu1 %v3940_v29  ;;  %v4035_v21 = vld [vmem:[#allocation4 + $0xd30] sm:$0xff]  ;;  %v4042_v23 = vld [vmem:[#allocation4 + $0xd68] sm:$0xff]  ;;  %v4044_v29 = vld [vmem:[#allocation4 + $0xd78] sm:$0xff] }
 0x70b   : > { %4594 = vmatpush1.bf16.msra.mxu0 %v3937_v43  ;;  %4758 = vmatpush1.bf16.msra.mxu1 %v3939_v33  ;;  %v4130_v43 = vrot.slane %v6755_v20, %v3491_v45  ;;  %v4138_v33 = vrot.slane %v6755_v20, %v3499_v48 }
 0x70c   : > { %4595 = vmatprep.subr.bf16.mxu0 %v3946_v34  ;;  %4759 = vmatprep.subr.bf16.mxu1 %v3948_v19  ;;  %v4134_v34 = vrot.slane %v6755_v20, %v3495_v26  ;;  %v4142_v19 = vrot.slane %v6755_v20, %v3503_v31 }
 0x70f   : > { %4596 = vmatpush1.bf16.msra.mxu0 %v3945_v36  ;;  %4760 = vmatpush1.bf16.msra.mxu1 %v3947_v30  ;;  %v4041_v36 = vld [vmem:[#allocation4 + $0xd60] sm:$0xff]  ;;  %v4043_v30 = vld [vmem:[#allocation4 + $0xd70] sm:$0xff] }
 0x710   : > { %4597 = vmatprep.subr.bf16.mxu0 %v3954_v37  ;;  %4761 = vmatprep.subr.bf16.mxu1 %v3956_v38  ;;  %v4050_v38 = vld [vmem:[#allocation4 + $0xda8] sm:$0xff] }
 0x713   : > { %4598 = vmatpush1.bf16.msra.mxu0 %v3953_v39  ;;  %4762 = vmatpush1.bf16.msra.mxu1 %v3955_v40  ;;  %v4052_v39 = vld [vmem:[#allocation4 + $0xdb8] sm:$0xff] }
 0x714   : > { %4599 = vmatprep.subr.bf16.mxu0 %v3962_v22  ;;  %4763 = vmatprep.subr.bf16.mxu1 %v3964_v49 }
 0x717   : > { %4600 = vmatpush1.bf16.msra.mxu0 %v3961_v42  ;;  %4764 = vmatpush1.bf16.msra.mxu1 %v3963_v51 }
 0x718   : > { %4601 = vmatprep.subr.bf16.mxu0 %v3970_v52  ;;  %4765 = vmatprep.subr.bf16.mxu1 %v3972_v55 }
 0x71b   : > { %4602 = vmatpush1.bf16.msra.mxu0 %v3969_v10  ;;  %4766 = vmatpush1.bf16.msra.mxu1 %v3971_v56  ;;  %v4049_v10 = vld [vmem:[#allocation4 + $0xda0] sm:$0xff]  ;;  %v4051_v56 = vld [vmem:[#allocation4 + $0xdb0] sm:$0xff] }
 0x71c   : > { %4603 = vmatprep.subr.bf16.mxu0 %v3978_v50  ;;  %4767 = vmatprep.subr.bf16.mxu1 %v3980_v58 }
 0x71f   : > { %4604 = vmatpush1.bf16.msra.mxu0 %v3977_v63  ;;  %4768 = vmatpush1.bf16.msra.mxu1 %v3979_v61  ;;  %v4058_v63 = vld [vmem:[#allocation4 + $0xde8] sm:$0xff]  ;;  %v4060_v61 = vld [vmem:[#allocation4 + $0xdf8] sm:$0xff] }
 0x720   : > { %4605 = vmatprep.subr.bf16.mxu0 %v3986_v46  ;;  %4769 = vmatprep.subr.bf16.mxu1 %v3988_v18 }
 0x723   : > { %4606 = vmatpush1.bf16.msra.mxu0 %v3985_v1  ;;  %4770 = vmatpush1.bf16.msra.mxu1 %v3987_v35  ;;  %v4057_v1 = vld [vmem:[#allocation4 + $0xde0] sm:$0xff]  ;;  %v4059_v35 = vld [vmem:[#allocation4 + $0xdf0] sm:$0xff] }
 0x724   : > { %4607 = vmatprep.subr.bf16.mxu0 %v3994_v2  ;;  %4771 = vmatprep.subr.bf16.mxu1 %v3996_v4  ;;  %v4066_v4 = vld [vmem:[#allocation4 + $0xe28] sm:$0xff] }
 0x727   : > { %4608 = vmatpush1.bf16.msra.mxu0 %v3993_v5  ;;  %4772 = vmatpush1.bf16.msra.mxu1 %v3995_v6  ;;  %v4068_v5 = vld [vmem:[#allocation4 + $0xe38] sm:$0xff]  ;;  %v4065_v6 = vld [vmem:[#allocation4 + $0xe20] sm:$0xff] }
 0x728   : > { %4618 = vmatprep.subr.bf16.mxu0 %v4002_v17  ;;  %4782 = vmatprep.subr.bf16.mxu1 %v4004_v7  ;;  %v4067_v17 = vld [vmem:[#allocation4 + $0xe30] sm:$0xff]  ;;  %v4074_v7 = vld [vmem:[#allocation4 + $0xe68] sm:$0xff] }
 0x72a   : > { %4610 = vmatmul.mubr.bf16.vlgmr.msra.gmra.mrb[4].mxu0 %v6727_v54  ;;  %4774 = vmatmul.mubr.bf16.vlgmr.msra.gmra.mrb[4].mxu1 %v6727_v54  ;;  %v4028_v54 = vld [vmem:[#allocation4 + $0xcf8] sm:$0xff] }
 0x72b   : > { %4619 = vmatpush1.bf16.msra.mxu0 %v4001_v0  ;;  %4783 = vmatpush1.bf16.msra.mxu1 %v4003_v8  ;;  %v4076_v0 = vld [vmem:[#allocation4 + $0xe78] sm:$0xff]  ;;  %v4073_v8 = vld [vmem:[#allocation4 + $0xe60] sm:$0xff] }
 0x72c   : > { %4620 = vmatprep.subr.bf16.mxu0 %v4010_v44  ;;  %4784 = vmatprep.subr.bf16.mxu1 %v4012_v32  ;;  %v4075_v44 = vld [vmem:[#allocation4 + $0xe70] sm:$0xff]  ;;  %v4082_v32 = vld [vmem:[#allocation4 + $0xea8] sm:$0xff] }
 0x72d   : > { %4650 = vmatprep.mubr.bf16.mxu0 %v6729_v62  ;;  %4814 = vmatprep.mubr.bf16.mxu1 %v6729_v62  ;;  %v4033_v62 = vld [vmem:[#allocation4 + $0xd20] sm:$0xff] }
 0x72f   : > { %4621 = vmatpush1.bf16.msra.mxu0 %v4009_v57  ;;  %4785 = vmatpush1.bf16.msra.mxu1 %v4011_v9  ;;  %v4084_v57 = vld [vmem:[#allocation4 + $0xeb8] sm:$0xff]  ;;  %v4081_v9 = vld [vmem:[#allocation4 + $0xea0] sm:$0xff] }
 0x730   : > { %4622 = vmatprep.subr.bf16.mxu0 %v4018_v12  ;;  %4786 = vmatprep.subr.bf16.mxu1 %v4020_v60  ;;  %v4083_v12 = vld [vmem:[#allocation4 + $0xeb0] sm:$0xff]  ;;  %v4090_v60 = vld [vmem:[#allocation4 + $0xee8] sm:$0xff] }
 0x733   : > { %4623 = vmatpush1.bf16.msra.mxu0 %v4017_v13  ;;  %4787 = vmatpush1.bf16.msra.mxu1 %v4019_v53  ;;  %v4092_v13 = vld [vmem:[#allocation4 + $0xef8] sm:$0xff]  ;;  %v4089_v53 = vld [vmem:[#allocation4 + $0xee0] sm:$0xff] }
 0x734   : > { %4624 = vmatprep.subr.bf16.mxu0 %v4026_v59  ;;  %4788 = vmatprep.subr.bf16.mxu1 %v4028_v54  ;;  %v4091_v59 = vld [vmem:[#allocation4 + $0xef0] sm:$0xff]  ;;  %v4098_v54 = vld [vmem:[#allocation4 + $0xf28] sm:$0xff] }
 0x737   : > { %4625 = vmatpush1.bf16.msra.mxu0 %v4025_v3  ;;  %4789 = vmatpush1.bf16.msra.mxu1 %v4027_v41  ;;  %v4100_v3 = vld [vmem:[#allocation4 + $0xf38] sm:$0xff]  ;;  %v4097_v41 = vld [vmem:[#allocation4 + $0xf20] sm:$0xff] }
 0x738   : > { %4626 = vmatprep.subr.bf16.mxu0 %v4034_v14  ;;  %4790 = vmatprep.subr.bf16.mxu1 %v4036_v15  ;;  %v4099_v14 = vld [vmem:[#allocation4 + $0xf30] sm:$0xff]  ;;  %v4106_v15 = vld [vmem:[#allocation4 + $0xf68] sm:$0xff] }
 0x73b   : > { %4627 = vmatpush1.bf16.msra.mxu0 %v4033_v62  ;;  %4791 = vmatpush1.bf16.msra.mxu1 %v4035_v21  ;;  %v4108_v62 = vld [vmem:[#allocation4 + $0xf78] sm:$0xff]  ;;  %v4105_v21 = vld [vmem:[#allocation4 + $0xf60] sm:$0xff] }
 0x73c   : > { %4628 = vmatprep.subr.bf16.mxu0 %v4042_v23  ;;  %4792 = vmatprep.subr.bf16.mxu1 %v4044_v29  ;;  %v4107_v23 = vld [vmem:[#allocation4 + $0xf70] sm:$0xff]  ;;  %v4114_v29 = vld [vmem:[#allocation4 + $0xfa8] sm:$0xff] }
 0x73d   : > { %v4324_v37 = vpop.f32.mrb[0].mxu0  ;;  %v4488_v45 = vpop.f32.mrb[0].mxu1 }
 0x73e   : > { %v5502_v40 = vadd.f32 %v4324_v37, %v4130_v43  ;;  %v5504_v48 = vadd.f32 %v4488_v45, %v4138_v33  ;;  %v4326_v22 = vpop.f32.mrb[1].mxu0  ;;  %v4490_v49 = vpop.f32.mrb[1].mxu1  ;;  %v4116_v43 = vld [vmem:[#allocation4 + $0xfb8] sm:$0xff]  ;;  %v4113_v33 = vld [vmem:[#allocation4 + $0xfa0] sm:$0xff]  ;;  %v4123_v37 = vld [vmem:[#allocation4 + $0xff0] sm:$0xff]  ;;  %v4146_v45 = vrot.slane %v6755_v20, %v3507_v24 }
 0x73f   : > { %v5503_v42 = vadd.f32 %v4326_v22, %v4134_v34  ;;  %v5505_v51 = vadd.f32 %v4490_v49, %v4142_v19  ;;  %v4328_v52 = vpop.f32.mrb[2].mxu0  ;;  %v4492_v26 = vpop.f32.mrb[2].mxu1  ;;  %4629 = vmatpush1.bf16.msra.mxu0 %v4041_v36  ;;  %4793 = vmatpush1.bf16.msra.mxu1 %v4043_v30  ;;  %v4115_v34 = vld [vmem:[#allocation4 + $0xfb0] sm:$0xff]  ;;  %v4122_v19 = vld [vmem:[#allocation4 + $0xfe8] sm:$0xff]  ;;  %v4124_v36 = vld [vmem:[#allocation4 + $0xff8] sm:$0xff] }
 0x740   : > { %v4329_v55 = vpop.f32.mrb[3].mxu0  ;;  %v4493_v31 = vpop.f32.mrb[3].mxu1  ;;  %4630 = vmatprep.subr.bf16.mxu0 %v4050_v38  ;;  %4794 = vmatprep.subr.bf16.mxu1 %v4052_v39  ;;  %v4121_v30 = vld [vmem:[#allocation4 + $0xfe0] sm:$0xff]  ;;  %v4154_v38 = vrot.slane %v6755_v20, %v3515_v27  ;;  %v4150_v39 = vrot.slane %v6755_v20, %v3511_v25 }
 0x741   : > { %v4831_v50 = vcombine.low %v5502_v40, %v5503_v42  ;;  %v4832_v58 = vcombine.low %v5504_v48, %v5505_v51  ;;  %v4158_v40 = vrot.slane %v6755_v20, %v3519_v28 }
 0x743   : > { %v4839_v46 = vrot.slane %v4831_v50, %v6619_v16  ;;  %v4846_v18 = vrot.slane %v4832_v58, %v6619_v16  ;;  %4631 = vmatpush1.bf16.msra.mxu0 %v4049_v10  ;;  %4795 = vmatpush1.bf16.msra.mxu1 %v4051_v56 }
 0x744   : > { %4632 = vmatprep.subr.bf16.mxu0 %v4058_v63  ;;  %4796 = vmatprep.subr.bf16.mxu1 %v4060_v61 }
 0x745   : > { %v4847_v2 = vcombine.low %v4839_v46, %v4846_v18 }
 0x747   : > { %4867 = vst [vmem:[#allocation17] sm:$0xff] %v4847_v2  ;;  %4633 = vmatpush1.bf16.msra.mxu0 %v4057_v1  ;;  %4797 = vmatpush1.bf16.msra.mxu1 %v4059_v35 }
 0x748   : > { %4634 = vmatprep.subr.bf16.mxu0 %v4066_v4  ;;  %4798 = vmatprep.subr.bf16.mxu1 %v4068_v5 }
 0x74b   : > { %4635 = vmatpush1.bf16.msra.mxu0 %v4065_v6  ;;  %4799 = vmatpush1.bf16.msra.mxu1 %v4067_v17 }
 0x74c   : > { %4636 = vmatprep.subr.bf16.mxu0 %v4074_v7  ;;  %4800 = vmatprep.subr.bf16.mxu1 %v4076_v0 }
 0x74f   : > { %4637 = vmatpush1.bf16.msra.mxu0 %v4073_v8  ;;  %4801 = vmatpush1.bf16.msra.mxu1 %v4075_v44 }
 0x750   : > { %4638 = vmatprep.subr.bf16.mxu0 %v4082_v32  ;;  %4802 = vmatprep.subr.bf16.mxu1 %v4084_v57 }
 0x753   : > { %4639 = vmatpush1.bf16.msra.mxu0 %v4081_v9  ;;  %4803 = vmatpush1.bf16.msra.mxu1 %v4083_v12 }
 0x754   : > { %4640 = vmatprep.subr.bf16.mxu0 %v4090_v60  ;;  %4804 = vmatprep.subr.bf16.mxu1 %v4092_v13 }
 0x757   : > { %4641 = vmatpush1.bf16.msra.mxu0 %v4089_v53  ;;  %4805 = vmatpush1.bf16.msra.mxu1 %v4091_v59 }
 0x758   : > { %4642 = vmatprep.subr.bf16.mxu0 %v4098_v54  ;;  %4806 = vmatprep.subr.bf16.mxu1 %v4100_v3 }
 0x75b   : > { %4643 = vmatpush1.bf16.msra.mxu0 %v4097_v41  ;;  %4807 = vmatpush1.bf16.msra.mxu1 %v4099_v14 }
 0x75c   : > { %4644 = vmatprep.subr.bf16.mxu0 %v4106_v15  ;;  %4808 = vmatprep.subr.bf16.mxu1 %v4108_v62 }
 0x75f   : > { %4645 = vmatpush1.bf16.msra.mxu0 %v4105_v21  ;;  %4809 = vmatpush1.bf16.msra.mxu1 %v4107_v23 }
 0x760   : > { %4646 = vmatprep.subr.bf16.mxu0 %v4114_v29  ;;  %4810 = vmatprep.subr.bf16.mxu1 %v4116_v43 }
 0x763   : > { %4647 = vmatpush1.bf16.msra.mxu0 %v4113_v33  ;;  %4811 = vmatpush1.bf16.msra.mxu1 %v4115_v34 }
 0x764   : > { %4648 = vmatprep.subr.bf16.mxu0 %v4122_v19  ;;  %4812 = vmatprep.subr.bf16.mxu1 %v4124_v36 }
 0x767   : > { %4649 = vmatpush1.bf16.msra.mxu0 %v4121_v30  ;;  %4813 = vmatpush1.bf16.msra.mxu1 %v4123_v37 }
 0x76a   : > { %4651 = vmatmul.mubr.bf16.vlgmr.msra.gmra.mrb[4].mxu0 %v6737_v11  ;;  %4815 = vmatmul.mubr.bf16.vlgmr.msra.gmra.mrb[4].mxu1 %v6737_v11 }
 0x83d   : > { %v4652_v48 = vpop.f32.mrb[4].mxu0  ;;  %v4816_v22 = vpop.f32.mrb[4].mxu1 }
 0x83e   : > { %v5506_v49 = vadd.f32 %v4652_v48, %v4146_v45  ;;  %v5508_v11 = vadd.f32 %v4816_v22, %v4154_v38  ;;  %v4654_v42 = vpop.f32.mrb[5].mxu0  ;;  %v4818_v51 = vpop.f32.mrb[5].mxu1 }
 0x83f   : > { %v5507_v52 = vadd.f32 %v4654_v42, %v4150_v39  ;;  %v5509_v24 = vadd.f32 %v4818_v51, %v4158_v40  ;;  %v4656_v26 = vpop.f32.mrb[6].mxu0  ;;  %v4820_v55 = vpop.f32.mrb[6].mxu1 }
 0x840   : > { %v4657_v31 = vpop.f32.mrb[7].mxu0  ;;  %v4821_v27 = vpop.f32.mrb[7].mxu1 }
 0x841   : > { %v4848_v10 = vcombine.low %v5506_v49, %v5507_v52  ;;  %v4849_v56 = vcombine.low %v5508_v11, %v5509_v24 }
 0x843   : > { %v4856_v25 = vrot.slane %v4848_v10, %v6619_v16  ;;  %v4863_v47 = vrot.slane %v4849_v56, %v6619_v16 }
 0x845   : > { %v4864_v50 = vcombine.low %v4856_v25, %v4863_v47 }
 0x847   : > { %4868 = vst [vmem:[#allocation17 + $0x8] sm:$0xff] %v4864_v50 }
 0x848 PF: > { %p5615_p0 = scmp.eq.s32.totalorder %s6018_s9, 3  ;;  %s5953_s19 = smov [#allocation17]  }
 0x849   : > { %s4876_s12 = sshll.u32 %s5953_s19, 4  ;;  %s4877_s12 = int_to_ptr.vmem [resolvable:$true] %s4876_s12 }
 0x84a   : > { %s5845_s22 = scalar_lea.vmem %s4877_s12, 256  ;;  %p5852_p3 = scmp.lt.s32.totalorder %s4877_s12, %s4877_s12 }
 0x84b   : > { %p5846_p2 = scmp.ne.s32.totalorder %s4877_s12, %s5845_s22  ;;  %p5853_p7 = scmp.lt.s32.totalorder %s5845_s22, %s5845_s22 }
 0x84d   : > { %p5847_p6 = pnand %p5846_p2, %p5615_p0  ;;  %p5854_p10 = por %p5853_p7, %p5852_p3 }
 0x84f   : > { %p5848_p13 = pneg %p5847_p6 }
 0x851   : > { %p5855_p8 = pnand %p5854_p10, %p5848_p13 }
 0x853   : > { %5858 = shalt.err (!%p5855_p8)
}
 0x854   : > { %s5859_s23 = scalar_lea.hbm %s6831_s8, 256 }
 0x855   : > { %p5860_p9 = scmp.ne.s32.totalorder %s6831_s8, %s5859_s23  ;;  %p5865_p4 = scmp.lt.u32.totalorder %s5859_s23, %s6831_s8 }
 0x857   : > { %p5861_p11 = pnand %p5860_p9, %p5615_p0 }
 0x859   : > { %p5862_p1 = pneg %p5861_p11 }
 0x85b   : > { %p5867_p5 = pnand %p5865_p4, %p5862_p1 }
 0x85d   : > { %5870 = shalt.err (!%p5867_p5)
}
 0x85e   : > { %5581 = dma.vmem_to_hbm [thread:$0]  (%p5615_p0), %s4877_s12, 256, %s6831_s8, [#allocation8]  }
 0x85f   : > { %5910 = dma.done.wait (%p5615_p0), [#allocation8], 256  }
 0x860   : > { %5912 = vsyncadd (%p5615_p0), [#allocation8], 4294967040 }
 0x861 PF: > { %p22_p12 = scmp.ge.s32.totalorder %s6154_s24, 6   ;;  %s6855_s27 = smov %s5919_s28 }
 0x862   : > { %s6856_s28 = smov %s5923_s29  ;;  %s6857_s29 = smov %s6164_s18 }
 0x863   : > { %s6858_s30 = smov %s6154_s24  ;;  %24 = sbr.rel (!%p22_p12) target bundleno = 10 (0xa), region = 130 }
 0x86a   :  { %4889 = vsyncpa [#allocation7], 1 }
 0x86b   :  { %4891 = vsyncpa [#allocation7 + $0x1], 1 }
 0x86c   :  { %4892 = vsyncpa [#allocation10], 1 }
 0x86d   :  { %4893 = vsyncpa [#allocation13], 1 }
 0x86e   :  { %4895 = vsyncpa [#allocation13 + $0x1], 1 }
 0x86f   :  { %4896 = vsyncpa [#allocation16], 1 }
 0x870   :  { %4897 = vsyncpa [#allocation8], 1 }
 0x871   :  { %4899 = vsyncpa [#allocation8 + $0x1], 1 }
 0x872   :  { %4900 = vsyncmov [#allocation5] }
 0x875   :  { %s4901_s9 = vpop.sfrf %4900 }
 0x876   :  { %p5483_p0 = scmp.ne.s32.totalorder %s4901_s9, 0 }
 0x878   :  { %4905 = shalt.err (%p5483_p0)  }

</bundles_post_ra>
